<compile_context>
chip_gen: v7x
topology: tpu7x:2x2x1
jax: 0.10.0
libtpu: 0.0.40
codegen_flags: <defaults>
</compile_context>

<pallas_src>
import functools

import jax
import jax.numpy as jnp
import numpy as np
from jax import lax
from jax.experimental import pallas as pl
from jax.experimental.pallas import tpu as pltpu


def channel_attention_kernel(x_ref, w1_ref, w2_ref, out_ref,
                             sum_ref, max_ref, *, hw_total, thw, wide):
    # x_ref:   (nb, C, thw)   current spatial tile of the current batch block
    # w1_ref:  (C, C//r)      conv1 weight, transposed for pooled @ w1
    # w2_ref:  (C//r, C)      conv2 weight, transposed for hidden @ w2
    # out_ref: (nb, C)        attention logits -> sigmoid
    # sum_ref / max_ref: resident f32 accumulators across the spatial grid axis.
    #   wide=True : shape (nb, C, 128)  -- lane-wide accumulators (thw % 128 == 0)
    #   wide=False: shape (nb, C)       -- direct reduce (HW < 128, single tile)
    k = pl.program_id(1)
    nk = pl.num_programs(1)
    nb, C = out_ref.shape
    has_remainder = (hw_total % thw) != 0

    @pl.when(k == 0)
    def _init():
        sum_ref[...] = jnp.zeros_like(sum_ref)
        max_ref[...] = jnp.full_like(max_ref, -jnp.inf)

    x = x_ref[...].astype(jnp.float32)      # per-tile upcast; DMA stays in input dtype

    if wide:
        n_chunks = thw // 128

        def accumulate(xs, xm):
            # Lane-aligned VPU add/max into the 128-wide accumulators; no cross-lane
            # reduce or C-to-lane relayout in the steady state.
            xs4 = xs.reshape(nb, C, n_chunks, 128)
            xm4 = xm.reshape(nb, C, n_chunks, 128)
            sum_ref[...] = sum_ref[...] + jnp.sum(xs4, axis=2)
            max_ref[...] = jnp.maximum(max_ref[...], jnp.max(xm4, axis=2))
    else:
        def accumulate(xs, xm):
            sum_ref[...] = sum_ref[...] + jnp.sum(xs, axis=-1)
            max_ref[...] = jnp.maximum(max_ref[...], jnp.max(xm, axis=-1))

    if has_remainder:
        # Only the last spatial tile hangs past the true extent: full tiles take the
        # unmasked path, the masked path (iota + compare + selects) runs once.
        @pl.when(k < nk - 1)
        def _body_full():
            accumulate(x, x)

        @pl.when(k == nk - 1)
        def _body_last():
            lane = lax.broadcasted_iota(jnp.int32, (1, 1, x.shape[2]), 2) + k * thw
            valid = lane < hw_total
            # Mask padded (unspecified-content) lanes before BOTH reductions.
            accumulate(jnp.where(valid, x, 0.0),
                       jnp.where(valid, x, -jnp.inf))
    else:
        accumulate(x, x)

    @pl.when(k == nk - 1)
    def _finalize():
        if wide:
            total = jnp.sum(sum_ref[...], axis=-1)   # single cross-lane reduce
            mx = jnp.max(max_ref[...], axis=-1)      # + relayout, once per batch block
        else:
            total = sum_ref[...]
            mx = max_ref[...]
        avg = total * (1.0 / hw_total)               # divide once, at the end
        # Fused shared MLP: stack avg/max -> one (2nb,C)@(C,C/r), ReLU, one matmul back.
        p = jnp.concatenate([avg, mx], axis=0)       # (2nb, C)
        w1 = w1_ref[...].astype(jnp.float32)
        w2 = w2_ref[...].astype(jnp.float32)
        h = jnp.maximum(jnp.dot(p, w1, preferred_element_type=jnp.float32), 0.0)
        y2 = jnp.dot(h, w2, preferred_element_type=jnp.float32)   # (2nb, C)
        y = y2[:nb, :] + y2[nb:, :]
        out_ref[...] = jax.nn.sigmoid(y).astype(out_ref.dtype)


def _vmem_limit_bytes():
    """Per-generation scoped-VMEM limit: ~3/4 of physical, capped at 96 MiB.
    128 MiB chips (v5e/v6e) -> 96 MiB; 64 MiB chips (v7x) -> 48 MiB."""
    try:
        cap = int(pltpu.get_tpu_info().vmem_capacity_bytes)
    except Exception:
        cap = 64 << 20  # conservative fallback (v7x per-core VMEM)
    return min(cap * 3 // 4, 96 << 20)


def _pick_batch_block(n):
    """Prefer two batch blocks (one per TensorCore on multi-core chips) when the
    split keeps the block's sublane dim a multiple of 8; otherwise one block."""
    if n % 2 == 0 and (n // 2) % 8 == 0:
        return n // 2
    return n


def channel_attention(x_nchw, w1_eff, w2_eff, *, thw=None, batch_block=None):
    """x_nchw: (N, C, H, W); w1_eff: (C//r, C) conv1 weight; w2_eff: (C, C//r) conv2 weight.
    Returns (N, C, 1, 1), matching the PyTorch module's output.

    If `thw` is given it must be a multiple of 128 (or equal H*W)."""
    N, C, H, W = x_nchw.shape
    HW = H * W
    x_flat = x_nchw.reshape(N, C, HW)       # keep input dtype: bf16 stays bf16 for the DMA
    w1 = jnp.transpose(w1_eff)              # (C, C//r) so pooled @ w1 == conv1
    w2 = jnp.transpose(w2_eff)              # (C//r, C) so hidden @ w2 == conv2

    vmem_limit = _vmem_limit_bytes()

    nb = _pick_batch_block(N) if batch_block is None else batch_block
    assert N % nb == 0, "batch_block must divide N"
    n_batch_blocks = N // nb

    itemsize = x_flat.dtype.itemsize
    acc_bytes = 2 * nb * C * 128 * 4                     # lane-wide f32 accumulators
    weight_bytes = (w1.size * w1.dtype.itemsize + w2.size * w2.dtype.itemsize)
    headroom = 4 << 20

    if thw is None:
        if HW < 128:
            thw = HW                                     # full-extent single tile
        else:
            # Tile budget: 2 double-buffered DMA copies + one f32 upcast temp per lane.
            per_lane_cost = nb * C * (2 * itemsize + 4)
            budget = max(vmem_limit - acc_bytes - weight_bytes - headroom,
                         per_lane_cost * 128)
            cap_lanes = max(128, (budget // per_lane_cost) // 128 * 128)
            thw = min(int(cap_lanes), (HW // 128) * 128)
    num_tiles = pl.cdiv(HW, thw)
    wide = (thw % 128 == 0)
    acc_shape = (nb, C, 128) if wide else (nb, C)

    kernel = functools.partial(channel_attention_kernel,
                               hw_total=HW, thw=thw, wide=wide)

    out = pl.pallas_call(
        kernel,
        out_shape=jax.ShapeDtypeStruct((N, C), x_nchw.dtype),
        grid=(n_batch_blocks, num_tiles),
        in_specs=[
            pl.BlockSpec((nb, C, thw), lambda b, k: (b, 0, k)),
            pl.BlockSpec(w1.shape, lambda b, k: (0, 0)),
            pl.BlockSpec(w2.shape, lambda b, k: (0, 0)),
        ],
        out_specs=pl.BlockSpec((nb, C), lambda b, k: (b, 0)),
        scratch_shapes=[
            pltpu.VMEM(acc_shape, jnp.float32),   # running sum
            pltpu.VMEM(acc_shape, jnp.float32),   # running max
        ],
        compiler_params=pltpu.CompilerParams(
            # batch blocks are independent (megacore-splittable); spatial axis is
            # a resident-accumulator reduction.
            dimension_semantics=("parallel", "arbitrary"),
            vmem_limit_bytes=vmem_limit,
        ),
    )(x_flat, w1, w2)
    return out.reshape(N, C, 1, 1)


def make_doconv1x1_effective_weight(key, out_ch, in_ch):
    """DOConv2d(in_ch, out_ch, 1, bias=False): W is (out, in, 1) and D (in, 1, 1) is
    initialized to identity (=1 for a 1x1 kernel), so the composed conv weight is the
    einsum of W and D.  Reproduce the composition deterministically."""
    kw, _ = jax.random.split(key)
    W = jax.random.normal(kw, (out_ch, in_ch, 1), dtype=jnp.float32) * 0.1
    D = jnp.ones((in_ch, 1, 1), dtype=jnp.float32)  # identity init, as in DOConv
    eff = jnp.einsum("ims,ois->oi", D, W)
    return eff  # (out_ch, in_ch)


def reference_forward(x, w1_eff, w2_eff):
    # Plain-JAX reference of the PyTorch forward.
    avg = jnp.mean(x, axis=(2, 3))
    mx = jnp.max(x, axis=(2, 3))

    def mlp(p):
        h = jnp.maximum(p @ w1_eff.T, 0.0)
        return h @ w2_eff.T

    y = mlp(avg) + mlp(mx)
    return jax.nn.sigmoid(y)[:, :, None, None]


if __name__ == "__main__":
    key = jax.random.PRNGKey(0)
    kx, k1, k2, kx2, kx3 = jax.random.split(key, 5)

    N, C, H, W = 2, 64, 16, 16
    ratio = 16
    hidden = C // ratio  # 4

    x = jax.random.normal(kx, (N, C, H, W), dtype=jnp.float32)
    w1_eff = make_doconv1x1_effective_weight(k1, hidden, C)   # (C//r, C)
    w2_eff = make_doconv1x1_effective_weight(k2, C, hidden)   # (C, C//r)
    ref = jax.block_until_ready(reference_forward(x, w1_eff, w2_eff))

    # Case 1: auto tile selection (single 256-lane tile here, wide accumulators).
    out = jax.block_until_ready(channel_attention(x, w1_eff, w2_eff))
    np.testing.assert_allclose(np.asarray(out), np.asarray(ref), rtol=1e-5, atol=1e-5)
    assert out.shape == (N, C, 1, 1)

    # Case 2: forced 128-lane tiles -> 2-step pipelined reduction, wide accumulators.
    out_t = jax.block_until_ready(channel_attention(x, w1_eff, w2_eff, thw=128))
    np.testing.assert_allclose(np.asarray(out_t), np.asarray(ref), rtol=1e-5, atol=1e-5)

    # Case 3: spatial extent not a multiple of the tile -> mask gated to the last tile.
    H2, W2 = 20, 20                                   # HW = 400 = 3*128 + 16
    x2 = jax.random.normal(kx2, (N, C, H2, W2), dtype=jnp.float32)
    ref_m = jax.block_until_ready(reference_forward(x2, w1_eff, w2_eff))
    out_m = jax.block_until_ready(channel_attention(x2, w1_eff, w2_eff, thw=128))
    np.testing.assert_allclose(np.asarray(out_m), np.asarray(ref_m), rtol=1e-5, atol=1e-5)
    out_m2 = jax.block_until_ready(channel_attention(x2, w1_eff, w2_eff))  # auto thw=384
    np.testing.assert_allclose(np.asarray(out_m2), np.asarray(ref_m), rtol=1e-5, atol=1e-5)

    # Case 4: bf16 input stays bf16 on the DMA path; math still accumulates in f32.
    x_bf16 = x.astype(jnp.bfloat16)
    out_b = jax.block_until_ready(channel_attention(x_bf16, w1_eff, w2_eff, thw=128))
    ref_b = jax.block_until_ready(
        reference_forward(x_bf16.astype(jnp.float32), w1_eff, w2_eff))
    np.testing.assert_allclose(np.asarray(out_b, dtype=np.float32), np.asarray(ref_b),
                               rtol=2e-2, atol=2e-2)

    # Case 5: HW < 128 (full-extent tile path) + batch split into two parallel blocks
    # (N=16 -> nb=8), exercising the megacore-friendly leading grid axis.
    N3, H3, W3 = 16, 8, 8
    x3 = jax.random.normal(kx3, (N3, C, H3, W3), dtype=jnp.float32)
    ref_s = jax.block_until_ready(reference_forward(x3, w1_eff, w2_eff))
    out_s = jax.block_until_ready(channel_attention(x3, w1_eff, w2_eff))
    np.testing.assert_allclose(np.asarray(out_s), np.asarray(ref_s), rtol=1e-5, atol=1e-5)

    print("KERNEL_OK")
</pallas_src>

<mosaic_0001>
module attributes {stable_mosaic.version = 11 : i64} {
  func.func @channel_attention_kernel(%arg0: i32, %arg1: i32, %arg2: memref<2x64x256xf32, #tpu.memory_space<vmem>>, %arg3: memref<64x4xf32, #tpu.memory_space<vmem>>, %arg4: memref<4x64xf32, #tpu.memory_space<vmem>>, %arg5: memref<2x64xf32, #tpu.memory_space<vmem>>, %arg6: memref<2x64x128xf32, #tpu.memory_space<vmem>>, %arg7: memref<2x64x128xf32, #tpu.memory_space<vmem>>) attributes {dimension_semantics = [#tpu.dimension_semantics<parallel>, #tpu.dimension_semantics<arbitrary>], iteration_bounds = array<i64: 1, 1>, scalar_prefetch = 0 : i64, scratch_operands = 2 : i64, tpu.core_type = #tpu.core_type<tc>, window_params = [{transform_indices = @transform_0, window_bounds = array<i64: 2, 64, 256>}, {pipeline_mode = #tpu.pipeline_mode<synchronous>, transform_indices = @transform_1, window_bounds = array<i64: 64, 4>}, {pipeline_mode = #tpu.pipeline_mode<synchronous>, transform_indices = @transform_2, window_bounds = array<i64: 4, 64>}, {transform_indices = @transform_3, window_bounds = array<i64: 2, 64>}]} {
    %c0_i32 = arith.constant 0 : i32
    %0 = arith.cmpi eq, %arg1, %c0_i32 : i32
    %1 = arith.extui %0 : i1 to i32
    %c0_i32_0 = arith.constant 0 : i32
    %2 = arith.cmpi ne, %1, %c0_i32_0 : i32
    scf.if %2 {
      %cst_18 = arith.constant 0.000000e+00 : f32
      %17 = vector.broadcast %cst_18 : f32 to vector<2x64x128xf32>
      %c0_19 = arith.constant 0 : index
      %c0_20 = arith.constant 0 : index
      %c0_21 = arith.constant 0 : index
      %18 = vector.load %arg6[%c0_19, %c0_20, %c0_21] : memref<2x64x128xf32, #tpu.memory_space<vmem>>, vector<2x64x128xf32>
      tpu.vector_store %arg6[%c0_19, %c0_20, %c0_21], %17 {strides = array<i32>} : memref<2x64x128xf32, #tpu.memory_space<vmem>>, vector<2x64x128xf32>,
      %cst_22 = arith.constant 0xFF800000 : f32
      %19 = vector.broadcast %cst_22 : f32 to vector<2x64x128xf32>
      %c0_23 = arith.constant 0 : index
      %c0_24 = arith.constant 0 : index
      %c0_25 = arith.constant 0 : index
      %20 = vector.load %arg7[%c0_23, %c0_24, %c0_25] : memref<2x64x128xf32, #tpu.memory_space<vmem>>, vector<2x64x128xf32>
      tpu.vector_store %arg7[%c0_23, %c0_24, %c0_25], %19 {strides = array<i32>} : memref<2x64x128xf32, #tpu.memory_space<vmem>>, vector<2x64x128xf32>,
    } else {
    }
    %c0 = arith.constant 0 : index
    %c0_1 = arith.constant 0 : index
    %c0_2 = arith.constant 0 : index
    %3 = vector.load %arg2[%c0, %c0_1, %c0_2] : memref<2x64x256xf32, #tpu.memory_space<vmem>>, vector<2x64x256xf32>
    %4 = vector.shape_cast %3 : vector<2x64x256xf32> to vector<2x64x2x128xf32>
    %5 = vector.shape_cast %3 : vector<2x64x256xf32> to vector<2x64x2x128xf32>
    %c0_3 = arith.constant 0 : index
    %c0_4 = arith.constant 0 : index
    %c0_5 = arith.constant 0 : index
    %6 = vector.load %arg6[%c0_3, %c0_4, %c0_5] : memref<2x64x128xf32, #tpu.memory_space<vmem>>, vector<2x64x128xf32>
    %cst = arith.constant dense<0.000000e+00> : vector<2x64x128xf32>
    %7 = vector.multi_reduction <add>, %4, %cst [2] : vector<2x64x2x128xf32> to vector<2x64x128xf32>
    %8 = arith.addf %6, %7 : vector<2x64x128xf32>
    %c0_6 = arith.constant 0 : index
    %c0_7 = arith.constant 0 : index
    %c0_8 = arith.constant 0 : index
    %9 = vector.load %arg6[%c0_6, %c0_7, %c0_8] : memref<2x64x128xf32, #tpu.memory_space<vmem>>, vector<2x64x128xf32>
    tpu.vector_store %arg6[%c0_6, %c0_7, %c0_8], %8 {strides = array<i32>} : memref<2x64x128xf32, #tpu.memory_space<vmem>>, vector<2x64x128xf32>,
    %c0_9 = arith.constant 0 : index
    %c0_10 = arith.constant 0 : index
    %c0_11 = arith.constant 0 : index
    %10 = vector.load %arg7[%c0_9, %c0_10, %c0_11] : memref<2x64x128xf32, #tpu.memory_space<vmem>>, vector<2x64x128xf32>
    %cst_12 = arith.constant dense<0xFF800000> : vector<2x64x128xf32>
    %11 = vector.multi_reduction <maximumf>, %5, %cst_12 [2] : vector<2x64x2x128xf32> to vector<2x64x128xf32>
    %12 = arith.maximumf %10, %11 : vector<2x64x128xf32>
    %c0_13 = arith.constant 0 : index
    %c0_14 = arith.constant 0 : index
    %c0_15 = arith.constant 0 : index
    %13 = vector.load %arg7[%c0_13, %c0_14, %c0_15] : memref<2x64x128xf32, #tpu.memory_space<vmem>>, vector<2x64x128xf32>
    tpu.vector_store %arg7[%c0_13, %c0_14, %c0_15], %12 {strides = array<i32>} : memref<2x64x128xf32, #tpu.memory_space<vmem>>, vector<2x64x128xf32>,
    %c0_i32_16 = arith.constant 0 : i32
    %14 = arith.cmpi eq, %arg1, %c0_i32_16 : i32
    %15 = arith.extui %14 : i1 to i32
    %c0_i32_17 = arith.constant 0 : i32
    %16 = arith.cmpi ne, %15, %c0_i32_17 : i32
    scf.if %16 {
      %c0_18 = arith.constant 0 : index
      %c0_19 = arith.constant 0 : index
      %c0_20 = arith.constant 0 : index
      %17 = vector.load %arg6[%c0_18, %c0_19, %c0_20] : memref<2x64x128xf32, #tpu.memory_space<vmem>>, vector<2x64x128xf32>
      %cst_21 = arith.constant dense<0.000000e+00> : vector<2x64xf32>
      %18 = vector.multi_reduction <add>, %17, %cst_21 [2] : vector<2x64x128xf32> to vector<2x64xf32>
      %c0_22 = arith.constant 0 : index
      %c0_23 = arith.constant 0 : index
      %c0_24 = arith.constant 0 : index
      %19 = vector.load %arg7[%c0_22, %c0_23, %c0_24] : memref<2x64x128xf32, #tpu.memory_space<vmem>>, vector<2x64x128xf32>
      %cst_25 = arith.constant dense<0xFF800000> : vector<2x64xf32>
      %20 = vector.multi_reduction <maximumf>, %19, %cst_25 [2] : vector<2x64x128xf32> to vector<2x64xf32>
      %cst_26 = arith.constant 3.906250e-03 : f32
      %21 = vector.broadcast %cst_26 : f32 to vector<2x64xf32>
      %22 = arith.mulf %18, %21 : vector<2x64xf32>
      %23 = tpu.concatenate %22, %20 in 0 : vector<2x64xf32>, vector<2x64xf32> -> vector<4x64xf32>
      %c0_27 = arith.constant 0 : index
      %c0_28 = arith.constant 0 : index
      %24 = vector.load %arg3[%c0_27, %c0_28] : memref<64x4xf32, #tpu.memory_space<vmem>>, vector<64x4xf32>
      %c0_29 = arith.constant 0 : index
      %c0_30 = arith.constant 0 : index
      %25 = vector.load %arg4[%c0_29, %c0_30] : memref<4x64xf32, #tpu.memory_space<vmem>>, vector<4x64xf32>
      %cst_31 = arith.constant dense<0.000000e+00> : vector<4x4xf32>
      %26 = tpu.matmul %23, %24, %cst_31 {dimension_numbers = #tpu.dot_dimension_numbers<[1], [0], [0], [1], [0, 0, 1, 1], [], []>} : vector<4x64xf32>, vector<64x4xf32>, vector<4x4xf32> -> vector<4x4xf32>
      %cst_32 = arith.constant 0.000000e+00 : f32
      %27 = vector.broadcast %cst_32 : f32 to vector<4x4xf32>
      %28 = arith.maximumf %26, %27 : vector<4x4xf32>
      %cst_33 = arith.constant dense<0.000000e+00> : vector<4x64xf32>
      %29 = tpu.matmul %28, %25, %cst_33 {dimension_numbers = #tpu.dot_dimension_numbers<[1], [0], [0], [1], [0, 0, 1, 1], [], []>} : vector<4x4xf32>, vector<4x64xf32>, vector<4x64xf32> -> vector<4x64xf32>
      %30 = vector.extract_strided_slice %29 {offsets = [0, 0], sizes = [2, 64], strides = [1, 1]} : vector<4x64xf32> to vector<2x64xf32>
      %31 = vector.extract_strided_slice %29 {offsets = [2, 0], sizes = [2, 64], strides = [1, 1]} : vector<4x64xf32> to vector<2x64xf32>
      %32 = arith.addf %30, %31 : vector<2x64xf32>
      %33 = arith.negf %32 : vector<2x64xf32>
      %34 = math.exp %33 : vector<2x64xf32>
      %cst_34 = arith.constant 1.000000e+00 : f32
      %35 = vector.broadcast %cst_34 : f32 to vector<2x64xf32>
      %36 = arith.addf %35, %34 : vector<2x64xf32>
      %37 = arith.divf %35, %36 : vector<2x64xf32>
      %c0_35 = arith.constant 0 : index
      %c0_36 = arith.constant 0 : index
      %38 = vector.load %arg5[%c0_35, %c0_36] : memref<2x64xf32, #tpu.memory_space<vmem>>, vector<2x64xf32>
      tpu.vector_store %arg5[%c0_35, %c0_36], %37 {strides = array<i32>} : memref<2x64xf32, #tpu.memory_space<vmem>>, vector<2x64xf32>,
    } else {
    }
    return
  }
  func.func @transform_0(%arg0: i32, %arg1: i32) -> (i32, i32, i32) {
    %c0_i32 = arith.constant 0 : i32
    %c0_i32_0 = arith.constant 0 : i32
    return %arg0, %c0_i32, %arg1 : i32, i32, i32
  }
  func.func @transform_1(%arg0: i32, %arg1: i32) -> (i32, i32) {
    %c0_i32 = arith.constant 0 : i32
    %c0_i32_0 = arith.constant 0 : i32
    %c0_i32_1 = arith.constant 0 : i32
    return %c0_i32, %c0_i32_0 : i32, i32
  }
  func.func @transform_2(%arg0: i32, %arg1: i32) -> (i32, i32) {
    %c0_i32 = arith.constant 0 : i32
    %c0_i32_0 = arith.constant 0 : i32
    %c0_i32_1 = arith.constant 0 : i32
    return %c0_i32, %c0_i32_0 : i32, i32
  }
  func.func @transform_3(%arg0: i32, %arg1: i32) -> (i32, i32) {
    %c0_i32 = arith.constant 0 : i32
    %c0_i32_0 = arith.constant 0 : i32
    return %arg0, %c0_i32 : i32, i32
  }
}

</mosaic_0001>

<bundles_post_ra>
// kernel: tpu_custom_call.1
= control target key start
LH: loop header
LB: loop body
LE: loop exit
PB: predicated region body
PF: predicated region fallthrough
CT: control target
= control target key end

     0   :  { %8 = vsyncpa [#allocation5], 0  ;;  %s5748_s0 = inlined_call_operand.hbm [shape: f32[2,64,256], index: 0, kind: input, shape index: {}]   ;;  %s5749_s1 = inlined_call_operand.vmem [shape: f32[64,4], index: 1, kind: input, shape index: {}]   ;;  %s5750_s2 = inlined_call_operand.vmem [shape: f32[4,64], index: 2, kind: input, shape index: {}]   ;;  %s5751_s3 = inlined_call_operand.hbm [shape: f32[2,64], index: 3, kind: output, shape index: {}]  }
   0x1   :  { %9 = vsyncpa [#allocation6], 0  ;;  %s4186_s12 = smov [#allocation4]   ;;  %s4138_s16 = scalar_lea.hbm %s5748_s0, 4096 }
   0x2   :  { %s15_s13 = sshll.u32 %s4186_s12, 4  ;;  %p4139_p0 = scmp.ne.s32.totalorder %s5748_s0, %s4138_s16  ;;  %s16_s13 = int_to_ptr.vmem [resolvable:$true] %s15_s13 }
   0x3   :  { %p4142_p1 = scmp.lt.u32.totalorder %s4138_s16, %s5748_s0 }
   0x5   :  { %p4144_p2 = pnand %p4142_p1, %p4139_p0 }
   0x7   :  { %4147 = shalt.err (!%p4144_p2)
}
   0x8   :  { %s4148_s21 = scalar_lea.vmem %s16_s13, 4096  ;;  %p4153_p4 = scmp.lt.s32.totalorder %s16_s13, %s16_s13 }
   0x9   :  { %p4149_p3 = scmp.ne.s32.totalorder %s16_s13, %s4148_s21  ;;  %p4154_p5 = scmp.lt.s32.totalorder %s4148_s21, %s4148_s21 }
   0xb   :  { %p4155_p6 = por %p4154_p5, %p4153_p4 }
   0xd   :  { %p4156_p7 = pnand %p4155_p6, %p4149_p3 }
   0xf   :  { %4159 = shalt.err (!%p4156_p7)
}
  0x10   :  { %s4187_s22 = smov 256   ;;  %s4188_s23 = smov 16  }
  0x11   :  { %21 = dma.hbm_to_vmem [thread:$0]  %s5748_s0, 4096, %s16_s13, [#allocation5], %s4187_s22, %s4187_s22, %s4188_s23  }
  0x12   :  { %4182 = dma.done.wait [#allocation5], 4096  }
  0x13   :  { %4183 = vsyncadd [#allocation5], 4294963200  ;;  %v5752_v0 = vlaneseq  ;;  %v4189_v1 = vmov 1983009808   ;;  %v5753_v3 = vmov 0.0   ;;  %v81_v10 = vld [vmem:[#allocation4 + $0x80] sm:$0xff] }
  0x14   :  { %v99_v2 = vunpack.c.l.s4 %v4189_v1  ;;  %4108 = vmatprep.subr.mxu1 %v5753_v3  ;;  %v4191_v5 = vmov 1934713408   ;;  %v82_v11 = vld [vmem:[#allocation4 + $0x88] sm:$0xff]  ;;  %vm1169_vm0 = vcmask 1041408   ;;  %v65_v13 = vld [vmem:[#allocation4] sm:$0xff]  ;;  %v625_v14 = vcombine.high %v81_v10, %v5753_v3  ;;  %s4194_s15 = smov [#allocation7]  }
  0x15   :  { %v4229_v4 = vshrl.u32 %v5752_v0, 7  ;;  %v130_v6 = vunpack.c.l.s4 %v4191_v5  ;;  %v640_v16 = vcombine.high %v82_v11, %v5753_v3  ;;  %v66_v18 = vld [vmem:[#allocation4 + $0x8] sm:$0xff]  ;;  %v97_v19 = vcombine.high %v65_v13, %v5753_v3  ;;  %s4065_s16 = sshll.u32 %s4194_s15, 4  ;;  %s4066_s16 = int_to_ptr.vmem [resolvable:$true] %s4065_s16 }
  0x16   :  { %v100_v7 = vunpack.c.0.s8 %v99_v2  ;;  %v112_v21 = vcombine.high %v66_v18, %v5753_v3  ;;  %vm2194_vm1 = vcmask 1041409   ;;  %vm2196_vm2 = vcmask 1042434   ;;  %p4165_p9 = scmp.lt.s32.totalorder %s4066_s16, %s4066_s16 }
  0x17   :  { %5817 = vst [vmem:[#allocation10_spill] sm:$0xff] %v4229_v4  ;;  %v131_v8 = vunpack.c.0.s8 %v130_v6  ;;  %vm2198_vm3 = vcmask 1043459   ;;  %vm2200_vm4 = vcmask 1044484   ;;  %vm2202_vm5 = vcmask 1045509  }
  0x18   :  { %v4232_v9 = vsub.s32 %v100_v7, %v4229_v4  ;;  %vm2204_vm6 = vcmask 1046534   ;;  %vm2206_vm7 = vcmask 1047559   ;;  %vm4193_vm8 = vmmov 0  }
  0x19   :  { %v4235_v12 = vsub.s32 %v131_v8, %v4229_v4  ;;  %vm3703_vm9 = vcmask 130112   ;;  %vm3710_vm10 = vcmask 195712   ;;  %vm3717_vm11 = vcmask 261312  }
  0x1a   :  { %5818 = vst [vmem:[#allocation11_spill] sm:$0xff] %v4232_v9  ;;  %v632_v15 = vrot.slane %v81_v10, %v4232_v9  ;;  %v647_v17 = vrot.slane %v82_v11, %v4232_v9  ;;  %v104_v20 = vrot.slane %v65_v13, %v4232_v9  ;;  %v119_v22 = vrot.slane %v66_v18, %v4232_v9 }
  0x1b   :  { %v639_v23 = vrot.slane %v625_v14, %v4232_v9  ;;  %v654_v24 = vrot.slane %v640_v16, %v4232_v9  ;;  %v111_v27 = vrot.slane %v97_v19, %v4232_v9  ;;  %v126_v28 = vrot.slane %v112_v21, %v4232_v9 }
  0x1c   :  { %v655_v25 = vcombine.low %v632_v15, %v647_v17  ;;  %v656_v26 = vcombine.high %v632_v15, %v647_v17  ;;  %v127_v29 = vcombine.low %v104_v20, %v119_v22  ;;  %v128_v30 = vcombine.high %v104_v20, %v119_v22 }
  0x1d   :  { %v671_v33 = vcombine.low %v639_v23, %v654_v24  ;;  %v672_v34 = vcombine.high %v639_v23, %v654_v24  ;;  %v143_v37 = vcombine.low %v111_v27, %v126_v28  ;;  %v144_v38 = vcombine.high %v111_v27, %v126_v28 }
  0x1e   :  { %v4250_v31 = vrot.slane %v655_v25, %v4235_v12  ;;  %v4253_v32 = vrot.slane %v656_v26, %v4235_v12  ;;  %v4256_v35 = vrot.slane %v127_v29, %v4235_v12  ;;  %v4259_v36 = vrot.slane %v128_v30, %v4235_v12 }
  0x1f   :  { %v4262_v39 = vrot.slane %v671_v33, %v4235_v12  ;;  %v4265_v40 = vrot.slane %v672_v34, %v4235_v12  ;;  %v4280_v45 = vrot.slane %v143_v37, %v4235_v12  ;;  %v4283_v46 = vrot.slane %v144_v38, %v4235_v12 }
  0x20   :  { %5819 = vst [vmem:[#allocation12_spill] sm:$0xff] %v4250_v31  ;;  %5820 = vst [vmem:[#allocation13_spill] sm:$0xff] %v4253_v32  ;;  %v4269_v41 = vcombine.high %v4250_v31, %v5753_v3  ;;  %v4273_v42 = vcombine.high %v4253_v32, %v5753_v3  ;;  %v1618_v43 = vsel %vm1169_vm0, %v4250_v31, 0.0  ;;  %v1632_v44 = vsel %vm1169_vm0, %v4253_v32, 0.0 }
  0x21   :  { %5821 = vst [vmem:[#allocation14_spill] sm:$0xff] %v4262_v39  ;;  %5822 = vst [vmem:[#allocation15_spill] sm:$0xff] %v4265_v40  ;;  %v4287_v47 = vcombine.high %v4262_v39, %v5753_v3  ;;  %v4291_v48 = vcombine.high %v4265_v40, %v5753_v3  ;;  %v1619_v49 = vrot.slane %v1618_v43, 4  ;;  %v1633_v52 = vrot.slane %v1632_v44, 4 }
  0x22   :  { %5823 = vst [vmem:[#allocation16_spill] sm:$0xff] %v4269_v41  ;;  %5824 = vst [vmem:[#allocation17_spill] sm:$0xff] %v4273_v42  ;;  %v1625_v50 = vsel %vm1169_vm0, %v4269_v41, 0.0  ;;  %v1639_v53 = vsel %vm1169_vm0, %v4273_v42, 0.0  ;;  %v1646_v54 = vsel %vm1169_vm0, %v4262_v39, 0.0  ;;  %v1660_v62 = vsel %vm1169_vm0, %v4265_v40, 0.0 }
  0x23   :  { %5825 = vst [vmem:[#allocation18_spill] sm:$0xff] %v4287_v47  ;;  %5826 = vst [vmem:[#allocation19_spill] sm:$0xff] %v4291_v48  ;;  %v1626_v51 = vrot.slane %v1625_v50, 4  ;;  %v1620_v55 = vadd.f32 %v1619_v49, %v1618_v43  ;;  %v1640_v56 = vrot.slane %v1639_v53, 4  ;;  %v1647_v57 = vrot.slane %v1646_v54, 4 }
  0x24   :  { %v1653_v58 = vsel %vm1169_vm0, %v4287_v47, 0.0  ;;  %v1634_v60 = vadd.f32 %v1633_v52, %v1632_v44  ;;  %v1661_v5 = vrot.slane %v1660_v62, 4  ;;  %v1667_v10 = vsel %vm1169_vm0, %v4291_v48, 0.0 }
  0x25   :  { %v1627_v59 = vadd.f32 %v1626_v51, %v1625_v50  ;;  %v1654_v61 = vrot.slane %v1653_v58, 4  ;;  %v1621_v63 = vrot.slane %v1620_v55, 2  ;;  %v1641_v1 = vadd.f32 %v1640_v56, %v1639_v53 }
  0x26   :  { %v1648_v2 = vadd.f32 %v1647_v57, %v1646_v54  ;;  %v1635_v7 = vrot.slane %v1634_v60, 2  ;;  %v1662_v15 = vadd.f32 %v1661_v5, %v1660_v62  ;;  %v1668_v19 = vrot.slane %v1667_v10, 4 }
  0x27   :  { %v1628_v6 = vrot.slane %v1627_v59, 2  ;;  %v1655_v8 = vadd.f32 %v1654_v61, %v1653_v58  ;;  %v1622_v11 = vadd.f32 %v1621_v63, %v1620_v55  ;;  %v1642_v13 = vrot.slane %v1641_v1, 2 }
  0x28   :  { %v1649_v14 = vrot.slane %v1648_v2, 2  ;;  %v1636_v17 = vadd.f32 %v1635_v7, %v1634_v60  ;;  %v1663_v23 = vrot.slane %v1662_v15, 2  ;;  %v1669_v27 = vadd.f32 %v1668_v19, %v1667_v10 }
  0x29   :  { %v1629_v16 = vadd.f32 %v1628_v6, %v1627_v59  ;;  %v1656_v18 = vrot.slane %v1655_v8, 2  ;;  %v1623_v20 = vrot.slane %v1622_v11, 1  ;;  %v1643_v21 = vadd.f32 %v1642_v13, %v1641_v1 }
  0x2a   :  { %v1650_v22 = vadd.f32 %v1649_v14, %v1648_v2  ;;  %v1637_v25 = vrot.slane %v1636_v17, 1  ;;  %v1664_v33 = vadd.f32 %v1663_v23, %v1662_v15  ;;  %v1670_v43 = vrot.slane %v1669_v27, 2 }
  0x2b   :  { %v1630_v24 = vrot.slane %v1629_v16, 1  ;;  %v1657_v26 = vadd.f32 %v1656_v18, %v1655_v8  ;;  %v1624_v28 = vadd.f32 %v1623_v20, %v1622_v11  ;;  %v1644_v29 = vrot.slane %v1643_v21, 1 }
  0x2c   :  { %v1651_v30 = vrot.slane %v1650_v22, 1  ;;  %v1638_v37 = vadd.f32 %v1637_v25, %v1636_v17  ;;  %v1665_v50 = vrot.slane %v1664_v33, 1  ;;  %v4307_v51 = vcombine.high %v4256_v35, %v5753_v3 }
  0x2d   :  { %v1631_v34 = vadd.f32 %v1630_v24, %v1629_v16  ;;  %v1658_v38 = vrot.slane %v1657_v26, 1  ;;  %v1645_v44 = vadd.f32 %v1644_v29, %v1643_v21  ;;  %v1671_v53 = vadd.f32 %v1670_v43, %v1669_v27 }
  0x2e   :  { %v1652_v49 = vadd.f32 %v1651_v30, %v1650_v22  ;;  %v4312_v55 = vcombine.high %v4259_v36, %v5753_v3  ;;  %v1666_v56 = vadd.f32 %v1665_v50, %v1664_v33  ;;  %v4317_v58 = vcombine.high %v4280_v45, %v5753_v3 }
  0x2f   :  { %v1659_v52 = vadd.f32 %v1658_v38, %v1657_v26  ;;  %v2257_v54 = vsel %vm2194_vm1, %v1631_v34, %v1624_v28  ;;  %v4321_v59 = vcombine.high %v4283_v46, %v5753_v3  ;;  %v1672_v60 = vrot.slane %v1671_v53, 1 }
  0x30   :  { %v2258_v57 = vsel %vm2196_vm2, %v1638_v37, %v2257_v54  ;;  %v1170_v62 = vsel %vm1169_vm0, %v4256_v35, 0.0  ;;  %v1177_v63 = vsel %vm1169_vm0, %v4307_v51, 0.0  ;;  %v1184_v6 = vsel %vm1169_vm0, %v4259_v36, 0.0 }
  0x31   :  { %v2259_v61 = vsel %vm2198_vm3, %v1645_v44, %v2258_v57  ;;  %v1171_v2 = vrot.slane %v1170_v62, 4  ;;  %v1178_v5 = vrot.slane %v1177_v63, 4  ;;  %v1673_v7 = vadd.f32 %v1672_v60, %v1671_v53 }
  0x32   :  { %v2260_v1 = vsel %vm2200_vm4, %v1652_v49, %v2259_v61  ;;  %v1185_v10 = vrot.slane %v1184_v6, 4  ;;  %v1191_v11 = vsel %vm1169_vm0, %v4312_v55, 0.0  ;;  %v1198_v19 = vsel %vm1169_vm0, %v4280_v45, 0.0 }
  0x33   :  { %v2261_v8 = vsel %vm2202_vm5, %v1659_v52, %v2260_v1  ;;  %v1172_v14 = vadd.f32 %v1171_v2, %v1170_v62  ;;  %v1179_v15 = vadd.f32 %v1178_v5, %v1177_v63  ;;  %v1192_v16 = vrot.slane %v1191_v11, 4 }
  0x34   :  { %v2262_v13 = vsel %vm2204_vm6, %v1666_v56, %v2261_v8  ;;  %v1186_v18 = vadd.f32 %v1185_v10, %v1184_v6  ;;  %v1205_v20 = vsel %vm1169_vm0, %v4317_v58, 0.0  ;;  %v1199_v24 = vrot.slane %v1198_v19, 4  ;;  %v83_v8 = vld [vmem:[#allocation4 + $0x90] sm:$0xff] }
  0x35   :  { %v2263_v17 = vsel %vm2206_vm7, %v1673_v7, %v2262_v13  ;;  %v1173_v21 = vrot.slane %v1172_v14, 2  ;;  %v1180_v22 = vrot.slane %v1179_v15, 2  ;;  %v1193_v23 = vadd.f32 %v1192_v16, %v1191_v11 }
  0x36   :  { %3596 = vadd.xlane.f32.xlu1 %v2263_v17  ;;  %v1187_v25 = vrot.slane %v1186_v18, 2  ;;  %v1206_v26 = vrot.slane %v1205_v20, 4  ;;  %v1212_v27 = vsel %vm1169_vm0, %v4283_v46, 0.0  ;;  %v1219_v28 = vsel %vm1169_vm0, %v4321_v59, 0.0 }
  0x37   :  { %v1174_v29 = vadd.f32 %v1173_v21, %v1172_v14  ;;  %v1181_v30 = vadd.f32 %v1180_v22, %v1179_v15  ;;  %v1194_v33 = vrot.slane %v1193_v23, 2  ;;  %v1200_v34 = vadd.f32 %v1199_v24, %v1198_v19  ;;  %v84_v19 = vld [vmem:[#allocation4 + $0x98] sm:$0xff] }
  0x38   :  { %v1188_v37 = vadd.f32 %v1187_v25, %v1186_v18  ;;  %v1207_v38 = vadd.f32 %v1206_v26, %v1205_v20  ;;  %v1213_v43 = vrot.slane %v1212_v27, 4  ;;  %v1220_v44 = vrot.slane %v1219_v28, 4  ;;  %v67_v20 = vld [vmem:[#allocation4 + $0x10] sm:$0xff] }
  0x39   :  { %v1175_v49 = vrot.slane %v1174_v29, 1  ;;  %v1182_v50 = vrot.slane %v1181_v30, 1  ;;  %v1195_v52 = vadd.f32 %v1194_v33, %v1193_v23  ;;  %v1201_v53 = vrot.slane %v1200_v34, 2  ;;  %v68_v33 = vld [vmem:[#allocation4 + $0x18] sm:$0xff] }
  0x3a   :  { %v1189_v54 = vrot.slane %v1188_v37, 1  ;;  %v1208_v56 = vrot.slane %v1207_v38, 2  ;;  %v1214_v57 = vadd.f32 %v1213_v43, %v1212_v27  ;;  %v1221_v60 = vadd.f32 %v1220_v44, %v1219_v28 }
  0x3b   :  { %v1176_v61 = vadd.f32 %v1175_v49, %v1174_v29  ;;  %v1183_v62 = vadd.f32 %v1182_v50, %v1181_v30  ;;  %v1196_v63 = vrot.slane %v1195_v52, 1  ;;  %v1202_v1 = vadd.f32 %v1201_v53, %v1200_v34 }
  0x3c   :  { %v1190_v2 = vadd.f32 %v1189_v54, %v1188_v37  ;;  %v1209_v5 = vadd.f32 %v1208_v56, %v1207_v38  ;;  %v1215_v6 = vrot.slane %v1214_v57, 2  ;;  %v1222_v7 = vrot.slane %v1221_v60, 2 }
  0x3d   :  { %v1197_v10 = vadd.f32 %v1196_v63, %v1195_v52  ;;  %v1203_v11 = vrot.slane %v1202_v1, 1  ;;  %v2195_v13 = vsel %vm2194_vm1, %v1183_v62, %v1176_v61  ;;  %v691_v14 = vcombine.high %v83_v8, %v5753_v3 }
  0x3e   :  { %v1210_v15 = vrot.slane %v1209_v5, 1  ;;  %v1216_v16 = vadd.f32 %v1215_v6, %v1214_v57  ;;  %v1223_v17 = vadd.f32 %v1222_v7, %v1221_v60  ;;  %v2197_v18 = vsel %vm2196_vm2, %v1190_v2, %v2195_v13 }
  0x3f   :  { %v1204_v21 = vadd.f32 %v1203_v11, %v1202_v1  ;;  %v2199_v22 = vsel %vm2198_vm3, %v1197_v10, %v2197_v18  ;;  %v698_v23 = vrot.slane %v83_v8, %v4232_v9  ;;  %v705_v24 = vrot.slane %v691_v14, %v4232_v9 }
  0x40   :  { %v1211_v25 = vadd.f32 %v1210_v15, %v1209_v5  ;;  %v1217_v26 = vrot.slane %v1216_v16, 1  ;;  %v1224_v27 = vrot.slane %v1223_v17, 1  ;;  %v706_v28 = vcombine.high %v84_v19, %v5753_v3 }
  0x41   :  { %v2201_v29 = vsel %vm2200_vm4, %v1204_v21, %v2199_v22  ;;  %v713_v30 = vrot.slane %v84_v19, %v4232_v9  ;;  %v163_v34 = vcombine.high %v67_v20, %v5753_v3  ;;  %v4355_v37 = vrot.slane %v67_v20, %v4232_v9 }
  0x42   :  { %v1218_v38 = vadd.f32 %v1217_v26, %v1216_v16  ;;  %v1225_v43 = vadd.f32 %v1224_v27, %v1223_v17  ;;  %v2203_v44 = vsel %vm2202_vm5, %v1211_v25, %v2201_v29  ;;  %v720_v49 = vrot.slane %v706_v28, %v4232_v9 }
  0x43   :  { %v721_v50 = vcombine.low %v698_v23, %v713_v30  ;;  %v722_v52 = vcombine.high %v698_v23, %v713_v30  ;;  %v4360_v53 = vrot.slane %v163_v34, %v4232_v9  ;;  %v178_v54 = vcombine.high %v68_v33, %v5753_v3 }
  0x44   :  { %v2205_v56 = vsel %vm2204_vm6, %v1218_v38, %v2203_v44  ;;  %v737_v57 = vcombine.low %v705_v24, %v720_v49  ;;  %v738_v60 = vcombine.high %v705_v24, %v720_v49  ;;  %v4365_v61 = vrot.slane %v68_v33, %v4232_v9 }
  0x45   :  { %v2207_v62 = vsel %vm2206_vm7, %v1225_v43, %v2205_v56  ;;  %v4369_v63 = vrot.slane %v721_v50, %v4235_v12  ;;  %v4372_v1 = vrot.slane %v722_v52, %v4235_v12  ;;  %v4375_v2 = vrot.slane %v178_v54, %v4232_v9 }
  0x46   :  { %3580 = vadd.xlane.f32.xlu0 %v2207_v62  ;;  %v4378_v5 = vrot.slane %v737_v57, %v4235_v12  ;;  %v4381_v6 = vrot.slane %v738_v60, %v4235_v12  ;;  %v193_v7 = vcombine.low %v4355_v37, %v4365_v61  ;;  %v194_v8 = vcombine.high %v4355_v37, %v4365_v61 }
  0x47   :  { %v4389_v10 = vcombine.high %v4369_v63, %v5753_v3  ;;  %v4393_v11 = vcombine.high %v4372_v1, %v5753_v3  ;;  %v1674_v13 = vsel %vm1169_vm0, %v4369_v63, 0.0  ;;  %v1688_v14 = vsel %vm1169_vm0, %v4372_v1, 0.0 }
  0x48   :  { %v4401_v15 = vcombine.high %v4378_v5, %v5753_v3  ;;  %v4405_v16 = vcombine.high %v4381_v6, %v5753_v3  ;;  %v1675_v17 = vrot.slane %v1674_v13, 4  ;;  %v1689_v18 = vrot.slane %v1688_v14, 4 }
  0x49   :  { %v1681_v19 = vsel %vm1169_vm0, %v4389_v10, 0.0  ;;  %v1695_v20 = vsel %vm1169_vm0, %v4393_v11, 0.0  ;;  %v1702_v21 = vsel %vm1169_vm0, %v4378_v5, 0.0  ;;  %v1716_v22 = vsel %vm1169_vm0, %v4381_v6, 0.0 }
  0x4a   :  { %v1676_v23 = vadd.f32 %v1675_v17, %v1674_v13  ;;  %v1682_v24 = vrot.slane %v1681_v19, 4  ;;  %v1690_v25 = vadd.f32 %v1689_v18, %v1688_v14  ;;  %v1696_v26 = vrot.slane %v1695_v20, 4 }
  0x4b   :  { %v1703_v27 = vrot.slane %v1702_v21, 4  ;;  %v1709_v28 = vsel %vm1169_vm0, %v4401_v15, 0.0  ;;  %v1717_v29 = vrot.slane %v1716_v22, 4  ;;  %v1723_v30 = vsel %vm1169_vm0, %v4405_v16, 0.0 }
  0x4c   :  { %v1677_v33 = vrot.slane %v1676_v23, 2  ;;  %v1683_v34 = vadd.f32 %v1682_v24, %v1681_v19  ;;  %v1691_v37 = vrot.slane %v1690_v25, 2  ;;  %v1697_v38 = vadd.f32 %v1696_v26, %v1695_v20 }
  0x4d   :  { %v1704_v43 = vadd.f32 %v1703_v27, %v1702_v21  ;;  %v1710_v44 = vrot.slane %v1709_v28, 4  ;;  %v1718_v49 = vadd.f32 %v1717_v29, %v1716_v22  ;;  %v1724_v50 = vrot.slane %v1723_v30, 4 }
  0x4e   :  { %v1678_v52 = vadd.f32 %v1677_v33, %v1676_v23  ;;  %v1684_v54 = vrot.slane %v1683_v34, 2  ;;  %v1692_v56 = vadd.f32 %v1691_v37, %v1690_v25  ;;  %v1698_v57 = vrot.slane %v1697_v38, 2 }
  0x4f   :  { %v1705_v60 = vrot.slane %v1704_v43, 2  ;;  %v1711_v61 = vadd.f32 %v1710_v44, %v1709_v28  ;;  %v1719_v62 = vrot.slane %v1718_v49, 2  ;;  %v1725_v13 = vadd.f32 %v1724_v50, %v1723_v30 }
  0x50   :  { %v1679_v14 = vrot.slane %v1678_v52, 1  ;;  %v1685_v17 = vadd.f32 %v1684_v54, %v1683_v34  ;;  %v1693_v18 = vrot.slane %v1692_v56, 1  ;;  %v1699_v0 = vadd.f32 %v1698_v57, %v1697_v38 }
  0x51   :  { %v1706_v3 = vadd.f32 %v1705_v60, %v1704_v43  ;;  %v1712_v19 = vrot.slane %v1711_v61, 2  ;;  %v1720_v24 = vadd.f32 %v1719_v62, %v1718_v49  ;;  %v1726_v20 = vrot.slane %v1725_v13, 2 }
  0x52   :  { %v1680_v21 = vadd.f32 %v1679_v14, %v1678_v52  ;;  %v1686_v26 = vrot.slane %v1685_v17, 1  ;;  %v1694_v22 = vadd.f32 %v1693_v18, %v1692_v56  ;;  %v1700_v27 = vrot.slane %v1699_v0, 1 }
  0x53   :  { %v1707_v23 = vrot.slane %v1706_v3, 1  ;;  %v1713_v29 = vadd.f32 %v1712_v19, %v1711_v61  ;;  %v1721_v25 = vrot.slane %v1720_v24, 1  ;;  %v1727_v33 = vadd.f32 %v1726_v20, %v1725_v13 }
  0x54   :  { %v1687_v37 = vadd.f32 %v1686_v26, %v1685_v17  ;;  %v1701_v28 = vadd.f32 %v1700_v27, %v1699_v0  ;;  %v4420_v30 = vrot.slane %v193_v7, %v4235_v12  ;;  %v4423_v34 = vrot.slane %v194_v8, %v4235_v12 }
  0x55   :  { %v1708_v38 = vadd.f32 %v1707_v23, %v1706_v3  ;;  %v1714_v43 = vrot.slane %v1713_v29, 1  ;;  %v1722_v44 = vadd.f32 %v1721_v25, %v1720_v24  ;;  %v1728_v49 = vrot.slane %v1727_v33, 1 }
  0x56   :  { %v2264_v50 = vsel %vm2194_vm1, %v1687_v37, %v1680_v21  ;;  %v209_v52 = vcombine.low %v4360_v53, %v4375_v2  ;;  %v210_v54 = vcombine.high %v4360_v53, %v4375_v2  ;;  %v5827_v56 = vmov 0.0  }
  0x57   :  { %v4432_v0 = vcombine.high %v4420_v30, %v5827_v56  ;;  %v1715_v7 = vadd.f32 %v1714_v43, %v1713_v29  ;;  %v1729_v57 = vadd.f32 %v1728_v49, %v1727_v33  ;;  %v2265_v8 = vsel %vm2196_vm2, %v1694_v22, %v2264_v50  ;;  %4105 = vmatprep.mubr.msk.f32.mxu0 %vm4193_vm8, %v5827_v56 }
  0x58   :  { %v4437_v3 = vcombine.high %v4423_v34, %v5827_v56  ;;  %v2266_v60 = vsel %vm2198_vm3, %v1701_v28, %v2265_v8  ;;  %v4441_v61 = vrot.slane %v209_v52, %v4235_v12  ;;  %v4444_v62 = vrot.slane %v210_v54, %v4235_v12  ;;  %4110 = vmatprep.mubr.msk.f32.mxu1 %vm4193_vm8, %v5827_v56 }
  0x59   :  { %v1226_v53 = vsel %vm1169_vm0, %v4420_v30, 0.0  ;;  %v2267_v2 = vsel %vm2200_vm4, %v1708_v38, %v2266_v60  ;;  %v1233_v14 = vsel %vm1169_vm0, %v4432_v0, 0.0  ;;  %v1240_v17 = vsel %vm1169_vm0, %v4423_v34, 0.0 }
  0x5a   :  { %v1227_v13 = vrot.slane %v1226_v53, 4  ;;  %v2268_v18 = vsel %vm2202_vm5, %v1715_v7, %v2267_v2  ;;  %v4456_v19 = vcombine.high %v4441_v61, %v5827_v56  ;;  %v4460_v24 = vcombine.high %v4444_v62, %v5827_v56 }
  0x5b   :  { %v1234_v20 = vrot.slane %v1233_v14, 4  ;;  %v2269_v21 = vsel %vm2204_vm6, %v1722_v44, %v2268_v18  ;;  %v1241_v22 = vrot.slane %v1240_v17, 4  ;;  %v1247_v27 = vsel %vm1169_vm0, %v4437_v3, 0.0 }
  0x5c   :  { %v1228_v26 = vadd.f32 %v1227_v13, %v1226_v53  ;;  %v2270_v23 = vsel %vm2206_vm7, %v1729_v57, %v2269_v21  ;;  %v1248_v25 = vrot.slane %v1247_v27, 4  ;;  %v1254_v33 = vsel %vm1169_vm0, %v4441_v61, 0.0 }
  0x5d   :  { %v1235_v29 = vadd.f32 %v1234_v20, %v1233_v14  ;;  %3598 = vadd.xlane.f32.xlu1 %v2270_v23  ;;  %v1242_v28 = vadd.f32 %v1241_v22, %v1240_v17  ;;  %v1255_v38 = vrot.slane %v1254_v33, 4  ;;  %v1261_v43 = vsel %vm1169_vm0, %v4456_v19, 0.0 }
  0x5e   :  { %v1229_v37 = vrot.slane %v1228_v26, 2  ;;  %v1249_v49 = vadd.f32 %v1248_v25, %v1247_v27  ;;  %v1262_v50 = vrot.slane %v1261_v43, 4  ;;  %v1268_v52 = vsel %vm1169_vm0, %v4444_v62, 0.0 }
  0x5f   :  { %v1236_v44 = vrot.slane %v1235_v29, 2  ;;  %v1243_v7 = vrot.slane %v1242_v28, 2  ;;  %v1256_v57 = vadd.f32 %v1255_v38, %v1254_v33  ;;  %v1269_v8 = vrot.slane %v1268_v52, 4 }
  0x60   :  { %v1230_v54 = vadd.f32 %v1229_v37, %v1228_v26  ;;  %v1250_v53 = vrot.slane %v1249_v49, 2  ;;  %v1263_v2 = vadd.f32 %v1262_v50, %v1261_v43  ;;  %v1275_v13 = vsel %vm1169_vm0, %v4460_v24, 0.0  ;;  %v85_v43 = vld [vmem:[#allocation4 + $0xa0] sm:$0xff] }
  0x61   :  { %v1237_v60 = vadd.f32 %v1236_v44, %v1235_v29  ;;  %v1244_v17 = vadd.f32 %v1243_v7, %v1242_v28  ;;  %v1257_v18 = vrot.slane %v1256_v57, 2  ;;  %v1270_v20 = vadd.f32 %v1269_v8, %v1268_v52 }
  0x62   :  { %v1231_v14 = vrot.slane %v1230_v54, 1  ;;  %v1251_v22 = vadd.f32 %v1250_v53, %v1249_v49  ;;  %v1264_v27 = vrot.slane %v1263_v2, 2  ;;  %v1276_v23 = vrot.slane %v1275_v13, 4  ;;  %v86_v53 = vld [vmem:[#allocation4 + $0xa8] sm:$0xff] }
  0x63   :  { %v1238_v21 = vrot.slane %v1237_v60, 1  ;;  %v1245_v4 = vrot.slane %v1244_v17, 1  ;;  %v1258_v26 = vadd.f32 %v1257_v18, %v1256_v57  ;;  %v1271_v37 = vrot.slane %v1270_v20, 2 }
  0x64   :  { %v1232_v25 = vadd.f32 %v1231_v14, %v1230_v54  ;;  %v1252_v38 = vrot.slane %v1251_v22, 1  ;;  %v1265_v29 = vadd.f32 %v1264_v27, %v1263_v2  ;;  %v1277_v44 = vadd.f32 %v1276_v23, %v1275_v13  ;;  %v69_v2 = vld [vmem:[#allocation4 + $0x20] sm:$0xff] }
  0x65   :  { %v1239_v33 = vadd.f32 %v1238_v21, %v1237_v60  ;;  %v1246_v50 = vadd.f32 %v1245_v4, %v1244_v17  ;;  %v1259_v48 = vrot.slane %v1258_v26, 1  ;;  %v1272_v40 = vadd.f32 %v1271_v37, %v1270_v20 }
  0x66   :  { %v757_v28 = vcombine.high %v85_v43, %v5827_v56  ;;  %v1253_v7 = vadd.f32 %v1252_v38, %v1251_v22  ;;  %v1266_v52 = vrot.slane %v1265_v29, 1  ;;  %v1278_v8 = vrot.slane %v1277_v44, 2 }
  0x67   :  { %v2208_v49 = vsel %vm2194_vm1, %v1239_v33, %v1232_v25  ;;  %v1260_v54 = vadd.f32 %v1259_v48, %v1258_v26  ;;  %v1273_v14 = vrot.slane %v1272_v40, 1  ;;  %v764_v60 = vrot.slane %v85_v43, %v4232_v9  ;;  %v70_v48 = vld [vmem:[#allocation4 + $0x28] sm:$0xff] }
  0x68   :  { %v2209_v57 = vsel %vm2196_vm2, %v1246_v50, %v2208_v49  ;;  %v1267_v13 = vadd.f32 %v1266_v52, %v1265_v29  ;;  %v1279_v18 = vadd.f32 %v1278_v8, %v1277_v44  ;;  %v771_v17 = vrot.slane %v757_v28, %v4232_v9 }
  0x69   :  { %v2210_v4 = vsel %vm2198_vm3, %v1253_v7, %v2209_v57  ;;  %v1274_v20 = vadd.f32 %v1273_v14, %v1272_v40  ;;  %v772_v22 = vcombine.high %v86_v53, %v5827_v56  ;;  %v779_v27 = vrot.slane %v86_v53, %v4232_v9 }
  0x6a   :  { %v2211_v21 = vsel %vm2200_vm4, %v1260_v54, %v2210_v4  ;;  %v1280_v23 = vrot.slane %v1279_v18, 1  ;;  %v229_v26 = vcombine.high %v69_v2, %v5827_v56  ;;  %v236_v37 = vrot.slane %v69_v2, %v4232_v9 }
  0x6b   :  { %v2212_v25 = vsel %vm2202_vm5, %v1267_v13, %v2211_v21  ;;  %v786_v38 = vrot.slane %v772_v22, %v4232_v9  ;;  %v787_v29 = vcombine.low %v764_v60, %v779_v27  ;;  %v788_v40 = vcombine.high %v764_v60, %v779_v27 }
  0x6c   :  { %v2213_v33 = vsel %vm2204_vm6, %v1274_v20, %v2212_v25  ;;  %v1281_v44 = vadd.f32 %v1280_v23, %v1279_v18  ;;  %v4489_v43 = vrot.slane %v229_v26, %v4232_v9  ;;  %v244_v50 = vcombine.high %v70_v48, %v5827_v56 }
  0x6d   :  { %v251_v28 = vrot.slane %v70_v48, %v4232_v9  ;;  %v4494_v7 = vrot.slane %v787_v29, %v4235_v12  ;;  %v4497_v52 = vrot.slane %v788_v40, %v4235_v12  ;;  %v803_v8 = vcombine.low %v771_v17, %v786_v38 }
  0x6e   :  { %v804_v49 = vcombine.high %v771_v17, %v786_v38  ;;  %v2214_v53 = vsel %vm2206_vm7, %v1281_v44, %v2213_v33  ;;  %v4501_v54 = vrot.slane %v244_v50, %v4232_v9  ;;  %vm3724_vm12 = vcmask 326912  }
  0x6f   :  { %5828 = vst [vmem:[#allocation20_spill] sm:$0xff] %v4494_v7  ;;  %5829 = vst [vmem:[#allocation21_spill] sm:$0xff] %v4497_v52  ;;  %v259_v14 = vcombine.low %v236_v37, %v251_v28  ;;  %v260_v57 = vcombine.high %v236_v37, %v251_v28  ;;  %3582 = vadd.xlane.f32.xlu0 %v2214_v53  ;;  %v4504_v60 = vrot.slane %v803_v8, %v4235_v12  ;;  %vm3731_vm13 = vcmask 392512  }
  0x70   :  { %v4507_v2 = vrot.slane %v804_v49, %v4235_v12  ;;  %v4511_v13 = vcombine.high %v4494_v7, %v5827_v56  ;;  %v4515_v18 = vcombine.high %v4497_v52, %v5827_v56  ;;  %v1730_v4 = vsel %vm1169_vm0, %v4494_v7, 0.0 }
  0x71   :  { %5830 = vst [vmem:[#allocation22_spill] sm:$0xff] %v4504_v60  ;;  %v1744_v17 = vsel %vm1169_vm0, %v4497_v52, 0.0  ;;  %v4522_v20 = vrot.slane %v259_v14, %v4235_v12  ;;  %v4525_v21 = vrot.slane %v260_v57, %v4235_v12  ;;  %v4529_v22 = vcombine.high %v4504_v60, %v5827_v56 }
  0x72   :  { %5831 = vst [vmem:[#allocation23_spill] sm:$0xff] %v4507_v2  ;;  %5832 = vst [vmem:[#allocation24_spill] sm:$0xff] %v4511_v13  ;;  %v4533_v27 = vcombine.high %v4507_v2, %v5827_v56  ;;  %v1731_v48 = vrot.slane %v1730_v4, 4  ;;  %v1737_v23 = vsel %vm1169_vm0, %v4511_v13, 0.0  ;;  %v1745_v26 = vrot.slane %v1744_v17, 4 }
  0x73   :  { %5833 = vst [vmem:[#allocation25_spill] sm:$0xff] %v4515_v18  ;;  %5834 = vst [vmem:[#allocation26_spill] sm:$0xff] %v4522_v20  ;;  %v1738_v25 = vrot.slane %v1737_v23, 4  ;;  %v1751_v37 = vsel %vm1169_vm0, %v4515_v18, 0.0  ;;  %v1758_v33 = vsel %vm1169_vm0, %v4504_v60, 0.0  ;;  %v1765_v44 = vsel %vm1169_vm0, %v4529_v22, 0.0 }
  0x74   :  { %5835 = vst [vmem:[#allocation27_spill] sm:$0xff] %v4525_v21  ;;  %5836 = vst [vmem:[#allocation28_spill] sm:$0xff] %v4529_v22  ;;  %v1732_v38 = vadd.f32 %v1731_v48, %v1730_v4  ;;  %v1752_v29 = vrot.slane %v1751_v37, 4  ;;  %v1759_v40 = vrot.slane %v1758_v33, 4  ;;  %v1746_v28 = vadd.f32 %v1745_v26, %v1744_v17 }
  0x75   :  { %5837 = vst [vmem:[#allocation29_spill] sm:$0xff] %v4533_v27  ;;  %v1739_v50 = vadd.f32 %v1738_v25, %v1737_v23  ;;  %v1766_v8 = vrot.slane %v1765_v44, 4  ;;  %v1772_v49 = vsel %vm1169_vm0, %v4507_v2, 0.0  ;;  %v1779_v4 = vsel %vm1169_vm0, %v4533_v27, 0.0 }
  0x76   :  { %v1733_v53 = vrot.slane %v1732_v38, 2  ;;  %v1753_v14 = vadd.f32 %v1752_v29, %v1751_v37  ;;  %v1760_v57 = vadd.f32 %v1759_v40, %v1758_v33  ;;  %v1773_v52 = vrot.slane %v1772_v49, 4 }
  0x77   :  { %v1740_v18 = vrot.slane %v1739_v50, 2  ;;  %v1747_v13 = vrot.slane %v1746_v28, 2  ;;  %v1767_v7 = vadd.f32 %v1766_v8, %v1765_v44  ;;  %v1780_v26 = vrot.slane %v1779_v4, 4 }
  0x78   :  { %v1734_v48 = vadd.f32 %v1733_v53, %v1732_v38  ;;  %v1754_v60 = vrot.slane %v1753_v14, 2  ;;  %v1761_v47 = vrot.slane %v1760_v57, 2  ;;  %v1774_v22 = vadd.f32 %v1773_v52, %v1772_v49 }
  0x79   :  { %v1741_v23 = vadd.f32 %v1740_v18, %v1739_v50  ;;  %v1748_v17 = vadd.f32 %v1747_v13, %v1746_v28  ;;  %v1768_v25 = vrot.slane %v1767_v7, 2  ;;  %v1781_v32 = vadd.f32 %v1780_v26, %v1779_v4 }
  0x7a   :  { %v1735_v39 = vrot.slane %v1734_v48, 1  ;;  %v1755_v2 = vadd.f32 %v1754_v60, %v1753_v14  ;;  %v1762_v42 = vadd.f32 %v1761_v47, %v1760_v57  ;;  %v1775_v37 = vrot.slane %v1774_v22, 2 }
  0x7b   :  { %v1742_v33 = vrot.slane %v1741_v23, 1  ;;  %v1749_v29 = vrot.slane %v1748_v17, 1  ;;  %v1769_v40 = vadd.f32 %v1768_v25, %v1767_v7  ;;  %v1782_v52 = vrot.slane %v1781_v32, 2 }
  0x7c   :  { %v1736_v44 = vadd.f32 %v1735_v39, %v1734_v48  ;;  %v1756_v8 = vrot.slane %v1755_v2, 1  ;;  %v1763_v41 = vrot.slane %v1762_v42, 1  ;;  %v1776_v27 = vadd.f32 %v1775_v37, %v1774_v22 }
  0x7d   :  { %v1743_v38 = vadd.f32 %v1742_v33, %v1741_v23  ;;  %v1750_v53 = vadd.f32 %v1749_v29, %v1748_v17  ;;  %v1770_v31 = vrot.slane %v1769_v40, 1  ;;  %v275_v60 = vcombine.low %v4489_v43, %v4501_v54 }
  0x7e   :  { %v1757_v18 = vadd.f32 %v1756_v8, %v1755_v2  ;;  %v1764_v13 = vadd.f32 %v1763_v41, %v1762_v42  ;;  %v1777_v50 = vrot.slane %v1776_v27, 1  ;;  %v1783_v28 = vadd.f32 %v1782_v52, %v1781_v32 }
  0x7f   :  { %v1771_v47 = vadd.f32 %v1770_v31, %v1769_v40  ;;  %v2271_v49 = vsel %vm2194_vm1, %v1743_v38, %v1736_v44  ;;  %v276_v39 = vcombine.high %v4489_v43, %v4501_v54  ;;  %v4554_v14 = vrot.slane %v275_v60, %v4235_v12 }
  0x80   :  { %v1778_v7 = vadd.f32 %v1777_v50, %v1776_v27  ;;  %v2272_v22 = vsel %vm2196_vm2, %v1750_v53, %v2271_v49  ;;  %v4558_v41 = vcombine.high %v4522_v20, %v5827_v56  ;;  %v1784_v42 = vrot.slane %v1783_v28, 1 }
  0x81   :  { %5838 = vst [vmem:[#allocation30_spill] sm:$0xff] %v4554_v14  ;;  %v2273_v2 = vsel %vm2198_vm3, %v1757_v18, %v2272_v22  ;;  %v4562_v31 = vrot.slane %v276_v39, %v4235_v12  ;;  %v4566_v32 = vcombine.high %v4525_v21, %v5827_v56  ;;  %v4571_v54 = vcombine.high %v4554_v14, %v5827_v56 }
  0x82   :  { %5839 = vst [vmem:[#allocation31_spill] sm:$0xff] %v4558_v41  ;;  %v2274_v43 = vsel %vm2200_vm4, %v1764_v13, %v2273_v2  ;;  %v1282_v27 = vsel %vm1169_vm0, %v4522_v20, 0.0  ;;  %v1289_v57 = vsel %vm1169_vm0, %v4558_v41, 0.0  ;;  %v1785_v4 = vadd.f32 %v1784_v42, %v1783_v28 }
  0x83   :  { %5840 = vst [vmem:[#allocation32_spill] sm:$0xff] %v4562_v31  ;;  %5841 = vst [vmem:[#allocation33_spill] sm:$0xff] %v4566_v32  ;;  %v2275_v48 = vsel %vm2202_vm5, %v1771_v47, %v2274_v43  ;;  %v4580_v23 = vcombine.high %v4562_v31, %v5827_v56  ;;  %v1283_v17 = vrot.slane %v1282_v27, 4  ;;  %v1290_v26 = vrot.slane %v1289_v57, 4 }
  0x84   :  { %5842 = vst [vmem:[#allocation34_spill] sm:$0xff] %v4571_v54  ;;  %v2276_v25 = vsel %vm2204_vm6, %v1778_v7, %v2275_v48  ;;  %v1296_v37 = vsel %vm1169_vm0, %v4525_v21, 0.0  ;;  %v1303_v33 = vsel %vm1169_vm0, %v4566_v32, 0.0  ;;  %v1310_v53 = vsel %vm1169_vm0, %v4554_v14, 0.0 }
  0x85   :  { %5843 = vst [vmem:[#allocation35_spill] sm:$0xff] %v4580_v23  ;;  %v2277_v29 = vsel %vm2206_vm7, %v1785_v4, %v2276_v25  ;;  %v1284_v40 = vadd.f32 %v1283_v17, %v1282_v27  ;;  %v1297_v44 = vrot.slane %v1296_v37, 4  ;;  %v1304_v8 = vrot.slane %v1303_v33, 4 }
  0x86   :  { %3600 = vadd.xlane.f32.xlu1 %v2277_v29  ;;  %v1291_v38 = vadd.f32 %v1290_v26, %v1289_v57  ;;  %v1317_v52 = vsel %vm1169_vm0, %v4571_v54, 0.0  ;;  %v1324_v18 = vsel %vm1169_vm0, %v4562_v31, 0.0  ;;  %v1311_v47 = vrot.slane %v1310_v53, 4 }
  0x87   :  { %v1285_v13 = vrot.slane %v1284_v40, 2  ;;  %v1298_v50 = vadd.f32 %v1297_v44, %v1296_v37  ;;  %v1305_v60 = vadd.f32 %v1304_v8, %v1303_v33  ;;  %v1318_v49 = vrot.slane %v1317_v52, 4 }
  0x88   :  { %v1292_v28 = vrot.slane %v1291_v38, 2  ;;  %v1325_v39 = vrot.slane %v1324_v18, 4  ;;  %v1331_v7 = vsel %vm1169_vm0, %v4580_v23, 0.0  ;;  %v1312_v43 = vadd.f32 %v1311_v47, %v1310_v53 }
  0x89   :  { %v1286_v22 = vadd.f32 %v1285_v13, %v1284_v40  ;;  %v1299_v42 = vrot.slane %v1298_v50, 2  ;;  %v1306_v2 = vrot.slane %v1305_v60, 2  ;;  %v1319_v57 = vadd.f32 %v1318_v49, %v1317_v52 }
  0x8a   :  { %v1293_v27 = vadd.f32 %v1292_v28, %v1291_v38  ;;  %v1326_v4 = vadd.f32 %v1325_v39, %v1324_v18  ;;  %v1332_v48 = vrot.slane %v1331_v7, 4  ;;  %v1313_v37 = vrot.slane %v1312_v43, 2  ;;  %v87_v38 = vld [vmem:[#allocation4 + $0xb0] sm:$0xff] }
  0x8b   :  { %v1287_v17 = vrot.slane %v1286_v22, 1  ;;  %v1300_v25 = vadd.f32 %v1299_v42, %v1298_v50  ;;  %v1307_v26 = vadd.f32 %v1306_v2, %v1305_v60  ;;  %v1320_v29 = vrot.slane %v1319_v57, 2 }
  0x8c   :  { %v1294_v33 = vrot.slane %v1293_v27, 1  ;;  %v1327_v44 = vrot.slane %v1326_v4, 2  ;;  %v1333_v8 = vadd.f32 %v1332_v48, %v1331_v7  ;;  %v1314_v23 = vadd.f32 %v1313_v37, %v1312_v43  ;;  %v88_v7 = vld [vmem:[#allocation4 + $0xb8] sm:$0xff] }
  0x8d   :  { %v1288_v31 = vadd.f32 %v1287_v17, %v1286_v22  ;;  %v1301_v54 = vrot.slane %v1300_v25, 1  ;;  %v1308_v14 = vrot.slane %v1307_v26, 1  ;;  %v1321_v13 = vadd.f32 %v1320_v29, %v1319_v57 }
  0x8e   :  { %v1295_v40 = vadd.f32 %v1294_v33, %v1293_v27  ;;  %v1328_v32 = vadd.f32 %v1327_v44, %v1326_v4  ;;  %v1334_v53 = vrot.slane %v1333_v8, 2  ;;  %v1315_v47 = vrot.slane %v1314_v23, 1  ;;  %v71_v27 = vld [vmem:[#allocation4 + $0x30] sm:$0xff] }
  0x8f   :  { %v1302_v52 = vadd.f32 %v1301_v54, %v1300_v25  ;;  %v1309_v18 = vadd.f32 %v1308_v14, %v1307_v26  ;;  %v823_v50 = vcombine.high %v87_v38, %v5827_v56  ;;  %v1322_v60 = vrot.slane %v1321_v13, 1  ;;  %v72_v25 = vld [vmem:[#allocation4 + $0x38] sm:$0xff] }
  0x90   :  { %v1329_v28 = vrot.slane %v1328_v32, 1  ;;  %v1335_v49 = vadd.f32 %v1334_v53, %v1333_v8  ;;  %v2215_v39 = vsel %vm2194_vm1, %v1295_v40, %v1288_v31  ;;  %v1316_v22 = vadd.f32 %v1315_v47, %v1314_v23 }
  0x91   :  { %v2216_v42 = vsel %vm2196_vm2, %v1302_v52, %v2215_v39  ;;  %v830_v2 = vrot.slane %v87_v38, %v4232_v9  ;;  %v837_v43 = vrot.slane %v823_v50, %v4232_v9  ;;  %v1323_v57 = vadd.f32 %v1322_v60, %v1321_v13 }
  0x92   :  { %v1330_v54 = vadd.f32 %v1329_v28, %v1328_v32  ;;  %v1336_v14 = vrot.slane %v1335_v49, 1  ;;  %v2217_v4 = vsel %vm2198_vm3, %v1309_v18, %v2216_v42  ;;  %v838_v17 = vcombine.high %v88_v7, %v5827_v56 }
  0x93   :  { %v2218_v48 = vsel %vm2200_vm4, %v1316_v22, %v2217_v4  ;;  %v845_v31 = vrot.slane %v88_v7, %v4232_v9  ;;  %v295_v23 = vcombine.high %v71_v27, %v5827_v56  ;;  %v302_v33 = vrot.slane %v71_v27, %v4232_v9 }
  0x94   :  { %v1337_v26 = vadd.f32 %v1336_v14, %v1335_v49  ;;  %v2219_v37 = vsel %vm2202_vm5, %v1323_v57, %v2218_v48  ;;  %v310_v29 = vcombine.high %v72_v25, %v5827_v56  ;;  %v852_v44 = vrot.slane %v838_v17, %v4232_v9 }
  0x95   :  { %v2220_v32 = vsel %vm2204_vm6, %v1330_v54, %v2219_v37  ;;  %v853_v8 = vcombine.low %v830_v2, %v845_v31  ;;  %v854_v40 = vcombine.high %v830_v2, %v845_v31  ;;  %v4613_v53 = vrot.slane %v295_v23, %v4232_v9 }
  0x96   :  { %v2221_v13 = vsel %vm2206_vm7, %v1337_v26, %v2220_v32  ;;  %v317_v38 = vrot.slane %v72_v25, %v4232_v9  ;;  %v4617_v52 = vrot.slane %v310_v29, %v4232_v9  ;;  %v869_v50 = vcombine.low %v837_v43, %v852_v44 }
  0x97   :  { %3584 = vadd.xlane.f32.xlu0 %v2221_v13  ;;  %v4620_v18 = vrot.slane %v853_v8, %v4235_v12  ;;  %v4623_v47 = vrot.slane %v854_v40, %v4235_v12  ;;  %v870_v60 = vcombine.high %v837_v43, %v852_v44  ;;  %vm3738_vm14 = vcmask 458112  }
  0x98   :  { %v325_v28 = vcombine.low %v302_v33, %v317_v38  ;;  %v326_v49 = vcombine.high %v302_v33, %v317_v38  ;;  %v341_v39 = vcombine.low %v4613_v53, %v4617_v52  ;;  %v4630_v22 = vrot.slane %v869_v50, %v4235_v12 }
  0x99   :  { %5844 = vst [vmem:[#allocation36_spill] sm:$0xff] %v4620_v18  ;;  %5845 = vst [vmem:[#allocation37_spill] sm:$0xff] %v4623_v47  ;;  %v4633_v42 = vrot.slane %v870_v60, %v4235_v12  ;;  %v4637_v2 = vcombine.high %v4620_v18, %v5827_v56  ;;  %v4641_v43 = vcombine.high %v4623_v47, %v5827_v56  ;;  %v1786_v27 = vsel %vm1169_vm0, %v4620_v18, 0.0 }
  0x9a   :  { %5846 = vst [vmem:[#allocation38_spill] sm:$0xff] %v4630_v22  ;;  %v1800_v57 = vsel %vm1169_vm0, %v4623_v47, 0.0  ;;  %v4648_v54 = vrot.slane %v325_v28, %v4235_v12  ;;  %v4651_v14 = vrot.slane %v326_v49, %v4235_v12  ;;  %v4655_v4 = vcombine.high %v4630_v22, %v5827_v56 }
  0x9b   :  { %5847 = vst [vmem:[#allocation39_spill] sm:$0xff] %v4633_v42  ;;  %5848 = vst [vmem:[#allocation40_spill] sm:$0xff] %v4637_v2  ;;  %v4659_v48 = vcombine.high %v4633_v42, %v5827_v56  ;;  %v1787_v17 = vrot.slane %v1786_v27, 4  ;;  %v1793_v31 = vsel %vm1169_vm0, %v4637_v2, 0.0  ;;  %v1801_v23 = vrot.slane %v1800_v57, 4 }
  0x9c   :  { %5849 = vst [vmem:[#allocation41_spill] sm:$0xff] %v4641_v43  ;;  %5850 = vst [vmem:[#allocation42_spill] sm:$0xff] %v4655_v4  ;;  %v1794_v25 = vrot.slane %v1793_v31, 4  ;;  %v1807_v26 = vsel %vm1169_vm0, %v4641_v43, 0.0  ;;  %v1814_v37 = vsel %vm1169_vm0, %v4630_v22, 0.0  ;;  %v1821_v44 = vsel %vm1169_vm0, %v4655_v4, 0.0 }
  0x9d   :  { %5851 = vst [vmem:[#allocation43_spill] sm:$0xff] %v4659_v48  ;;  %v1788_v33 = vadd.f32 %v1787_v17, %v1786_v27  ;;  %v1808_v29 = vrot.slane %v1807_v26, 4  ;;  %v1815_v32 = vrot.slane %v1814_v37, 4  ;;  %v1802_v40 = vadd.f32 %v1801_v23, %v1800_v57 }
  0x9e   :  { %v1795_v8 = vadd.f32 %v1794_v25, %v1793_v31  ;;  %v1822_v13 = vrot.slane %v1821_v44, 4  ;;  %v1828_v38 = vsel %vm1169_vm0, %v4633_v42, 0.0  ;;  %v1835_v27 = vsel %vm1169_vm0, %v4659_v48, 0.0 }
  0x9f   :  { %v1789_v50 = vrot.slane %v1788_v33, 2  ;;  %v1809_v60 = vadd.f32 %v1808_v29, %v1807_v26  ;;  %v1816_v28 = vadd.f32 %v1815_v32, %v1814_v37  ;;  %v1829_v49 = vrot.slane %v1828_v38, 4 }
  0xa0   :  { %v1796_v7 = vrot.slane %v1795_v8, 2  ;;  %v1803_v43 = vrot.slane %v1802_v40, 2  ;;  %v1823_v47 = vadd.f32 %v1822_v13, %v1821_v44  ;;  %v1836_v23 = vrot.slane %v1835_v27, 4 }
  0xa1   :  { %v1790_v17 = vadd.f32 %v1789_v50, %v1788_v33  ;;  %v1810_v22 = vrot.slane %v1809_v60, 2  ;;  %v1817_v2 = vrot.slane %v1816_v28, 2  ;;  %v1830_v4 = vadd.f32 %v1829_v49, %v1828_v38 }
  0xa2   :  { %v1797_v31 = vadd.f32 %v1796_v7, %v1795_v8  ;;  %v1804_v57 = vadd.f32 %v1803_v43, %v1802_v40  ;;  %v1824_v25 = vrot.slane %v1823_v47, 2  ;;  %v1837_v41 = vadd.f32 %v1836_v23, %v1835_v27 }
  0xa3   :  { %v1791_v18 = vrot.slane %v1790_v17, 1  ;;  %v1811_v42 = vadd.f32 %v1810_v22, %v1809_v60  ;;  %v1818_v21 = vadd.f32 %v1817_v2, %v1816_v28  ;;  %v1831_v26 = vrot.slane %v1830_v4, 2 }
  0xa4   :  { %v1798_v37 = vrot.slane %v1797_v31, 1  ;;  %v1805_v29 = vrot.slane %v1804_v57, 1  ;;  %v1825_v32 = vadd.f32 %v1824_v25, %v1823_v47  ;;  %v1838_v38 = vrot.slane %v1837_v41, 2 }
  0xa5   :  { %v1792_v44 = vadd.f32 %v1791_v18, %v1790_v17  ;;  %v1812_v13 = vrot.slane %v1811_v42, 1  ;;  %v1819_v20 = vrot.slane %v1818_v21, 1  ;;  %v1832_v48 = vadd.f32 %v1831_v26, %v1830_v4 }
  0xa6   :  { %v1799_v33 = vadd.f32 %v1798_v37, %v1797_v31  ;;  %v1806_v50 = vadd.f32 %v1805_v29, %v1804_v57  ;;  %v1826_v9 = vrot.slane %v1825_v32, 1  ;;  %v4674_v40 = vrot.slane %v341_v39, %v4235_v12 }
  0xa7   :  { %v1813_v7 = vadd.f32 %v1812_v13, %v1811_v42  ;;  %v1820_v43 = vadd.f32 %v1819_v20, %v1818_v21  ;;  %v1833_v8 = vrot.slane %v1832_v48, 1  ;;  %v1839_v2 = vadd.f32 %v1838_v38, %v1837_v41 }
  0xa8   :  { %v1827_v22 = vadd.f32 %v1826_v9, %v1825_v32  ;;  %v2278_v60 = vsel %vm2194_vm1, %v1799_v33, %v1792_v44  ;;  %v5852_v18 = vcombine.high %v4613_v53, %v4617_v52  ;;  %v4686_v20 = vcombine.high %v4648_v54, %v5827_v56 }
  0xa9   :  { %v1834_v4 = vadd.f32 %v1833_v8, %v1832_v48  ;;  %v2279_v28 = vsel %vm2196_vm2, %v1806_v50, %v2278_v60  ;;  %v4690_v21 = vcombine.high %v4651_v14, %v5827_v56  ;;  %v1840_v9 = vrot.slane %v1839_v2, 1 }
  0xaa   :  { %v4681_v47 = vrot.slane %v5852_v18, %v4235_v12  ;;  %v2280_v41 = vsel %vm2198_vm3, %v1813_v7, %v2279_v28  ;;  %v4695_v39 = vcombine.high %v4674_v40, %v5827_v56  ;;  %v1338_v42 = vsel %vm1169_vm0, %v4648_v54, 0.0 }
  0xab   :  { %v2281_v52 = vsel %vm2200_vm4, %v1820_v43, %v2280_v41  ;;  %v1345_v48 = vsel %vm1169_vm0, %v4686_v20, 0.0  ;;  %v1352_v49 = vsel %vm1169_vm0, %v4651_v14, 0.0  ;;  %v1841_v27 = vadd.f32 %v1840_v9, %v1839_v2 }
  0xac   :  { %5853 = vst [vmem:[#allocation44_spill] sm:$0xff] %v4681_v47  ;;  %5854 = vst [vmem:[#allocation45_spill] sm:$0xff] %v4695_v39  ;;  %v4699_v53 = vcombine.high %v4681_v47, %v5827_v56  ;;  %v2282_v17 = vsel %vm2202_vm5, %v1827_v22, %v2281_v52  ;;  %v1339_v31 = vrot.slane %v1338_v42, 4  ;;  %v1346_v57 = vrot.slane %v1345_v48, 4 }
  0xad   :  { %v2283_v25 = vsel %vm2204_vm6, %v1834_v4, %v2282_v17  ;;  %v1353_v23 = vrot.slane %v1352_v49, 4  ;;  %v1359_v26 = vsel %vm1169_vm0, %v4690_v21, 0.0  ;;  %v1366_v37 = vsel %vm1169_vm0, %v4674_v40, 0.0 }
  0xae   :  { %5855 = vst [vmem:[#allocation46_spill] sm:$0xff] %v4699_v53  ;;  %v2284_v29 = vsel %vm2206_vm7, %v1841_v27, %v2283_v25  ;;  %v1340_v32 = vadd.f32 %v1339_v31, %v1338_v42  ;;  %v1347_v44 = vadd.f32 %v1346_v57, %v1345_v48  ;;  %v1360_v13 = vrot.slane %v1359_v26, 4 }
  0xaf   :  { %3602 = vadd.xlane.f32.xlu1 %v2284_v29  ;;  %v1354_v33 = vadd.f32 %v1353_v23, %v1352_v49  ;;  %v1367_v50 = vrot.slane %v1366_v37, 4  ;;  %v1373_v38 = vsel %vm1169_vm0, %v4695_v39, 0.0  ;;  %v1380_v7 = vsel %vm1169_vm0, %v4681_v47, 0.0 }
  0xb0   :  { %v1341_v43 = vrot.slane %v1340_v32, 2  ;;  %v1348_v8 = vrot.slane %v1347_v44, 2  ;;  %v1361_v22 = vadd.f32 %v1360_v13, %v1359_v26  ;;  %v1374_v2 = vrot.slane %v1373_v38, 4 }
  0xb1   :  { %v1355_v60 = vrot.slane %v1354_v33, 2  ;;  %v1368_v18 = vadd.f32 %v1367_v50, %v1366_v37  ;;  %v1381_v4 = vrot.slane %v1380_v7, 4  ;;  %v1387_v28 = vsel %vm1169_vm0, %v4699_v53, 0.0 }
  0xb2   :  { %v1342_v9 = vadd.f32 %v1341_v43, %v1340_v32  ;;  %v1349_v41 = vadd.f32 %v1348_v8, %v1347_v44  ;;  %v1362_v52 = vrot.slane %v1361_v22, 2  ;;  %v1375_v42 = vadd.f32 %v1374_v2, %v1373_v38 }
  0xb3   :  { %v1356_v48 = vadd.f32 %v1355_v60, %v1354_v33  ;;  %v1369_v49 = vrot.slane %v1368_v18, 2  ;;  %v1382_v27 = vadd.f32 %v1381_v4, %v1380_v7  ;;  %v1388_v17 = vrot.slane %v1387_v28, 4 }
  0xb4   :  { %v1343_v31 = vrot.slane %v1342_v9, 1  ;;  %v1350_v57 = vrot.slane %v1349_v41, 1  ;;  %v1363_v25 = vadd.f32 %v1362_v52, %v1361_v22  ;;  %v1376_v23 = vrot.slane %v1375_v42, 2 }
  0xb5   :  { %v1357_v26 = vrot.slane %v1356_v48, 1  ;;  %v1370_v29 = vadd.f32 %v1369_v49, %v1368_v18  ;;  %v1383_v13 = vrot.slane %v1382_v27, 2  ;;  %v1389_v37 = vadd.f32 %v1388_v17, %v1387_v28 }
  0xb6   :  { %v1344_v50 = vadd.f32 %v1343_v31, %v1342_v9  ;;  %v1351_v47 = vadd.f32 %v1350_v57, %v1349_v41  ;;  %v1364_v39 = vrot.slane %v1363_v25, 1  ;;  %v1377_v53 = vadd.f32 %v1376_v23, %v1375_v42 }
  0xb7   :  { %v1358_v32 = vadd.f32 %v1357_v26, %v1356_v48  ;;  %v1371_v44 = vrot.slane %v1370_v29, 1  ;;  %v1384_v43 = vadd.f32 %v1383_v13, %v1382_v27  ;;  %v1390_v38 = vrot.slane %v1389_v37, 2 }
  0xb8   :  { %v1365_v33 = vadd.f32 %v1364_v39, %v1363_v25  ;;  %v1378_v8 = vrot.slane %v1377_v53, 1  ;;  %v2222_v7 = vsel %vm2194_vm1, %v1351_v47, %v1344_v50  ;;  %v2433_v22 = vsel %vm1169_vm0, %v4420_v30, -inf }
  0xb9   :  { %v1372_v2 = vadd.f32 %v1371_v44, %v1370_v29  ;;  %v1385_v60 = vrot.slane %v1384_v43, 1  ;;  %v1391_v18 = vadd.f32 %v1390_v38, %v1389_v37  ;;  %v2223_v4 = vsel %vm2196_vm2, %v1358_v32, %v2222_v7 }
  0xba   :  { %v1379_v28 = vadd.f32 %v1378_v8, %v1377_v53  ;;  %v2224_v9 = vsel %vm2198_vm3, %v1365_v33, %v2223_v4  ;;  %v2434_v41 = vrot.slane %v2433_v22, 4  ;;  %v2440_v52 = vsel %vm1169_vm0, %v4432_v0, -inf }
  0xbb   :  { %v1386_v42 = vadd.f32 %v1385_v60, %v1384_v43  ;;  %v1392_v39 = vrot.slane %v1391_v18, 1  ;;  %v2225_v48 = vsel %vm2200_vm4, %v1372_v2, %v2224_v9  ;;  %v2441_v47 = vrot.slane %v2440_v52, 4 }
  0xbc   :  { %v2226_v49 = vsel %vm2202_vm5, %v1379_v28, %v2225_v48  ;;  %v2435_v30 = vmax.f32 %v2433_v22, %v2434_v41  ;;  %v2447_v27 = vsel %vm1169_vm0, %v4423_v34, -inf  ;;  %v2454_v53 = vsel %vm1169_vm0, %v4437_v3, -inf }
  0xbd   :  { %v1393_v17 = vadd.f32 %v1392_v39, %v1391_v18  ;;  %v2227_v31 = vsel %vm2204_vm6, %v1386_v42, %v2226_v49  ;;  %v2442_v57 = vmax.f32 %v2440_v52, %v2441_v47  ;;  %v2448_v25 = vrot.slane %v2447_v27, 4 }
  0xbe   :  { %v2436_v0 = vrot.slane %v2435_v30, 2  ;;  %v2455_v23 = vrot.slane %v2454_v53, 4  ;;  %v2461_v26 = vsel %vm1169_vm0, %v4441_v61, -inf  ;;  %v2468_v29 = vsel %vm1169_vm0, %v4456_v19, -inf }
  0xbf   :  { %v2228_v13 = vsel %vm2206_vm7, %v1393_v17, %v2227_v31  ;;  %v2443_v37 = vrot.slane %v2442_v57, 2  ;;  %v2449_v34 = vmax.f32 %v2447_v27, %v2448_v25  ;;  %v2462_v50 = vrot.slane %v2461_v26, 4 }
  0xc0   :  { %3586 = vadd.xlane.f32.xlu0 %v2228_v13  ;;  %v2437_v3 = vmax.f32 %v2435_v30, %v2436_v0  ;;  %v2456_v32 = vmax.f32 %v2454_v53, %v2455_v23  ;;  %v2469_v44 = vrot.slane %v2468_v29, 4  ;;  %v2475_v43 = vsel %vm1169_vm0, %v4444_v62, -inf }
  0xc1   :  { %v2444_v38 = vmax.f32 %v2442_v57, %v2443_v37  ;;  %v2450_v33 = vrot.slane %v2449_v34, 2  ;;  %v2463_v8 = vmax.f32 %v2461_v26, %v2462_v50  ;;  %v2476_v7 = vrot.slane %v2475_v43, 4 }
  0xc2   :  { %v2438_v61 = vrot.slane %v2437_v3, 1  ;;  %v2457_v22 = vrot.slane %v2456_v32, 2  ;;  %v2470_v2 = vmax.f32 %v2468_v29, %v2469_v44  ;;  %v2482_v19 = vsel %vm1169_vm0, %v4460_v24, -inf }
  0xc3   :  { %v2445_v60 = vrot.slane %v2444_v38, 1  ;;  %v2451_v18 = vmax.f32 %v2449_v34, %v2450_v33  ;;  %v2464_v4 = vrot.slane %v2463_v8, 2  ;;  %v2477_v28 = vmax.f32 %v2475_v43, %v2476_v7 }
  0xc4   :  { %v2439_v9 = vmax.f32 %v2437_v3, %v2438_v61  ;;  %v2458_v41 = vmax.f32 %v2456_v32, %v2457_v22  ;;  %v2471_v52 = vrot.slane %v2470_v2, 2  ;;  %v2483_v42 = vrot.slane %v2482_v19, 4 }
  0xc5   :  { %v2446_v39 = vmax.f32 %v2444_v38, %v2445_v60  ;;  %v2452_v62 = vrot.slane %v2451_v18, 1  ;;  %v2465_v48 = vmax.f32 %v2463_v8, %v2464_v4  ;;  %v2478_v47 = vrot.slane %v2477_v28, 2 }
  0xc6   :  { %v2459_v49 = vrot.slane %v2458_v41, 1  ;;  %v2472_v30 = vmax.f32 %v2470_v2, %v2471_v52  ;;  %v2484_v27 = vmax.f32 %v2482_v19, %v2483_v42  ;;  %v2377_v53 = vsel %vm1169_vm0, %v4256_v35, -inf }
  0xc7   :  { %v2453_v17 = vmax.f32 %v2451_v18, %v2452_v62  ;;  %v2466_v24 = vrot.slane %v2465_v48, 1  ;;  %v2479_v31 = vmax.f32 %v2477_v28, %v2478_v47  ;;  %v3408_v57 = vsel %vm2194_vm1, %v2446_v39, %v2439_v9 }
  0xc8   :  { %v2460_v25 = vmax.f32 %v2458_v41, %v2459_v49  ;;  %v2473_v0 = vrot.slane %v2472_v30, 1  ;;  %v2485_v23 = vrot.slane %v2484_v27, 2  ;;  %v2378_v26 = vrot.slane %v2377_v53, 4 }
  0xc9   :  { %v2467_v29 = vmax.f32 %v2465_v48, %v2466_v24  ;;  %v2480_v13 = vrot.slane %v2479_v31, 1  ;;  %v3409_v37 = vsel %vm2196_vm2, %v2453_v17, %v3408_v57  ;;  %v2384_v34 = vsel %vm1169_vm0, %v4307_v51, -inf }
  0xca   :  { %v2474_v50 = vmax.f32 %v2472_v30, %v2473_v0  ;;  %v2486_v3 = vmax.f32 %v2484_v27, %v2485_v23  ;;  %v3410_v35 = vsel %vm2198_vm3, %v2460_v25, %v3409_v37  ;;  %v2379_v32 = vmax.f32 %v2377_v53, %v2378_v26 }
  0xcb   :  { %v2481_v44 = vmax.f32 %v2479_v31, %v2480_v13  ;;  %v3411_v43 = vsel %vm2200_vm4, %v2467_v29, %v3410_v35  ;;  %v2385_v38 = vrot.slane %v2384_v34, 4  ;;  %v2391_v33 = vsel %vm1169_vm0, %v4259_v36, -inf }
  0xcc   :  { %v2487_v8 = vrot.slane %v2486_v3, 1  ;;  %v3412_v7 = vsel %vm2202_vm5, %v2474_v50, %v3411_v43  ;;  %v2380_v61 = vrot.slane %v2379_v32, 2  ;;  %v2392_v22 = vrot.slane %v2391_v33, 4 }
  0xcd   :  { %v3413_v2 = vsel %vm2204_vm6, %v2481_v44, %v3412_v7  ;;  %v2386_v51 = vmax.f32 %v2384_v34, %v2385_v38  ;;  %v2398_v19 = vsel %vm1169_vm0, %v4312_v55, -inf  ;;  %v2405_v60 = vsel %vm1169_vm0, %v4280_v45, -inf }
  0xce   :  { %v2488_v18 = vmax.f32 %v2486_v3, %v2487_v8  ;;  %v2381_v4 = vmax.f32 %v2379_v32, %v2380_v61  ;;  %v2393_v28 = vmax.f32 %v2391_v33, %v2392_v22  ;;  %v2399_v9 = vrot.slane %v2398_v19, 4 }
  0xcf   :  { %v2387_v41 = vrot.slane %v2386_v51, 2  ;;  %v2406_v36 = vrot.slane %v2405_v60, 4  ;;  %v2412_v52 = vsel %vm1169_vm0, %v4317_v58, -inf  ;;  %v2419_v42 = vsel %vm1169_vm0, %v4283_v46, -inf }
  0xd0   :  { %v3414_v39 = vsel %vm2206_vm7, %v2488_v18, %v3413_v2  ;;  %v2382_v62 = vrot.slane %v2381_v4, 1  ;;  %v2394_v48 = vrot.slane %v2393_v28, 2  ;;  %v2400_v55 = vmax.f32 %v2398_v19, %v2399_v9 }
  0xd1   :  { %3630 = vmax.xlane.f32.xlu1 %v3414_v39  ;;  %v2388_v47 = vmax.f32 %v2386_v51, %v2387_v41  ;;  %v2407_v45 = vmax.f32 %v2405_v60, %v2406_v36  ;;  %v2413_v49 = vrot.slane %v2412_v52, 4  ;;  %v2420_v30 = vrot.slane %v2419_v42, 4 }
  0xd2   :  { %v2383_v27 = vmax.f32 %v2381_v4, %v2382_v62  ;;  %v2395_v53 = vmax.f32 %v2393_v28, %v2394_v48  ;;  %v2401_v17 = vrot.slane %v2400_v55, 2  ;;  %v2426_v24 = vsel %vm1169_vm0, %v4321_v59, -inf }
  0xd3   :  { %v2389_v58 = vrot.slane %v2388_v47, 1  ;;  %v2408_v31 = vrot.slane %v2407_v45, 2  ;;  %v2414_v57 = vmax.f32 %v2412_v52, %v2413_v49  ;;  %v2421_v46 = vmax.f32 %v2419_v42, %v2420_v30 }
  0xd4   :  { %v2396_v25 = vrot.slane %v2395_v53, 1  ;;  %v2402_v0 = vmax.f32 %v2400_v55, %v2401_v17  ;;  %v2427_v23 = vrot.slane %v2426_v24, 4  ;;  %v2881_v26 = vsel %vm1169_vm0, %v4369_v63, -inf }
  0xd5   :  { %v2390_v29 = vmax.f32 %v2388_v47, %v2389_v58  ;;  %v2409_v13 = vmax.f32 %v2407_v45, %v2408_v31  ;;  %v2415_v37 = vrot.slane %v2414_v57, 2  ;;  %v2422_v34 = vrot.slane %v2421_v46, 2 }
  0xd6   :  { %v2397_v50 = vmax.f32 %v2395_v53, %v2396_v25  ;;  %v2403_v3 = vrot.slane %v2402_v0, 1  ;;  %v2428_v35 = vmax.f32 %v2426_v24, %v2427_v23  ;;  %v2882_v32 = vrot.slane %v2881_v26, 4 }
  0xd7   :  { %v2410_v44 = vrot.slane %v2409_v13, 1  ;;  %v2416_v59 = vmax.f32 %v2414_v57, %v2415_v37  ;;  %v2423_v43 = vmax.f32 %v2421_v46, %v2422_v34  ;;  %v3401_v38 = vsel %vm2194_vm1, %v2390_v29, %v2383_v27  ;;  %v5856_v29 = vld [vmem:[#allocation12_spill] sm:$0xff] }
  0xd8   :  { %v2404_v33 = vmax.f32 %v2402_v0, %v2403_v3  ;;  %v2429_v8 = vrot.slane %v2428_v35, 2  ;;  %v3402_v7 = vsel %vm2196_vm2, %v2397_v50, %v3401_v38  ;;  %v2883_v61 = vmax.f32 %v2881_v26, %v2882_v32 }
  0xd9   :  { %v2411_v22 = vmax.f32 %v2409_v13, %v2410_v44  ;;  %v2417_v63 = vrot.slane %v2416_v59, 1  ;;  %v2424_v2 = vrot.slane %v2423_v43, 1  ;;  %v2888_v51 = vsel %vm1169_vm0, %v4389_v10, -inf }
  0xda   :  { %v2430_v19 = vmax.f32 %v2428_v35, %v2429_v8  ;;  %v3403_v60 = vsel %vm2198_vm3, %v2404_v33, %v3402_v7  ;;  %v2884_v18 = vrot.slane %v2883_v61, 2  ;;  %v2889_v4 = vrot.slane %v2888_v51, 4 }
  0xdb   :  { %v2418_v28 = vmax.f32 %v2416_v59, %v2417_v63  ;;  %v2425_v9 = vmax.f32 %v2423_v43, %v2424_v2  ;;  %v3404_v41 = vsel %vm2200_vm4, %v2411_v22, %v3403_v60  ;;  %v2895_v36 = vsel %vm1169_vm0, %v4372_v1, -inf }
  0xdc   :  { %v2431_v52 = vrot.slane %v2430_v19, 1  ;;  %v2885_v42 = vmax.f32 %v2883_v61, %v2884_v18  ;;  %v2890_v39 = vmax.f32 %v2888_v51, %v2889_v4  ;;  %v2896_v62 = vrot.slane %v2895_v36, 4  ;;  %v5857_v4 = vld [vmem:[#allocation16_spill] sm:$0xff] }
  0xdd   :  { %v3405_v48 = vsel %vm2202_vm5, %v2418_v28, %v3404_v41  ;;  %v2902_v10 = vsel %vm1169_vm0, %v4393_v11, -inf  ;;  %v2909_v55 = vsel %vm1169_vm0, %v4378_v5, -inf  ;;  %v2916_v47 = vsel %vm1169_vm0, %v4401_v15, -inf }
  0xde   :  { %v2432_v45 = vmax.f32 %v2430_v19, %v2431_v52  ;;  %v3406_v49 = vsel %vm2204_vm6, %v2425_v9, %v3405_v48  ;;  %v2886_v30 = vrot.slane %v2885_v42, 1  ;;  %v2891_v1 = vrot.slane %v2890_v39, 2 }
  0xdf   :  { %v2897_v27 = vmax.f32 %v2895_v36, %v2896_v62  ;;  %v2903_v53 = vrot.slane %v2902_v10, 4  ;;  %v2910_v17 = vrot.slane %v2909_v55, 4  ;;  %v2917_v24 = vrot.slane %v2916_v47, 4 }
  0xe0   :  { %v3407_v58 = vsel %vm2206_vm7, %v2432_v45, %v3406_v49  ;;  %v2887_v31 = vmax.f32 %v2885_v42, %v2886_v30  ;;  %v2892_v57 = vmax.f32 %v2890_v39, %v2891_v1  ;;  %v2923_v11 = vsel %vm1169_vm0, %v4381_v6, -inf  ;;  %v5859_v45 = vld [vmem:[#allocation17_spill] sm:$0xff]  ;;  %v5860_v30 = vld [vmem:[#allocation14_spill] sm:$0xff] }
  0xe1   :  { %3628 = vmax.xlane.f32.xlu0 %v3407_v58  ;;  %v2898_v5 = vrot.slane %v2897_v27, 2  ;;  %v2904_v46 = vmax.f32 %v2902_v10, %v2903_v53  ;;  %v2911_v15 = vmax.f32 %v2909_v55, %v2910_v17  ;;  %v2918_v25 = vmax.f32 %v2916_v47, %v2917_v24  ;;  %v5858_v55 = vld [vmem:[#allocation13_spill] sm:$0xff] }
  0xe2   :  { %v2893_v0 = vrot.slane %v2892_v57, 1  ;;  %v2924_v23 = vrot.slane %v2923_v11, 4  ;;  %v2930_v26 = vsel %vm1169_vm0, %v4405_v16, -inf  ;;  %v2825_v13 = vsel %vm1169_vm0, %v5856_v29, -inf  ;;  %v5861_v29 = vld [vmem:[#allocation18_spill] sm:$0xff] }
  0xe3   :  { %v2899_v37 = vmax.f32 %v2897_v27, %v2898_v5  ;;  %v2905_v34 = vrot.slane %v2904_v46, 2  ;;  %v2912_v50 = vrot.slane %v2911_v15, 2  ;;  %v2919_v3 = vrot.slane %v2918_v25, 2 }
  0xe4   :  { %v2894_v35 = vmax.f32 %v2892_v57, %v2893_v0  ;;  %v2925_v32 = vmax.f32 %v2923_v11, %v2924_v23  ;;  %v2931_v6 = vrot.slane %v2930_v26, 4  ;;  %v2826_v44 = vrot.slane %v2825_v13, 4 }
  0xe5   :  { %v2900_v59 = vrot.slane %v2899_v37, 1  ;;  %v2906_v43 = vmax.f32 %v2904_v46, %v2905_v34  ;;  %v2913_v38 = vmax.f32 %v2911_v15, %v2912_v50  ;;  %v2920_v33 = vmax.f32 %v2918_v25, %v2919_v3  ;;  %v5862_v3 = vld [vmem:[#allocation15_spill] sm:$0xff] }
  0xe6   :  { %v2926_v8 = vrot.slane %v2925_v32, 2  ;;  %v2932_v7 = vmax.f32 %v2930_v26, %v2931_v6  ;;  %v3464_v61 = vsel %vm2194_vm1, %v2894_v35, %v2887_v31  ;;  %v2827_v16 = vmax.f32 %v2825_v13, %v2826_v44 }
  0xe7   :  { %v2901_v22 = vmax.f32 %v2899_v37, %v2900_v59  ;;  %v2907_v63 = vrot.slane %v2906_v43, 1  ;;  %v2914_v2 = vrot.slane %v2913_v38, 1  ;;  %v2921_v51 = vrot.slane %v2920_v33, 1 }
  0xe8   :  { %v2927_v19 = vmax.f32 %v2925_v32, %v2926_v8  ;;  %v2933_v60 = vrot.slane %v2932_v7, 2  ;;  %v2828_v18 = vrot.slane %v2827_v16, 2  ;;  %v2832_v28 = vsel %vm1169_vm0, %v5857_v4, -inf  ;;  %v5863_v8 = vld [vmem:[#allocation19_spill] sm:$0xff] }
  0xe9   :  { %v2908_v9 = vmax.f32 %v2906_v43, %v2907_v63  ;;  %v2915_v41 = vmax.f32 %v2913_v38, %v2914_v2  ;;  %v2922_v36 = vmax.f32 %v2920_v33, %v2921_v51  ;;  %v3465_v52 = vsel %vm2196_vm2, %v2901_v22, %v3464_v61  ;;  %v89_v43 = vld [vmem:[#allocation4 + $0xc0] sm:$0xff] }
  0xea   :  { %v2928_v42 = vrot.slane %v2927_v19, 1  ;;  %v2934_v39 = vmax.f32 %v2932_v7, %v2933_v60  ;;  %v2829_v62 = vmax.f32 %v2827_v16, %v2828_v18  ;;  %v2833_v48 = vrot.slane %v2832_v28, 4  ;;  %v5864_v18 = vld [vmem:[#allocation11_spill] sm:$0xff] }
  0xeb   :  { %v3466_v10 = vsel %vm2198_vm3, %v2908_v9, %v3465_v52  ;;  %v2839_v47 = vsel %vm1169_vm0, %v5858_v55, -inf  ;;  %v2846_v49 = vsel %vm1169_vm0, %v5859_v45, -inf  ;;  %v2853_v1 = vsel %vm1169_vm0, %v5860_v30, -inf }
  0xec   :  { %v2929_v27 = vmax.f32 %v2927_v19, %v2928_v42  ;;  %v2935_v53 = vrot.slane %v2934_v39, 1  ;;  %v3467_v17 = vsel %vm2200_vm4, %v2915_v41, %v3466_v10  ;;  %v2830_v24 = vrot.slane %v2829_v62, 1 }
  0xed   :  { %v3468_v58 = vsel %vm2202_vm5, %v2922_v36, %v3467_v17  ;;  %v2834_v31 = vmax.f32 %v2832_v28, %v2833_v48  ;;  %v2840_v57 = vrot.slane %v2839_v47, 4  ;;  %v2847_v11 = vrot.slane %v2846_v49, 4 }
  0xee   :  { %v2936_v5 = vmax.f32 %v2934_v39, %v2935_v53  ;;  %v3469_v46 = vsel %vm2204_vm6, %v2929_v27, %v3468_v58  ;;  %v2831_v15 = vmax.f32 %v2829_v62, %v2830_v24  ;;  %v2854_v25 = vrot.slane %v2853_v1, 4  ;;  %v90_v62 = vld [vmem:[#allocation4 + $0xc8] sm:$0xff]  ;;  %v73_v53 = vld [vmem:[#allocation4 + $0x40] sm:$0xff] }
  0xef   :  { %v2835_v0 = vrot.slane %v2834_v31, 2  ;;  %v2841_v23 = vmax.f32 %v2839_v47, %v2840_v57  ;;  %v2848_v26 = vmax.f32 %v2846_v49, %v2847_v11  ;;  %v2860_v13 = vsel %vm1169_vm0, %v5861_v29, -inf }
  0xf0   :  { %v3470_v37 = vsel %vm2206_vm7, %v2936_v5, %v3469_v46  ;;  %v2855_v34 = vmax.f32 %v2853_v1, %v2854_v25  ;;  %v2861_v50 = vrot.slane %v2860_v13, 4  ;;  %v2867_v35 = vsel %vm1169_vm0, %v5862_v3, -inf }
  0xf1   :  { %3646 = vmax.xlane.f32.xlu1 %v3470_v37  ;;  %v2836_v32 = vmax.f32 %v2834_v31, %v2835_v0  ;;  %v2842_v6 = vrot.slane %v2841_v23, 2  ;;  %v2849_v44 = vrot.slane %v2848_v26, 2  ;;  %v2868_v59 = vrot.slane %v2867_v35, 4 }
  0xf2   :  { %v2856_v38 = vrot.slane %v2855_v34, 2  ;;  %v2862_v33 = vmax.f32 %v2860_v13, %v2861_v50  ;;  %v2874_v7 = vsel %vm1169_vm0, %v5863_v8, -inf  ;;  %v889_v61 = vcombine.high %v89_v43, %v5827_v56 }
  0xf3   :  { %v2837_v16 = vrot.slane %v2836_v32, 1  ;;  %v2843_v22 = vmax.f32 %v2841_v23, %v2842_v6  ;;  %v2850_v63 = vmax.f32 %v2848_v26, %v2849_v44  ;;  %v2869_v2 = vmax.f32 %v2867_v35, %v2868_v59 }
  0xf4   :  { %v2857_v51 = vmax.f32 %v2855_v34, %v2856_v38  ;;  %v2863_v19 = vrot.slane %v2862_v33, 2  ;;  %v2875_v60 = vrot.slane %v2874_v7, 4  ;;  %v896_v4 = vrot.slane %v89_v43, %v5864_v18 }
  0xf5   :  { %v2838_v28 = vmax.f32 %v2836_v32, %v2837_v16  ;;  %v2844_v9 = vrot.slane %v2843_v22, 1  ;;  %v2851_v41 = vrot.slane %v2850_v63, 1  ;;  %v2870_v36 = vrot.slane %v2869_v2, 2 }
  0xf6   :  { %v2858_v52 = vrot.slane %v2857_v51, 1  ;;  %v2864_v42 = vmax.f32 %v2862_v33, %v2863_v19  ;;  %v2876_v39 = vmax.f32 %v2874_v7, %v2875_v60  ;;  %v903_v48 = vrot.slane %v889_v61, %v5864_v18 }
  0xf7   :  { %v2845_v10 = vmax.f32 %v2843_v22, %v2844_v9  ;;  %v2852_v55 = vmax.f32 %v2850_v63, %v2851_v41  ;;  %v2871_v47 = vmax.f32 %v2869_v2, %v2870_v36  ;;  %v3457_v45 = vsel %vm2194_vm1, %v2838_v28, %v2831_v15 }
  0xf8   :  { %v2859_v49 = vmax.f32 %v2857_v51, %v2858_v52  ;;  %v2865_v30 = vrot.slane %v2864_v42, 1  ;;  %v2877_v1 = vrot.slane %v2876_v39, 2  ;;  %v904_v27 = vcombine.high %v90_v62, %v5827_v56 }
  0xf9   :  { %v2872_v17 = vrot.slane %v2871_v47, 1  ;;  %v3458_v24 = vsel %vm2196_vm2, %v2845_v10, %v3457_v45  ;;  %v911_v58 = vrot.slane %v90_v62, %v5864_v18  ;;  %v361_v31 = vcombine.high %v73_v53, %v5827_v56 }
  0xfa   :  { %v2866_v57 = vmax.f32 %v2864_v42, %v2865_v30  ;;  %v2878_v11 = vmax.f32 %v2876_v39, %v2877_v1  ;;  %v3459_v5 = vsel %vm2198_vm3, %v2852_v55, %v3458_v24  ;;  %v918_v46 = vrot.slane %v904_v27, %v5864_v18 }
  0xfb   :  { %v2873_v15 = vmax.f32 %v2871_v47, %v2872_v17  ;;  %v3460_v25 = vsel %vm2200_vm4, %v2859_v49, %v3459_v5  ;;  %v919_v0 = vcombine.low %v896_v4, %v911_v58  ;;  %v920_v23 = vcombine.high %v896_v4, %v911_v58 }
  0xfc   :  { %v2879_v26 = vrot.slane %v2878_v11, 1  ;;  %v3461_v29 = vsel %vm2202_vm5, %v2866_v57, %v3460_v25  ;;  %v935_v13 = vcombine.low %v903_v48, %v918_v46  ;;  %v936_v37 = vcombine.high %v903_v48, %v918_v46 }
  0xfd   :  { %v3462_v34 = vsel %vm2204_vm6, %v2873_v15, %v3461_v29  ;;  %v4827_v50 = vrot.slane %v919_v0, %v4235_v12  ;;  %v4830_v3 = vrot.slane %v920_v23, %v4235_v12  ;;  %v4833_v35 = vrot.slane %v73_v53, %v5864_v18 }
  0xfe   :  { %v2880_v32 = vmax.f32 %v2878_v11, %v2879_v26  ;;  %v4836_v6 = vrot.slane %v935_v13, %v4235_v12  ;;  %v4839_v44 = vrot.slane %v936_v37, %v4235_v12  ;;  %v4842_v59 = vrot.slane %v361_v31, %v5864_v18 }
  0xff   :  { %v4846_v43 = vcombine.high %v4827_v50, %v5827_v56  ;;  %v4850_v38 = vcombine.high %v4830_v3, %v5827_v56  ;;  %v1842_v33 = vsel %vm1169_vm0, %v4827_v50, 0.0  ;;  %v1856_v8 = vsel %vm1169_vm0, %v4830_v3, 0.0 }
 0x100   :  { %v3463_v7 = vsel %vm2206_vm7, %v2880_v32, %v3462_v34  ;;  %v4859_v61 = vcombine.high %v4836_v6, %v5827_v56  ;;  %v4863_v16 = vcombine.high %v4839_v44, %v5827_v56  ;;  %v1843_v22 = vrot.slane %v1842_v33, 4  ;;  %v74_v34 = vld [vmem:[#allocation4 + $0x48] sm:$0xff] }
 0x101   :  { %3644 = vmax.xlane.f32.xlu0 %v3463_v7  ;;  %v1849_v63 = vsel %vm1169_vm0, %v4846_v43, 0.0  ;;  %v1857_v2 = vrot.slane %v1856_v8, 4  ;;  %v1863_v51 = vsel %vm1169_vm0, %v4850_v38, 0.0  ;;  %v1870_v19 = vsel %vm1169_vm0, %v4836_v6, 0.0 }
 0x102   :  { %v1844_v60 = vadd.f32 %v1843_v22, %v1842_v33  ;;  %v1850_v4 = vrot.slane %v1849_v63, 4  ;;  %v1864_v28 = vrot.slane %v1863_v51, 4  ;;  %v1871_v9 = vrot.slane %v1870_v19, 4 }
 0x103   :  { %v1858_v41 = vadd.f32 %v1857_v2, %v1856_v8  ;;  %v1877_v36 = vsel %vm1169_vm0, %v4859_v61, 0.0  ;;  %v1884_v52 = vsel %vm1169_vm0, %v4839_v44, 0.0  ;;  %v1891_v42 = vsel %vm1169_vm0, %v4863_v16, 0.0 }
 0x104   :  { %v1845_v39 = vrot.slane %v1844_v60, 2  ;;  %v1851_v62 = vadd.f32 %v1850_v4, %v1849_v63  ;;  %v1865_v48 = vadd.f32 %v1864_v28, %v1863_v51  ;;  %v1872_v10 = vadd.f32 %v1871_v9, %v1870_v19 }
 0x105   :  { %v1859_v55 = vrot.slane %v1858_v41, 2  ;;  %v1878_v47 = vrot.slane %v1877_v36, 4  ;;  %v1885_v45 = vrot.slane %v1884_v52, 4  ;;  %v1892_v49 = vrot.slane %v1891_v42, 4 }
 0x106   :  { %v1846_v30 = vadd.f32 %v1845_v39, %v1844_v60  ;;  %v1852_v1 = vrot.slane %v1851_v62, 2  ;;  %v1866_v27 = vrot.slane %v1865_v48, 2  ;;  %v1873_v53 = vrot.slane %v1872_v10, 2 }
 0x107   :  { %v1860_v17 = vadd.f32 %v1859_v55, %v1858_v41  ;;  %v1879_v24 = vadd.f32 %v1878_v47, %v1877_v36  ;;  %v1886_v58 = vadd.f32 %v1885_v45, %v1884_v52  ;;  %v1893_v31 = vadd.f32 %v1892_v49, %v1891_v42  ;;  %v5865_v36 = vld [vmem:[#allocation20_spill] sm:$0xff] }
 0x108   :  { %v1847_v57 = vrot.slane %v1846_v30, 1  ;;  %v1853_v11 = vadd.f32 %v1852_v1, %v1851_v62  ;;  %v1867_v5 = vadd.f32 %v1866_v27, %v1865_v48  ;;  %v1874_v46 = vadd.f32 %v1873_v53, %v1872_v10  ;;  %v5866_v42 = vld [vmem:[#allocation24_spill] sm:$0xff] }
 0x109   :  { %v1861_v15 = vrot.slane %v1860_v17, 1  ;;  %v1880_v25 = vrot.slane %v1879_v24, 2  ;;  %v1887_v0 = vrot.slane %v1886_v58, 2  ;;  %v1894_v23 = vrot.slane %v1893_v31, 2 }
 0x10a   :  { %v1848_v26 = vadd.f32 %v1847_v57, %v1846_v30  ;;  %v1854_v29 = vrot.slane %v1853_v11, 1  ;;  %v1868_v13 = vrot.slane %v1867_v5, 1  ;;  %v1875_v37 = vrot.slane %v1874_v46, 1 }
 0x10b   :  { %v1862_v32 = vadd.f32 %v1861_v15, %v1860_v17  ;;  %v1881_v33 = vadd.f32 %v1880_v25, %v1879_v24  ;;  %v1888_v8 = vadd.f32 %v1887_v0, %v1886_v58  ;;  %v1895_v7 = vadd.f32 %v1894_v23, %v1893_v31 }
 0x10c   :  { %v1855_v22 = vadd.f32 %v1854_v29, %v1853_v11  ;;  %v1869_v63 = vadd.f32 %v1868_v13, %v1867_v5  ;;  %v1876_v2 = vadd.f32 %v1875_v37, %v1874_v46  ;;  %v376_v51 = vcombine.high %v74_v34, %v5827_v56 }
 0x10d   :  { %v1882_v19 = vrot.slane %v1881_v33, 1  ;;  %v1889_v60 = vrot.slane %v1888_v8, 1  ;;  %v1896_v4 = vrot.slane %v1895_v7, 1  ;;  %v383_v28 = vrot.slane %v74_v34, %v5864_v18 }
 0x10e   :  { %v2285_v9 = vsel %vm2194_vm1, %v1855_v22, %v1848_v26  ;;  %v390_v41 = vrot.slane %v376_v51, %v5864_v18  ;;  %v2937_v52 = vsel %vm1169_vm0, %v5865_v36, -inf  ;;  %v2944_v39 = vsel %vm1169_vm0, %v5866_v42, -inf }
 0x10f   :  { %v1883_v62 = vadd.f32 %v1882_v19, %v1881_v33  ;;  %v1890_v48 = vadd.f32 %v1889_v60, %v1888_v8  ;;  %v1897_v10 = vadd.f32 %v1896_v4, %v1895_v7  ;;  %v2286_v55 = vsel %vm2196_vm2, %v1862_v32, %v2285_v9 }
 0x110   :  { %v2287_v47 = vsel %vm2198_vm3, %v1869_v63, %v2286_v55  ;;  %v391_v45 = vcombine.low %v4833_v35, %v383_v28  ;;  %v392_v49 = vcombine.high %v4833_v35, %v383_v28  ;;  %v407_v30 = vcombine.low %v4842_v59, %v390_v41 }
 0x111   :  { %v2288_v1 = vsel %vm2200_vm4, %v1876_v2, %v2287_v47  ;;  %v408_v27 = vcombine.high %v4842_v59, %v390_v41  ;;  %v2938_v53 = vrot.slane %v2937_v52, 4  ;;  %v2945_v17 = vrot.slane %v2944_v39, 4 }
 0x112   :  { %v2289_v24 = vsel %vm2202_vm5, %v1883_v62, %v2288_v1  ;;  %v4894_v58 = vrot.slane %v391_v45, %v4235_v12  ;;  %v4897_v31 = vrot.slane %v392_v49, %v4235_v12  ;;  %v4900_v57 = vrot.slane %v407_v30, %v4235_v12 }
 0x113   :  { %v2290_v35 = vsel %vm2204_vm6, %v1890_v48, %v2289_v24  ;;  %v4904_v11 = vrot.slane %v408_v27, %v4235_v12  ;;  %v4906_v5 = vmax.f32 %v2937_v52, %v2938_v53  ;;  %v4908_v59 = vmax.f32 %v2944_v39, %v2945_v17 }
 0x114   :  { %v2291_v46 = vsel %vm2206_vm7, %v1897_v10, %v2290_v35  ;;  %v4913_v15 = vcombine.high %v4894_v58, %v5827_v56  ;;  %v4917_v25 = vcombine.high %v4897_v31, %v5827_v56  ;;  %v4921_v0 = vcombine.high %v4900_v57, %v5827_v56 }
 0x115   :  { %3604 = vadd.xlane.f32.xlu1 %v2291_v46  ;;  %v4925_v23 = vcombine.high %v4904_v11, %v5827_v56  ;;  %v1394_v26 = vsel %vm1169_vm0, %v4894_v58, 0.0  ;;  %v1408_v29 = vsel %vm1169_vm0, %v4897_v31, 0.0  ;;  %v1422_v13 = vsel %vm1169_vm0, %v4900_v57, 0.0 }
 0x116   :  { %v1395_v37 = vrot.slane %v1394_v26, 4  ;;  %v1401_v34 = vsel %vm1169_vm0, %v4913_v15, 0.0  ;;  %v1409_v32 = vrot.slane %v1408_v29, 4  ;;  %v1415_v33 = vsel %vm1169_vm0, %v4917_v25, 0.0 }
 0x117   :  { %v1402_v8 = vrot.slane %v1401_v34, 4  ;;  %v1416_v7 = vrot.slane %v1415_v33, 4  ;;  %v1423_v22 = vrot.slane %v1422_v13, 4  ;;  %v1429_v63 = vsel %vm1169_vm0, %v4921_v0, 0.0 }
 0x118   :  { %v1396_v2 = vadd.f32 %v1395_v37, %v1394_v26  ;;  %v1410_v51 = vadd.f32 %v1409_v32, %v1408_v29  ;;  %v1430_v19 = vrot.slane %v1429_v63, 4  ;;  %v1436_v60 = vsel %vm1169_vm0, %v4904_v11, 0.0 }
 0x119   :  { %v1403_v4 = vadd.f32 %v1402_v8, %v1401_v34  ;;  %v1417_v28 = vadd.f32 %v1416_v7, %v1415_v33  ;;  %v1424_v9 = vadd.f32 %v1423_v22, %v1422_v13  ;;  %v1437_v41 = vrot.slane %v1436_v60, 4 }
 0x11a   :  { %v1397_v36 = vrot.slane %v1396_v2, 2  ;;  %v1411_v52 = vrot.slane %v1410_v51, 2  ;;  %v1431_v42 = vadd.f32 %v1430_v19, %v1429_v63  ;;  %v1443_v39 = vsel %vm1169_vm0, %v4925_v23, 0.0 }
 0x11b   :  { %v1404_v62 = vrot.slane %v1403_v4, 2  ;;  %v1418_v48 = vrot.slane %v1417_v28, 2  ;;  %v1425_v10 = vrot.slane %v1424_v9, 2  ;;  %v1438_v55 = vadd.f32 %v1437_v41, %v1436_v60 }
 0x11c   :  { %v1398_v47 = vadd.f32 %v1397_v36, %v1396_v2  ;;  %v1412_v45 = vadd.f32 %v1411_v52, %v1410_v51  ;;  %v1432_v49 = vrot.slane %v1431_v42, 2  ;;  %v1444_v30 = vrot.slane %v1443_v39, 4  ;;  %v5867_v36 = vld [vmem:[#allocation21_spill] sm:$0xff] }
 0x11d   :  { %v1405_v1 = vadd.f32 %v1404_v62, %v1403_v4  ;;  %v1419_v27 = vadd.f32 %v1418_v48, %v1417_v28  ;;  %v1426_v53 = vadd.f32 %v1425_v10, %v1424_v9  ;;  %v1439_v17 = vrot.slane %v1438_v55, 2 }
 0x11e   :  { %v1399_v24 = vrot.slane %v1398_v47, 1  ;;  %v1413_v35 = vrot.slane %v1412_v45, 1  ;;  %v1433_v46 = vadd.f32 %v1432_v49, %v1431_v42  ;;  %v1445_v26 = vadd.f32 %v1444_v30, %v1443_v39  ;;  %v5868_v42 = vld [vmem:[#allocation25_spill] sm:$0xff]  ;;  %v5869_v30 = vld [vmem:[#allocation22_spill] sm:$0xff] }
 0x11f   :  { %v1406_v29 = vrot.slane %v1405_v1, 1  ;;  %v1420_v13 = vrot.slane %v1419_v27, 1  ;;  %v1427_v37 = vrot.slane %v1426_v53, 1  ;;  %v1440_v34 = vadd.f32 %v1439_v17, %v1438_v55 }
 0x120   :  { %v1400_v32 = vadd.f32 %v1399_v24, %v1398_v47  ;;  %v1414_v33 = vadd.f32 %v1413_v35, %v1412_v45  ;;  %v1434_v8 = vrot.slane %v1433_v46, 1  ;;  %v1446_v7 = vrot.slane %v1445_v26, 2 }
 0x121   :  { %v1407_v22 = vadd.f32 %v1406_v29, %v1405_v1  ;;  %v1421_v63 = vadd.f32 %v1420_v13, %v1419_v27  ;;  %v1428_v2 = vadd.f32 %v1427_v37, %v1426_v53  ;;  %v1441_v51 = vrot.slane %v1440_v34, 1  ;;  %v5870_v37 = vld [vmem:[#allocation28_spill] sm:$0xff] }
 0x122   :  { %v1435_v19 = vadd.f32 %v1434_v8, %v1433_v46  ;;  %v1447_v60 = vadd.f32 %v1446_v7, %v1445_v26  ;;  %v2940_v4 = vrot.slane %v4906_v5, 2  ;;  %v2947_v28 = vrot.slane %v4908_v59, 2 }
 0x123   :  { %v1442_v9 = vadd.f32 %v1441_v51, %v1440_v34  ;;  %v2229_v41 = vsel %vm2194_vm1, %v1407_v22, %v1400_v32  ;;  %v2951_v52 = vsel %vm1169_vm0, %v5867_v36, -inf  ;;  %v2958_v39 = vsel %vm1169_vm0, %v5868_v42, -inf  ;;  %v5872_v51 = vld [vmem:[#allocation29_spill] sm:$0xff]  ;;  %v5873_v42 = vld [vmem:[#allocation26_spill] sm:$0xff] }
 0x124   :  { %v1448_v62 = vrot.slane %v1447_v60, 1  ;;  %v2230_v48 = vsel %vm2196_vm2, %v1414_v33, %v2229_v41  ;;  %v2941_v10 = vmax.f32 %v4906_v5, %v2940_v4  ;;  %v2948_v55 = vmax.f32 %v4908_v59, %v2947_v28 }
 0x125   :  { %v2231_v47 = vsel %vm2198_vm3, %v1421_v63, %v2230_v48  ;;  %v2952_v45 = vrot.slane %v2951_v52, 4  ;;  %v2959_v49 = vrot.slane %v2958_v39, 4  ;;  %v2965_v1 = vsel %vm1169_vm0, %v5869_v30, -inf  ;;  %v5871_v63 = vld [vmem:[#allocation23_spill] sm:$0xff] }
 0x126   :  { %v1449_v27 = vadd.f32 %v1448_v62, %v1447_v60  ;;  %v2232_v53 = vsel %vm2200_vm4, %v1428_v2, %v2231_v47  ;;  %v2942_v17 = vrot.slane %v2941_v10, 1  ;;  %v2949_v24 = vrot.slane %v2948_v55, 1  ;;  %v5874_v62 = vld [vmem:[#allocation31_spill] sm:$0xff] }
 0x127   :  { %v2233_v35 = vsel %vm2202_vm5, %v1435_v19, %v2232_v53  ;;  %v2953_v46 = vmax.f32 %v2951_v52, %v2952_v45  ;;  %v2960_v26 = vmax.f32 %v2958_v39, %v2959_v49  ;;  %v2966_v29 = vrot.slane %v2965_v1, 4 }
 0x128   :  { %v2234_v5 = vsel %vm2204_vm6, %v1442_v9, %v2233_v35  ;;  %v2943_v59 = vmax.f32 %v2941_v10, %v2942_v17  ;;  %v2950_v13 = vmax.f32 %v2948_v55, %v2949_v24  ;;  %v2972_v34 = vsel %vm1169_vm0, %v5870_v37, -inf }
 0x129   :  { %v2235_v32 = vsel %vm2206_vm7, %v1449_v27, %v2234_v5  ;;  %v2954_v33 = vrot.slane %v2953_v46, 2  ;;  %v2961_v8 = vrot.slane %v2960_v26, 2  ;;  %v2967_v7 = vmax.f32 %v2965_v1, %v2966_v29 }
 0x12a   :  { %3588 = vadd.xlane.f32.xlu0 %v2235_v32  ;;  %v2973_v22 = vrot.slane %v2972_v34, 4  ;;  %v2979_v2 = vsel %vm1169_vm0, %v5871_v63, -inf  ;;  %v2986_v19 = vsel %vm1169_vm0, %v5872_v51, -inf  ;;  %v3471_v60 = vsel %vm2194_vm1, %v2950_v13, %v2943_v59 }
 0x12b   :  { %v2955_v4 = vmax.f32 %v2953_v46, %v2954_v33  ;;  %v2962_v28 = vmax.f32 %v2960_v26, %v2961_v8  ;;  %v2968_v9 = vrot.slane %v2967_v7, 2  ;;  %v2980_v41 = vrot.slane %v2979_v2, 4 }
 0x12c   :  { %v2974_v36 = vmax.f32 %v2972_v34, %v2973_v22  ;;  %v2987_v52 = vrot.slane %v2986_v19, 4  ;;  %v2489_v39 = vsel %vm1169_vm0, %v5873_v42, -inf  ;;  %v2496_v48 = vsel %vm1169_vm0, %v5874_v62, -inf  ;;  %v5875_v34 = vld [vmem:[#allocation27_spill] sm:$0xff] }
 0x12d   :  { %v2956_v10 = vrot.slane %v2955_v4, 1  ;;  %v2963_v55 = vrot.slane %v2962_v28, 1  ;;  %v2969_v47 = vmax.f32 %v2967_v7, %v2968_v9  ;;  %v2981_v45 = vmax.f32 %v2979_v2, %v2980_v41  ;;  %v5876_v41 = vld [vmem:[#allocation33_spill] sm:$0xff] }
 0x12e   :  { %v2975_v49 = vrot.slane %v2974_v36, 2  ;;  %v2988_v30 = vmax.f32 %v2986_v19, %v2987_v52  ;;  %v2490_v1 = vrot.slane %v2489_v39, 4  ;;  %v2497_v27 = vrot.slane %v2496_v48, 4 }
 0x12f   :  { %v2957_v53 = vmax.f32 %v2955_v4, %v2956_v10  ;;  %v2964_v17 = vmax.f32 %v2962_v28, %v2963_v55  ;;  %v2970_v24 = vrot.slane %v2969_v47, 1  ;;  %v2982_v35 = vrot.slane %v2981_v45, 2  ;;  %v5877_v55 = vld [vmem:[#allocation30_spill] sm:$0xff] }
 0x130   :  { %v2976_v46 = vmax.f32 %v2974_v36, %v2975_v49  ;;  %v2989_v26 = vrot.slane %v2988_v30, 2  ;;  %v2491_v29 = vmax.f32 %v2489_v39, %v2490_v1  ;;  %v2498_v5 = vmax.f32 %v2496_v48, %v2497_v27 }
 0x131   :  { %v2971_v59 = vmax.f32 %v2969_v47, %v2970_v24  ;;  %v2983_v13 = vmax.f32 %v2981_v45, %v2982_v35  ;;  %v3472_v37 = vsel %vm2196_vm2, %v2957_v53, %v3471_v60  ;;  %v2503_v32 = vsel %vm1169_vm0, %v5875_v34, -inf  ;;  %v5878_v24 = vld [vmem:[#allocation34_spill] sm:$0xff] }
 0x132   :  { %v2977_v33 = vrot.slane %v2976_v46, 1  ;;  %v2990_v8 = vmax.f32 %v2988_v30, %v2989_v26  ;;  %v3473_v7 = vsel %vm2198_vm3, %v2964_v17, %v3472_v37  ;;  %v2492_v22 = vrot.slane %v2491_v29, 2  ;;  %v5879_v37 = vld [vmem:[#allocation32_spill] sm:$0xff] }
 0x133   :  { %v2984_v63 = vrot.slane %v2983_v13, 1  ;;  %v3474_v2 = vsel %vm2200_vm4, %v2971_v59, %v3473_v7  ;;  %v2499_v51 = vrot.slane %v2498_v5, 2  ;;  %v2504_v19 = vrot.slane %v2503_v32, 4  ;;  %v91_v59 = vld [vmem:[#allocation4 + $0xd0] sm:$0xff] }
 0x134   :  { %v2978_v4 = vmax.f32 %v2976_v46, %v2977_v33  ;;  %v2991_v28 = vrot.slane %v2990_v8, 1  ;;  %v2493_v9 = vmax.f32 %v2491_v29, %v2492_v22  ;;  %v2510_v36 = vsel %vm1169_vm0, %v5876_v41, -inf }
 0x135   :  { %v2985_v60 = vmax.f32 %v2983_v13, %v2984_v63  ;;  %v2500_v52 = vmax.f32 %v2498_v5, %v2499_v51  ;;  %v2505_v42 = vmax.f32 %v2503_v32, %v2504_v19  ;;  %v2511_v39 = vrot.slane %v2510_v36, 4  ;;  %v5880_v32 = vld [vmem:[#allocation35_spill] sm:$0xff] }
 0x136   :  { %v2992_v62 = vmax.f32 %v2990_v8, %v2991_v28  ;;  %v3475_v48 = vsel %vm2202_vm5, %v2978_v4, %v3474_v2  ;;  %v2494_v10 = vrot.slane %v2493_v9, 1  ;;  %v2517_v47 = vsel %vm1169_vm0, %v5877_v55, -inf }
 0x137   :  { %v3476_v45 = vsel %vm2204_vm6, %v2985_v60, %v3475_v48  ;;  %v2501_v49 = vrot.slane %v2500_v52, 1  ;;  %v2506_v30 = vrot.slane %v2505_v42, 2  ;;  %v2512_v1 = vmax.f32 %v2510_v36, %v2511_v39 }
 0x138   :  { %v3477_v27 = vsel %vm2206_vm7, %v2992_v62, %v3476_v45  ;;  %v2495_v53 = vmax.f32 %v2493_v9, %v2494_v10  ;;  %v2518_v17 = vrot.slane %v2517_v47, 4  ;;  %v2524_v35 = vsel %vm1169_vm0, %v5878_v24, -inf }
 0x139   :  { %3648 = vmax.xlane.f32.xlu1 %v3477_v27  ;;  %v2502_v46 = vmax.f32 %v2500_v52, %v2501_v49  ;;  %v2507_v26 = vmax.f32 %v2505_v42, %v2506_v30  ;;  %v2513_v29 = vrot.slane %v2512_v1, 2  ;;  %v2525_v5 = vrot.slane %v2524_v35, 4  ;;  %v92_v52 = vld [vmem:[#allocation4 + $0xd8] sm:$0xff] }
 0x13a   :  { %v2519_v13 = vmax.f32 %v2517_v47, %v2518_v17  ;;  %v2531_v34 = vsel %vm1169_vm0, %v5879_v37, -inf  ;;  %v2538_v33 = vsel %vm1169_vm0, %v5880_v32, -inf  ;;  %v955_v8 = vcombine.high %v91_v59, %v5827_v56 }
 0x13b   :  { %v2508_v7 = vrot.slane %v2507_v26, 1  ;;  %v2514_v22 = vmax.f32 %v2512_v1, %v2513_v29  ;;  %v2526_v63 = vmax.f32 %v2524_v35, %v2525_v5  ;;  %v2532_v2 = vrot.slane %v2531_v34, 4 }
 0x13c   :  { %v2520_v51 = vrot.slane %v2519_v13, 2  ;;  %v2539_v19 = vrot.slane %v2538_v33, 4  ;;  %v3415_v4 = vsel %vm2194_vm1, %v2502_v46, %v2495_v53  ;;  %v962_v28 = vrot.slane %v91_v59, %v5864_v18  ;;  %v4997_v53 = vld [vmem:[#allocation4 + $0x50] sm:$0xff] }
 0x13d   :  { %v2509_v9 = vmax.f32 %v2507_v26, %v2508_v7  ;;  %v2515_v41 = vrot.slane %v2514_v22, 1  ;;  %v2527_v36 = vrot.slane %v2526_v63, 2  ;;  %v2533_v60 = vmax.f32 %v2531_v34, %v2532_v2 }
 0x13e   :  { %v2521_v42 = vmax.f32 %v2519_v13, %v2520_v51  ;;  %v2540_v39 = vmax.f32 %v2538_v33, %v2539_v19  ;;  %v969_v62 = vrot.slane %v955_v8, %v5864_v18  ;;  %v970_v48 = vcombine.high %v92_v52, %v5827_v56 }
 0x13f   :  { %v2516_v10 = vmax.f32 %v2514_v22, %v2515_v41  ;;  %v2528_v55 = vmax.f32 %v2526_v63, %v2527_v36  ;;  %v2534_v47 = vrot.slane %v2533_v60, 2  ;;  %v3416_v45 = vsel %vm2196_vm2, %v2509_v9, %v3415_v4 }
 0x140   :  { %v2522_v49 = vrot.slane %v2521_v42, 1  ;;  %v2541_v30 = vrot.slane %v2540_v39, 2  ;;  %v977_v1 = vrot.slane %v92_v52, %v5864_v18  ;;  %v984_v27 = vrot.slane %v970_v48, %v5864_v18 }
 0x141   :  { %v2529_v17 = vrot.slane %v2528_v55, 1  ;;  %v2535_v24 = vmax.f32 %v2533_v60, %v2534_v47  ;;  %v3417_v35 = vsel %vm2198_vm3, %v2516_v10, %v3416_v45  ;;  %v5002_v46 = vcombine.high %v4997_v53, %v5827_v56 }
 0x142   :  { %v2523_v26 = vmax.f32 %v2521_v42, %v2522_v49  ;;  %v2542_v29 = vmax.f32 %v2540_v39, %v2541_v30  ;;  %v985_v5 = vcombine.low %v962_v28, %v977_v1  ;;  %v986_v59 = vcombine.high %v962_v28, %v977_v1 }
 0x143   :  { %v2530_v13 = vmax.f32 %v2528_v55, %v2529_v17  ;;  %v2536_v37 = vrot.slane %v2535_v24, 1  ;;  %v1001_v34 = vcombine.low %v969_v62, %v984_v27  ;;  %v1002_v32 = vcombine.high %v969_v62, %v984_v27 }
 0x144   :  { %v2543_v33 = vrot.slane %v2542_v29, 1  ;;  %v3418_v8 = vsel %vm2200_vm4, %v2523_v26, %v3417_v35  ;;  %v5006_v7 = vrot.slane %v985_v5, %v4235_v12  ;;  %v5009_v22 = vrot.slane %v986_v59, %v4235_v12 }
 0x145   :  { %v2537_v63 = vmax.f32 %v2535_v24, %v2536_v37  ;;  %v3419_v2 = vsel %vm2202_vm5, %v2530_v13, %v3418_v8  ;;  %v5013_v51 = vrot.slane %v1001_v34, %v4235_v12  ;;  %v5016_v19 = vrot.slane %v1002_v32, %v4235_v12 }
 0x146   :  { %5881 = vst [vmem:[#allocation12_spill] sm:$0xff] %v5009_v22  ;;  %v2544_v4 = vmax.f32 %v2542_v29, %v2543_v33  ;;  %v5020_v28 = vcombine.high %v5006_v7, %v5827_v56  ;;  %v5024_v9 = vcombine.high %v5009_v22, %v5827_v56  ;;  %v1898_v41 = vsel %vm1169_vm0, %v5006_v7, 0.0 }
 0x147   :  { %5882 = vst [vmem:[#allocation16_spill] sm:$0xff] %v5013_v51  ;;  %5883 = vst [vmem:[#allocation13_spill] sm:$0xff] %v5016_v19  ;;  %v3420_v36 = vsel %vm2204_vm6, %v2537_v63, %v3419_v2  ;;  %v5031_v60 = vcombine.high %v5013_v51, %v5827_v56  ;;  %v5035_v52 = vcombine.high %v5016_v19, %v5827_v56  ;;  %v1899_v42 = vrot.slane %v1898_v41, 4 }
 0x148   :  { %5884 = vst [vmem:[#allocation17_spill] sm:$0xff] %v5020_v28  ;;  %5885 = vst [vmem:[#allocation14_spill] sm:$0xff] %v5024_v9  ;;  %v3421_v39 = vsel %vm2206_vm7, %v2544_v4, %v3420_v36  ;;  %v1905_v62 = vsel %vm1169_vm0, %v5020_v28, 0.0  ;;  %v1912_v48 = vsel %vm1169_vm0, %v5009_v22, 0.0  ;;  %v1919_v10 = vsel %vm1169_vm0, %v5024_v9, 0.0 }
 0x149   :  { %5886 = vst [vmem:[#allocation18_spill] sm:$0xff] %v5031_v60  ;;  %5887 = vst [vmem:[#allocation15_spill] sm:$0xff] %v5035_v52  ;;  %3632 = vmax.xlane.f32.xlu0 %v3421_v39  ;;  %v1900_v55 = vadd.f32 %v1899_v42, %v1898_v41  ;;  %v1906_v47 = vrot.slane %v1905_v62, 4  ;;  %v1913_v45 = vrot.slane %v1912_v48, 4  ;;  %v1920_v49 = vrot.slane %v1919_v10, 4 }
 0x14a   :  { %v1926_v30 = vsel %vm1169_vm0, %v5013_v51, 0.0  ;;  %v1933_v1 = vsel %vm1169_vm0, %v5031_v60, 0.0  ;;  %v1940_v27 = vsel %vm1169_vm0, %v5016_v19, 0.0  ;;  %v1947_v17 = vsel %vm1169_vm0, %v5035_v52, 0.0 }
 0x14b   :  { %v1901_v24 = vrot.slane %v1900_v55, 2  ;;  %v1907_v35 = vadd.f32 %v1906_v47, %v1905_v62  ;;  %v1914_v26 = vadd.f32 %v1913_v45, %v1912_v48  ;;  %v1921_v29 = vadd.f32 %v1920_v49, %v1919_v10 }
 0x14c   :  { %v1927_v5 = vrot.slane %v1926_v30, 4  ;;  %v1934_v59 = vrot.slane %v1933_v1, 4  ;;  %v1941_v13 = vrot.slane %v1940_v27, 4  ;;  %v1948_v37 = vrot.slane %v1947_v17, 4 }
 0x14d   :  { %v1902_v34 = vadd.f32 %v1901_v24, %v1900_v55  ;;  %v1908_v32 = vrot.slane %v1907_v35, 2  ;;  %v1915_v33 = vrot.slane %v1914_v26, 2  ;;  %v1922_v8 = vrot.slane %v1921_v29, 2 }
 0x14e   :  { %v1928_v63 = vadd.f32 %v1927_v5, %v1926_v30  ;;  %v1935_v2 = vadd.f32 %v1934_v59, %v1933_v1  ;;  %v1942_v4 = vadd.f32 %v1941_v13, %v1940_v27  ;;  %v1949_v41 = vadd.f32 %v1948_v37, %v1947_v17  ;;  %v76_v30 = vld [vmem:[#allocation4 + $0x58] sm:$0xff] }
 0x14f   :  { %v1903_v36 = vrot.slane %v1902_v34, 1  ;;  %v1909_v42 = vadd.f32 %v1908_v32, %v1907_v35  ;;  %v1916_v39 = vadd.f32 %v1915_v33, %v1914_v26  ;;  %v1923_v52 = vadd.f32 %v1922_v8, %v1921_v29 }
 0x150   :  { %v1929_v19 = vrot.slane %v1928_v63, 2  ;;  %v1936_v62 = vrot.slane %v1935_v2, 2  ;;  %v1943_v48 = vrot.slane %v1942_v4, 2  ;;  %v1950_v10 = vrot.slane %v1949_v41, 2 }
 0x151   :  { %v1904_v47 = vadd.f32 %v1903_v36, %v1902_v34  ;;  %v1910_v45 = vrot.slane %v1909_v42, 1  ;;  %v1917_v49 = vrot.slane %v1916_v39, 1  ;;  %v1924_v60 = vrot.slane %v1923_v52, 1 }
 0x152   :  { %v1930_v55 = vadd.f32 %v1929_v19, %v1928_v63  ;;  %v1937_v24 = vadd.f32 %v1936_v62, %v1935_v2  ;;  %v1944_v51 = vadd.f32 %v1943_v48, %v1942_v4  ;;  %v1951_v9 = vadd.f32 %v1950_v10, %v1949_v41  ;;  %v5888_v41 = vld [vmem:[#allocation36_spill] sm:$0xff] }
 0x153   :  { %v1911_v1 = vadd.f32 %v1910_v45, %v1909_v42  ;;  %v1918_v27 = vadd.f32 %v1917_v49, %v1916_v39  ;;  %v1925_v17 = vadd.f32 %v1924_v60, %v1923_v52  ;;  %v434_v35 = vrot.slane %v4997_v53, %v5864_v18  ;;  %v5890_v39 = vld [vmem:[#allocation37_spill] sm:$0xff] }
 0x154   :  { %v1931_v26 = vrot.slane %v1930_v55, 1  ;;  %v1938_v29 = vrot.slane %v1937_v24, 1  ;;  %v1945_v5 = vrot.slane %v1944_v51, 1  ;;  %v1952_v59 = vrot.slane %v1951_v9, 1 }
 0x155   :  { %v2292_v13 = vsel %vm2194_vm1, %v1911_v1, %v1904_v47  ;;  %v441_v37 = vrot.slane %v5002_v46, %v5864_v18  ;;  %v442_v19 = vcombine.high %v76_v30, %v5827_v56  ;;  %v449_v34 = vrot.slane %v76_v30, %v5864_v18  ;;  %v5889_v46 = vld [vmem:[#allocation40_spill] sm:$0xff] }
 0x156   :  { %v1932_v32 = vadd.f32 %v1931_v26, %v1930_v55  ;;  %v1939_v33 = vadd.f32 %v1938_v29, %v1937_v24  ;;  %v1946_v8 = vadd.f32 %v1945_v5, %v1944_v51  ;;  %v1953_v60 = vadd.f32 %v1952_v59, %v1951_v9 }
 0x157   :  { %v2293_v52 = vsel %vm2196_vm2, %v1918_v27, %v2292_v13  ;;  %v456_v53 = vrot.slane %v442_v19, %v5864_v18  ;;  %v457_v63 = vcombine.low %v434_v35, %v449_v34  ;;  %v458_v2 = vcombine.high %v434_v35, %v449_v34 }
 0x158   :  { %v2294_v4 = vsel %vm2198_vm3, %v1925_v17, %v2293_v52  ;;  %v5064_v36 = vsel %vm1169_vm0, %v5888_v41, -inf  ;;  %v5068_v42 = vsel %vm1169_vm0, %v5889_v46, -inf  ;;  %v5072_v51 = vsel %vm1169_vm0, %v5890_v39, -inf }
 0x159   :  { %v2295_v9 = vsel %vm2200_vm4, %v1932_v32, %v2294_v4  ;;  %v5076_v62 = vrot.slane %v457_v63, %v4235_v12  ;;  %v5079_v48 = vrot.slane %v458_v2, %v4235_v12  ;;  %v473_v10 = vcombine.low %v441_v37, %v456_v53 }
 0x15a   :  { %v2296_v47 = vsel %vm2202_vm5, %v1939_v33, %v2295_v9  ;;  %v474_v45 = vcombine.high %v441_v37, %v456_v53  ;;  %v2994_v49 = vrot.slane %v5064_v36, 4  ;;  %v3001_v55 = vrot.slane %v5068_v42, 4 }
 0x15b   :  { %5891 = vst [vmem:[#allocation19_spill] sm:$0xff] %v5076_v62  ;;  %5892 = vst [vmem:[#allocation11_spill] sm:$0xff] %v5079_v48  ;;  %v2297_v24 = vsel %vm2204_vm6, %v1946_v8, %v2296_v47  ;;  %v5086_v30 = vrot.slane %v473_v10, %v4235_v12  ;;  %v5090_v1 = vcombine.high %v5076_v62, %v5827_v56  ;;  %v1450_v26 = vsel %vm1169_vm0, %v5076_v62, 0.0 }
 0x15c   :  { %v5094_v27 = vcombine.high %v5079_v48, %v5827_v56  ;;  %v2298_v17 = vsel %vm2206_vm7, %v1953_v60, %v2297_v24  ;;  %v5098_v35 = vrot.slane %v474_v45, %v4235_v12  ;;  %v1464_v29 = vsel %vm1169_vm0, %v5079_v48, 0.0 }
 0x15d   :  { %5893 = vst [vmem:[#allocation20_spill] sm:$0xff] %v5086_v30  ;;  %5894 = vst [vmem:[#allocation24_spill] sm:$0xff] %v5090_v1  ;;  %3606 = vadd.xlane.f32.xlu1 %v2298_v17  ;;  %v5106_v5 = vcombine.high %v5086_v30, %v5827_v56  ;;  %v1451_v59 = vrot.slane %v1450_v26, 4  ;;  %v1457_v13 = vsel %vm1169_vm0, %v5090_v1, 0.0  ;;  %v1465_v37 = vrot.slane %v1464_v29, 4 }
 0x15e   :  { %5895 = vst [vmem:[#allocation21_spill] sm:$0xff] %v5094_v27  ;;  %5896 = vst [vmem:[#allocation25_spill] sm:$0xff] %v5098_v35  ;;  %v5112_v19 = vcombine.high %v5098_v35, %v5827_v56  ;;  %v1458_v34 = vrot.slane %v1457_v13, 4  ;;  %v1471_v32 = vsel %vm1169_vm0, %v5094_v27, 0.0  ;;  %v1478_v33 = vsel %vm1169_vm0, %v5086_v30, 0.0 }
 0x15f   :  { %5897 = vst [vmem:[#allocation22_spill] sm:$0xff] %v5106_v5  ;;  %v1452_v8 = vadd.f32 %v1451_v59, %v1450_v26  ;;  %v1466_v60 = vadd.f32 %v1465_v37, %v1464_v29  ;;  %v1472_v52 = vrot.slane %v1471_v32, 4  ;;  %v1479_v53 = vrot.slane %v1478_v33, 4 }
 0x160   :  { %5898 = vst [vmem:[#allocation28_spill] sm:$0xff] %v5112_v19  ;;  %v1459_v63 = vadd.f32 %v1458_v34, %v1457_v13  ;;  %v1485_v2 = vsel %vm1169_vm0, %v5106_v5, 0.0  ;;  %v1492_v4 = vsel %vm1169_vm0, %v5098_v35, 0.0  ;;  %v1499_v41 = vsel %vm1169_vm0, %v5112_v19, 0.0 }
 0x161   :  { %v1453_v46 = vrot.slane %v1452_v8, 2  ;;  %v1467_v39 = vrot.slane %v1466_v60, 2  ;;  %v1473_v9 = vadd.f32 %v1472_v52, %v1471_v32  ;;  %v1480_v10 = vadd.f32 %v1479_v53, %v1478_v33 }
 0x162   :  { %v1460_v47 = vrot.slane %v1459_v63, 2  ;;  %v1486_v45 = vrot.slane %v1485_v2, 4  ;;  %v1493_v24 = vrot.slane %v1492_v4, 4  ;;  %v1500_v17 = vrot.slane %v1499_v41, 4 }
 0x163   :  { %v1454_v26 = vadd.f32 %v1453_v46, %v1452_v8  ;;  %v1468_v29 = vadd.f32 %v1467_v39, %v1466_v60  ;;  %v1474_v59 = vrot.slane %v1473_v9, 2  ;;  %v1481_v13 = vrot.slane %v1480_v10, 2 }
 0x164   :  { %v1461_v37 = vadd.f32 %v1460_v47, %v1459_v63  ;;  %v1487_v34 = vadd.f32 %v1486_v45, %v1485_v2  ;;  %v1494_v5 = vadd.f32 %v1493_v24, %v1492_v4  ;;  %v1501_v30 = vadd.f32 %v1500_v17, %v1499_v41  ;;  %v5900_v17 = vld [vmem:[#allocation38_spill] sm:$0xff] }
 0x165   :  { %v1455_v35 = vrot.slane %v1454_v26, 1  ;;  %v1469_v27 = vrot.slane %v1468_v29, 1  ;;  %v1475_v48 = vadd.f32 %v1474_v59, %v1473_v9  ;;  %v1482_v19 = vadd.f32 %v1481_v13, %v1480_v10 }
 0x166   :  { %v1462_v1 = vrot.slane %v1461_v37, 1  ;;  %v1488_v62 = vrot.slane %v1487_v34, 2  ;;  %v1495_v32 = vrot.slane %v1494_v5, 2  ;;  %v1502_v33 = vrot.slane %v1501_v30, 2 }
 0x167   :  { %v1456_v52 = vadd.f32 %v1455_v35, %v1454_v26  ;;  %v1470_v53 = vadd.f32 %v1469_v27, %v1468_v29  ;;  %v1476_v22 = vrot.slane %v1475_v48, 1  ;;  %v1483_v28 = vrot.slane %v1482_v19, 1  ;;  %v5901_v29 = vld [vmem:[#allocation42_spill] sm:$0xff] }
 0x168   :  { %v1463_v8 = vadd.f32 %v1462_v1, %v1461_v37  ;;  %v1489_v60 = vadd.f32 %v1488_v62, %v1487_v34  ;;  %v1496_v46 = vadd.f32 %v1495_v32, %v1494_v5  ;;  %v1503_v39 = vadd.f32 %v1502_v33, %v1501_v30 }
 0x169   :  { %v1477_v63 = vadd.f32 %v1476_v22, %v1475_v48  ;;  %v1484_v2 = vadd.f32 %v1483_v28, %v1482_v19  ;;  %v2995_v4 = vmax.f32 %v5064_v36, %v2994_v49  ;;  %v3002_v41 = vmax.f32 %v5068_v42, %v3001_v55  ;;  %v5899_v55 = vld [vmem:[#allocation41_spill] sm:$0xff] }
 0x16a   :  { %v1490_v9 = vrot.slane %v1489_v60, 1  ;;  %v1497_v10 = vrot.slane %v1496_v46, 1  ;;  %v1504_v47 = vrot.slane %v1503_v39, 1  ;;  %v2236_v45 = vsel %vm2194_vm1, %v1463_v8, %v1456_v52 }
 0x16b   :  { %v2237_v35 = vsel %vm2196_vm2, %v1470_v53, %v2236_v45  ;;  %v2996_v27 = vrot.slane %v2995_v4, 2  ;;  %v3003_v24 = vrot.slane %v3002_v41, 2  ;;  %v3008_v1 = vrot.slane %v5072_v51, 4 }
 0x16c   :  { %v1491_v62 = vadd.f32 %v1490_v9, %v1489_v60  ;;  %v1498_v5 = vadd.f32 %v1497_v10, %v1496_v46  ;;  %v1505_v30 = vadd.f32 %v1504_v47, %v1503_v39  ;;  %v2238_v22 = vsel %vm2198_vm3, %v1477_v63, %v2237_v35  ;;  %v5902_v39 = vld [vmem:[#allocation39_spill] sm:$0xff] }
 0x16d   :  { %v2239_v28 = vsel %vm2200_vm4, %v1484_v2, %v2238_v22  ;;  %v2997_v36 = vmax.f32 %v2995_v4, %v2996_v27  ;;  %v3004_v42 = vmax.f32 %v3002_v41, %v3003_v24  ;;  %v3009_v48 = vmax.f32 %v5072_v51, %v3008_v1  ;;  %v5903_v47 = vld [vmem:[#allocation43_spill] sm:$0xff] }
 0x16e   :  { %v2240_v49 = vsel %vm2202_vm5, %v1491_v62, %v2239_v28  ;;  %v3014_v19 = vsel %vm1169_vm0, %v5899_v55, -inf  ;;  %v3021_v26 = vsel %vm1169_vm0, %v5900_v17, -inf  ;;  %v3028_v59 = vsel %vm1169_vm0, %v5901_v29, -inf }
 0x16f   :  { %v2241_v13 = vsel %vm2204_vm6, %v1498_v5, %v2240_v49  ;;  %v2998_v37 = vrot.slane %v2997_v36, 1  ;;  %v3005_v34 = vrot.slane %v3004_v42, 1  ;;  %v3010_v32 = vrot.slane %v3009_v48, 2 }
 0x170   :  { %v2242_v33 = vsel %vm2206_vm7, %v1505_v30, %v2241_v13  ;;  %v3015_v52 = vrot.slane %v3014_v19, 4  ;;  %v3022_v51 = vrot.slane %v3021_v26, 4  ;;  %v3029_v53 = vrot.slane %v3028_v59, 4 }
 0x171   :  { %3590 = vadd.xlane.f32.xlu0 %v2242_v33  ;;  %v2999_v8 = vmax.f32 %v2997_v36, %v2998_v37  ;;  %v3006_v60 = vmax.f32 %v3004_v42, %v3005_v34  ;;  %v3011_v46 = vmax.f32 %v3009_v48, %v3010_v32  ;;  %v3035_v63 = vsel %vm1169_vm0, %v5902_v39, -inf }
 0x172   :  { %v3016_v2 = vmax.f32 %v3014_v19, %v3015_v52  ;;  %v3023_v4 = vmax.f32 %v3021_v26, %v3022_v51  ;;  %v3030_v41 = vmax.f32 %v3028_v59, %v3029_v53  ;;  %v3036_v9 = vrot.slane %v3035_v63, 4 }
 0x173   :  { %v3012_v10 = vrot.slane %v3011_v46, 1  ;;  %v3042_v45 = vsel %vm1169_vm0, %v5903_v47, -inf  ;;  %v3478_v35 = vsel %vm2194_vm1, %v3006_v60, %v2999_v8  ;;  %v2545_v27 = vsel %vm1169_vm0, %v4648_v54, -inf }
 0x174   :  { %v3017_v24 = vrot.slane %v3016_v2, 2  ;;  %v3024_v1 = vrot.slane %v3023_v4, 2  ;;  %v3031_v62 = vrot.slane %v3030_v41, 2  ;;  %v3037_v5 = vmax.f32 %v3035_v63, %v3036_v9 }
 0x175   :  { %v3013_v30 = vmax.f32 %v3011_v46, %v3012_v10  ;;  %v3043_v22 = vrot.slane %v3042_v45, 4  ;;  %v2546_v28 = vrot.slane %v2545_v27, 4  ;;  %v2552_v36 = vsel %vm1169_vm0, %v4686_v20, -inf }
 0x176   :  { %v3018_v42 = vmax.f32 %v3016_v2, %v3017_v24  ;;  %v3025_v48 = vmax.f32 %v3023_v4, %v3024_v1  ;;  %v3032_v49 = vmax.f32 %v3030_v41, %v3031_v62  ;;  %v3038_v55 = vrot.slane %v3037_v5, 2 }
 0x177   :  { %v3044_v19 = vmax.f32 %v3042_v45, %v3043_v22  ;;  %v3479_v17 = vsel %vm2196_vm2, %v3013_v30, %v3478_v35  ;;  %v2547_v26 = vmax.f32 %v2545_v27, %v2546_v28  ;;  %v2553_v29 = vrot.slane %v2552_v36, 4 }
 0x178   :  { %v3019_v54 = vrot.slane %v3018_v42, 1  ;;  %v3026_v59 = vrot.slane %v3025_v48, 1  ;;  %v3033_v13 = vrot.slane %v3032_v49, 1  ;;  %v3039_v37 = vmax.f32 %v3037_v5, %v3038_v55 }
 0x179   :  { %v3045_v34 = vrot.slane %v3044_v19, 2  ;;  %v2548_v32 = vrot.slane %v2547_v26, 2  ;;  %v2554_v33 = vmax.f32 %v2552_v36, %v2553_v29  ;;  %v2559_v52 = vsel %vm1169_vm0, %v4651_v14, -inf }
 0x17a   :  { %v3020_v20 = vmax.f32 %v3018_v42, %v3019_v54  ;;  %v3027_v51 = vmax.f32 %v3025_v48, %v3026_v59  ;;  %v3034_v53 = vmax.f32 %v3032_v49, %v3033_v13  ;;  %v3040_v8 = vrot.slane %v3039_v37, 1  ;;  %v5904_v42 = vld [vmem:[#allocation45_spill] sm:$0xff] }
 0x17b   :  { %v3046_v60 = vmax.f32 %v3044_v19, %v3045_v34  ;;  %v2549_v46 = vmax.f32 %v2547_v26, %v2548_v32  ;;  %v2555_v39 = vrot.slane %v2554_v33, 2  ;;  %v2560_v63 = vrot.slane %v2559_v52, 4  ;;  %v5905_v19 = vld [vmem:[#allocation44_spill] sm:$0xff]  ;;  %v93_v13 = vld [vmem:[#allocation4 + $0xe0] sm:$0xff] }
 0x17c   :  { %v3041_v2 = vmax.f32 %v3039_v37, %v3040_v8  ;;  %v3480_v4 = vsel %vm2198_vm3, %v3020_v20, %v3479_v17  ;;  %v2566_v41 = vsel %vm1169_vm0, %v4690_v21, -inf  ;;  %v2573_v9 = vsel %vm1169_vm0, %v4674_v40, -inf  ;;  %v5906_v34 = vld [vmem:[#allocation46_spill] sm:$0xff] }
 0x17d   :  { %v3047_v10 = vrot.slane %v3046_v60, 1  ;;  %v3481_v14 = vsel %vm2200_vm4, %v3027_v51, %v3480_v4  ;;  %v2550_v47 = vrot.slane %v2549_v46, 1  ;;  %v2556_v45 = vmax.f32 %v2554_v33, %v2555_v39 }
 0x17e   :  { %v3482_v35 = vsel %vm2202_vm5, %v3034_v53, %v3481_v14  ;;  %v2561_v27 = vmax.f32 %v2559_v52, %v2560_v63  ;;  %v2567_v24 = vrot.slane %v2566_v41, 4  ;;  %v2574_v1 = vrot.slane %v2573_v9, 4 }
 0x17f   :  { %v3048_v62 = vmax.f32 %v3046_v60, %v3047_v10  ;;  %v3483_v5 = vsel %vm2204_vm6, %v3041_v2, %v3482_v35  ;;  %v2551_v30 = vmax.f32 %v2549_v46, %v2550_v47  ;;  %v2557_v22 = vrot.slane %v2556_v45, 1  ;;  %v94_v60 = vld [vmem:[#allocation4 + $0xe8] sm:$0xff] }
 0x180   :  { %v2562_v28 = vrot.slane %v2561_v27, 2  ;;  %v2568_v21 = vmax.f32 %v2566_v41, %v2567_v24  ;;  %v2575_v36 = vmax.f32 %v2573_v9, %v2574_v1  ;;  %v2580_v40 = vsel %vm1169_vm0, %v5904_v42, -inf }
 0x181   :  { %v3484_v48 = vsel %vm2206_vm7, %v3048_v62, %v3483_v5  ;;  %v2558_v49 = vmax.f32 %v2556_v45, %v2557_v22  ;;  %v2581_v55 = vrot.slane %v2580_v40, 4  ;;  %v2587_v17 = vsel %vm1169_vm0, %v5905_v19, -inf }
 0x182   :  { %3650 = vmax.xlane.f32.xlu1 %v3484_v48  ;;  %v2563_v26 = vmax.f32 %v2561_v27, %v2562_v28  ;;  %v2569_v29 = vrot.slane %v2568_v21, 2  ;;  %v2576_v54 = vrot.slane %v2575_v36, 2  ;;  %v2588_v59 = vrot.slane %v2587_v17, 4 }
 0x183   :  { %v2582_v37 = vmax.f32 %v2580_v40, %v2581_v55  ;;  %v2594_v32 = vsel %vm1169_vm0, %v5906_v34, -inf  ;;  %v3422_v33 = vsel %vm2194_vm1, %v2558_v49, %v2551_v30  ;;  %v1021_v52 = vcombine.high %v93_v13, %v5827_v56 }
 0x184   :  { %v2564_v20 = vrot.slane %v2563_v26, 1  ;;  %v2570_v51 = vmax.f32 %v2568_v21, %v2569_v29  ;;  %v2577_v53 = vmax.f32 %v2575_v36, %v2576_v54  ;;  %v2589_v8 = vmax.f32 %v2587_v17, %v2588_v59  ;;  %v5176_v21 = vld [vmem:[#allocation4 + $0x60] sm:$0xff] }
 0x185   :  { %v2583_v46 = vrot.slane %v2582_v37, 2  ;;  %v2595_v39 = vrot.slane %v2594_v32, 4  ;;  %v1028_v63 = vrot.slane %v93_v13, %v5864_v18  ;;  %v1035_v2 = vrot.slane %v1021_v52, %v5864_v18 }
 0x186   :  { %v2565_v4 = vmax.f32 %v2563_v26, %v2564_v20  ;;  %v2571_v41 = vrot.slane %v2570_v51, 1  ;;  %v2578_v9 = vrot.slane %v2577_v53, 1  ;;  %v2590_v10 = vrot.slane %v2589_v8, 2 }
 0x187   :  { %v2584_v14 = vmax.f32 %v2582_v37, %v2583_v46  ;;  %v2596_v47 = vmax.f32 %v2594_v32, %v2595_v39  ;;  %v1036_v45 = vcombine.high %v94_v60, %v5827_v56  ;;  %v1043_v35 = vrot.slane %v94_v60, %v5864_v18 }
 0x188   :  { %v2572_v27 = vmax.f32 %v2570_v51, %v2571_v41  ;;  %v2579_v24 = vmax.f32 %v2577_v53, %v2578_v9  ;;  %v2591_v1 = vmax.f32 %v2589_v8, %v2590_v10  ;;  %v3423_v62 = vsel %vm2196_vm2, %v2565_v4, %v3422_v33 }
 0x189   :  { %v2585_v5 = vrot.slane %v2584_v14, 1  ;;  %v2597_v30 = vrot.slane %v2596_v47, 2  ;;  %v1050_v22 = vrot.slane %v1036_v45, %v5864_v18  ;;  %v1051_v28 = vcombine.low %v1028_v63, %v1043_v35 }
 0x18a   :  { %v2592_v36 = vrot.slane %v2591_v1, 1  ;;  %v3424_v42 = vsel %vm2198_vm3, %v2572_v27, %v3423_v62  ;;  %v1052_v40 = vcombine.high %v1028_v63, %v1043_v35  ;;  %v5181_v48 = vcombine.high %v5176_v21, %v5827_v56 }
 0x18b   :  { %v2586_v49 = vmax.f32 %v2584_v14, %v2585_v5  ;;  %v2598_v55 = vmax.f32 %v2596_v47, %v2597_v30  ;;  %v3425_v19 = vsel %vm2200_vm4, %v2579_v24, %v3424_v42  ;;  %v5185_v17 = vrot.slane %v1051_v28, %v4235_v12 }
 0x18c   :  { %v2593_v26 = vmax.f32 %v2591_v1, %v2592_v36  ;;  %v5188_v29 = vrot.slane %v1052_v40, %v4235_v12  ;;  %v1067_v54 = vcombine.low %v1035_v2, %v1050_v22  ;;  %v1068_v59 = vcombine.high %v1035_v2, %v1050_v22 }
 0x18d   :  { %v2599_v13 = vrot.slane %v2598_v55, 1  ;;  %v3426_v37 = vsel %vm2202_vm5, %v2586_v49, %v3425_v19  ;;  %v5193_v34 = vcombine.high %v5185_v17, %v5827_v56  ;;  %v1954_v32 = vsel %vm1169_vm0, %v5185_v17, 0.0 }
 0x18e   :  { %v3427_v33 = vsel %vm2204_vm6, %v2593_v26, %v3426_v37  ;;  %v5199_v52 = vrot.slane %v1067_v54, %v4235_v12  ;;  %v5202_v20 = vrot.slane %v1068_v59, %v4235_v12  ;;  %v5206_v51 = vcombine.high %v5188_v29, %v5827_v56 }
 0x18f   :  { %v2600_v53 = vmax.f32 %v2598_v55, %v2599_v13  ;;  %v1955_v8 = vrot.slane %v1954_v32, 4  ;;  %v1961_v60 = vsel %vm1169_vm0, %v5193_v34, 0.0  ;;  %v1968_v46 = vsel %vm1169_vm0, %v5188_v29, 0.0 }
 0x190   :  { %v5214_v39 = vcombine.high %v5199_v52, %v5827_v56  ;;  %v5218_v63 = vcombine.high %v5202_v20, %v5827_v56  ;;  %v1962_v2 = vrot.slane %v1961_v60, 4  ;;  %v1969_v4 = vrot.slane %v1968_v46, 4 }
 0x191   :  { %v3428_v41 = vsel %vm2206_vm7, %v2600_v53, %v3427_v33  ;;  %v1956_v9 = vadd.f32 %v1955_v8, %v1954_v32  ;;  %v1975_v10 = vsel %vm1169_vm0, %v5206_v51, 0.0  ;;  %v1982_v14 = vsel %vm1169_vm0, %v5199_v52, 0.0 }
 0x192   :  { %3634 = vmax.xlane.f32.xlu0 %v3428_v41  ;;  %v1963_v47 = vadd.f32 %v1962_v2, %v1961_v60  ;;  %v1970_v45 = vadd.f32 %v1969_v4, %v1968_v46  ;;  %v1976_v35 = vrot.slane %v1975_v10, 4  ;;  %v1983_v27 = vrot.slane %v1982_v14, 4 }
 0x193   :  { %v1957_v24 = vrot.slane %v1956_v9, 2  ;;  %v1989_v1 = vsel %vm1169_vm0, %v5214_v39, 0.0  ;;  %v1996_v62 = vsel %vm1169_vm0, %v5202_v20, 0.0  ;;  %v2003_v5 = vsel %vm1169_vm0, %v5218_v63, 0.0 }
 0x194   :  { %v1964_v30 = vrot.slane %v1963_v47, 2  ;;  %v1971_v22 = vrot.slane %v1970_v45, 2  ;;  %v1977_v28 = vadd.f32 %v1976_v35, %v1975_v10  ;;  %v1984_v36 = vadd.f32 %v1983_v27, %v1982_v14 }
 0x195   :  { %v1958_v42 = vadd.f32 %v1957_v24, %v1956_v9  ;;  %v1990_v40 = vrot.slane %v1989_v1, 4  ;;  %v1997_v49 = vrot.slane %v1996_v62, 4  ;;  %v2004_v55 = vrot.slane %v2003_v5, 4 }
 0x196   :  { %v1965_v19 = vadd.f32 %v1964_v30, %v1963_v47  ;;  %v1972_v26 = vadd.f32 %v1971_v22, %v1970_v45  ;;  %v1978_v54 = vrot.slane %v1977_v28, 2  ;;  %v1985_v59 = vrot.slane %v1984_v36, 2  ;;  %v78_v30 = vld [vmem:[#allocation4 + $0x68] sm:$0xff] }
 0x197   :  { %v1959_v13 = vrot.slane %v1958_v42, 1  ;;  %v1991_v37 = vadd.f32 %v1990_v40, %v1989_v1  ;;  %v1998_v32 = vadd.f32 %v1997_v49, %v1996_v62  ;;  %v2005_v33 = vadd.f32 %v2004_v55, %v2003_v5 }
 0x198   :  { %v1966_v53 = vrot.slane %v1965_v19, 1  ;;  %v1973_v8 = vrot.slane %v1972_v26, 1  ;;  %v1979_v60 = vadd.f32 %v1978_v54, %v1977_v28  ;;  %v1986_v46 = vadd.f32 %v1985_v59, %v1984_v36 }
 0x199   :  { %v1960_v2 = vadd.f32 %v1959_v13, %v1958_v42  ;;  %v1992_v4 = vrot.slane %v1991_v37, 2  ;;  %v1999_v41 = vrot.slane %v1998_v32, 2  ;;  %v2006_v10 = vrot.slane %v2005_v33, 2 }
 0x19a   :  { %v1967_v9 = vadd.f32 %v1966_v53, %v1965_v19  ;;  %v1974_v14 = vadd.f32 %v1973_v8, %v1972_v26  ;;  %v1980_v35 = vrot.slane %v1979_v60, 1  ;;  %v1987_v27 = vrot.slane %v1986_v46, 1 }
 0x19b   :  { %v1993_v47 = vadd.f32 %v1992_v4, %v1991_v37  ;;  %v2000_v45 = vadd.f32 %v1999_v41, %v1998_v32  ;;  %v2007_v24 = vadd.f32 %v2006_v10, %v2005_v33  ;;  %v500_v1 = vrot.slane %v5176_v21, %v5864_v18 }
 0x19c   :  { %v1981_v62 = vadd.f32 %v1980_v35, %v1979_v60  ;;  %v1988_v5 = vadd.f32 %v1987_v27, %v1986_v46  ;;  %v2299_v22 = vsel %vm2194_vm1, %v1967_v9, %v1960_v2  ;;  %v507_v28 = vrot.slane %v5181_v48, %v5864_v18 }
 0x19d   :  { %v1994_v36 = vrot.slane %v1993_v47, 1  ;;  %v2001_v42 = vrot.slane %v2000_v45, 1  ;;  %v2008_v40 = vrot.slane %v2007_v24, 1  ;;  %v2300_v49 = vsel %vm2196_vm2, %v1974_v14, %v2299_v22 }
 0x19e   :  { %v2301_v55 = vsel %vm2198_vm3, %v1981_v62, %v2300_v49  ;;  %v508_v19 = vcombine.high %v78_v30, %v5827_v56  ;;  %v515_v26 = vrot.slane %v78_v30, %v5864_v18  ;;  %v3049_v21 = vsel %vm1169_vm0, %v4827_v50, -inf }
 0x19f   :  { %v1995_v54 = vadd.f32 %v1994_v36, %v1993_v47  ;;  %v2002_v59 = vadd.f32 %v2001_v42, %v2000_v45  ;;  %v2009_v13 = vadd.f32 %v2008_v40, %v2007_v24  ;;  %v2302_v37 = vsel %vm2200_vm4, %v1988_v5, %v2301_v55 }
 0x1a0   :  { %v522_v48 = vrot.slane %v508_v19, %v5864_v18  ;;  %v523_v32 = vcombine.low %v500_v1, %v515_v26  ;;  %v524_v33 = vcombine.high %v500_v1, %v515_v26  ;;  %v3050_v53 = vrot.slane %v3049_v21, 4 }
 0x1a1   :  { %v2303_v8 = vsel %vm2202_vm5, %v1995_v54, %v2302_v37  ;;  %v5247_v60 = vsel %vm1169_vm0, %v4846_v43, -inf  ;;  %v5251_v46 = vsel %vm1169_vm0, %v4830_v3, -inf  ;;  %v5255_v50 = vsel %vm1169_vm0, %v4850_v38, -inf }
 0x1a2   :  { %v2304_v2 = vsel %vm2204_vm6, %v2002_v59, %v2303_v8  ;;  %v5259_v4 = vrot.slane %v523_v32, %v4235_v12  ;;  %v5262_v41 = vrot.slane %v524_v33, %v4235_v12  ;;  %v539_v10 = vcombine.low %v507_v28, %v522_v48 }
 0x1a3   :  { %v2305_v43 = vsel %vm2206_vm7, %v2009_v13, %v2304_v2  ;;  %v540_v9 = vcombine.high %v507_v28, %v522_v48  ;;  %v3051_v14 = vmax.f32 %v3049_v21, %v3050_v53  ;;  %v3057_v3 = vrot.slane %v5247_v60, 4 }
 0x1a4   :  { %5907 = vst [vmem:[#allocation23_spill] sm:$0xff] %v5259_v4  ;;  %5908 = vst [vmem:[#allocation29_spill] sm:$0xff] %v5262_v41  ;;  %3608 = vadd.xlane.f32.xlu1 %v2305_v43  ;;  %v5267_v35 = vrot.slane %v539_v10, %v4235_v12  ;;  %v5271_v38 = vcombine.high %v5259_v4, %v5827_v56  ;;  %v5275_v27 = vcombine.high %v5262_v41, %v5827_v56  ;;  %vm3745_vm15 = vcmask 523712  }
 0x1a5   :  { %v1506_v47 = vsel %vm1169_vm0, %v5259_v4, 0.0  ;;  %v5280_v45 = vrot.slane %v540_v9, %v4235_v12  ;;  %v1520_v30 = vsel %vm1169_vm0, %v5262_v41, 0.0  ;;  %v3052_v1 = vrot.slane %v3051_v14, 2 }
 0x1a6   :  { %5909 = vst [vmem:[#allocation26_spill] sm:$0xff] %v5267_v35  ;;  %5910 = vst [vmem:[#allocation31_spill] sm:$0xff] %v5271_v38  ;;  %v1507_v24 = vrot.slane %v1506_v47, 4  ;;  %v5286_v62 = vcombine.high %v5267_v35, %v5827_v56  ;;  %v1513_v5 = vsel %vm1169_vm0, %v5271_v38, 0.0  ;;  %v1521_v22 = vrot.slane %v1520_v30, 4 }
 0x1a7   :  { %5911 = vst [vmem:[#allocation27_spill] sm:$0xff] %v5275_v27  ;;  %5912 = vst [vmem:[#allocation33_spill] sm:$0xff] %v5280_v45  ;;  %v1527_v28 = vsel %vm1169_vm0, %v5275_v27, 0.0  ;;  %v5294_v36 = vcombine.high %v5280_v45, %v5827_v56  ;;  %v1514_v40 = vrot.slane %v1513_v5, 4  ;;  %v1534_v19 = vsel %vm1169_vm0, %v5267_v35, 0.0 }
 0x1a8   :  { %5913 = vst [vmem:[#allocation30_spill] sm:$0xff] %v5286_v62  ;;  %v1508_v42 = vadd.f32 %v1507_v24, %v1506_v47  ;;  %v1528_v49 = vrot.slane %v1527_v28, 4  ;;  %v1522_v55 = vadd.f32 %v1521_v22, %v1520_v30  ;;  %v1541_v26 = vsel %vm1169_vm0, %v5286_v62, 0.0 }
 0x1a9   :  { %5914 = vst [vmem:[#allocation34_spill] sm:$0xff] %v5294_v36  ;;  %v1548_v21 = vsel %vm1169_vm0, %v5280_v45, 0.0  ;;  %v1515_v59 = vadd.f32 %v1514_v40, %v1513_v5  ;;  %v1535_v37 = vrot.slane %v1534_v19, 4  ;;  %v1542_v32 = vrot.slane %v1541_v26, 4 }
 0x1aa   :  { %v1509_v54 = vrot.slane %v1508_v42, 2  ;;  %v1529_v13 = vadd.f32 %v1528_v49, %v1527_v28  ;;  %v1523_v48 = vrot.slane %v1522_v55, 2  ;;  %v1549_v33 = vrot.slane %v1548_v21, 4 }
 0x1ab   :  { %v1555_v53 = vsel %vm1169_vm0, %v5294_v36, 0.0  ;;  %v1516_v2 = vrot.slane %v1515_v59, 2  ;;  %v1536_v43 = vadd.f32 %v1535_v37, %v1534_v19  ;;  %v1543_v47 = vadd.f32 %v1542_v32, %v1541_v26 }
 0x1ac   :  { %v1510_v8 = vadd.f32 %v1509_v54, %v1508_v42  ;;  %v1530_v10 = vrot.slane %v1529_v13, 2  ;;  %v1524_v9 = vadd.f32 %v1523_v48, %v1522_v55  ;;  %v1550_v24 = vadd.f32 %v1549_v33, %v1548_v21 }
 0x1ad   :  { %v1556_v30 = vrot.slane %v1555_v53, 4  ;;  %v1517_v45 = vadd.f32 %v1516_v2, %v1515_v59  ;;  %v1537_v5 = vrot.slane %v1536_v43, 2  ;;  %v1544_v40 = vrot.slane %v1543_v47, 2 }
 0x1ae   :  { %v1511_v22 = vrot.slane %v1510_v8, 1  ;;  %v1531_v62 = vadd.f32 %v1530_v10, %v1529_v13  ;;  %v1525_v28 = vrot.slane %v1524_v9, 1  ;;  %v1551_v49 = vrot.slane %v1550_v24, 2 }
 0x1af   :  { %v1557_v35 = vadd.f32 %v1556_v30, %v1555_v53  ;;  %v1518_v41 = vrot.slane %v1517_v45, 1  ;;  %v1538_v36 = vadd.f32 %v1537_v5, %v1536_v43  ;;  %v1545_v54 = vadd.f32 %v1544_v40, %v1543_v47 }
 0x1b0   :  { %v1512_v27 = vadd.f32 %v1511_v22, %v1510_v8  ;;  %v1532_v38 = vrot.slane %v1531_v62, 1  ;;  %v1526_v42 = vadd.f32 %v1525_v28, %v1524_v9  ;;  %v1552_v4 = vadd.f32 %v1551_v49, %v1550_v24 }
 0x1b1   :  { %v1558_v19 = vrot.slane %v1557_v35, 2  ;;  %v1519_v55 = vadd.f32 %v1518_v41, %v1517_v45  ;;  %v1539_v21 = vrot.slane %v1538_v36, 1  ;;  %v3053_v37 = vmax.f32 %v3051_v14, %v3052_v1 }
 0x1b2   :  { %v1533_v26 = vadd.f32 %v1532_v38, %v1531_v62  ;;  %v1546_v48 = vrot.slane %v1545_v54, 1  ;;  %v1553_v59 = vrot.slane %v1552_v4, 1  ;;  %v3058_v32 = vmax.f32 %v5247_v60, %v3057_v3 }
 0x1b3   :  { %v1559_v13 = vadd.f32 %v1558_v19, %v1557_v35  ;;  %v1540_v33 = vadd.f32 %v1539_v21, %v1538_v36  ;;  %v2243_v53 = vsel %vm2194_vm1, %v1519_v55, %v1512_v27  ;;  %v3054_v8 = vrot.slane %v3053_v37, 1 }
 0x1b4   :  { %v3064_v2 = vrot.slane %v5251_v46, 4  ;;  %v1547_v10 = vadd.f32 %v1546_v48, %v1545_v54  ;;  %v1554_v43 = vadd.f32 %v1553_v59, %v1552_v4  ;;  %v2244_v47 = vsel %vm2196_vm2, %v1526_v42, %v2243_v53 }
 0x1b5   :  { %v1560_v9 = vrot.slane %v1559_v13, 1  ;;  %v2245_v41 = vsel %vm2198_vm3, %v1533_v26, %v2244_v47  ;;  %v3055_v38 = vmax.f32 %v3053_v37, %v3054_v8  ;;  %v3059_v14 = vrot.slane %v3058_v32, 2 }
 0x1b6   :  { %v3065_v45 = vmax.f32 %v5251_v46, %v3064_v2  ;;  %v2246_v60 = vsel %vm2200_vm4, %v1540_v33, %v2245_v41  ;;  %v3071_v3 = vrot.slane %v5255_v50, 4  ;;  %v3077_v27 = vsel %vm1169_vm0, %v4836_v6, -inf }
 0x1b7   :  { %v1561_v35 = vadd.f32 %v1560_v9, %v1559_v13  ;;  %v2247_v1 = vsel %vm2202_vm5, %v1547_v10, %v2246_v60  ;;  %v3060_v4 = vmax.f32 %v3058_v32, %v3059_v14  ;;  %v3078_v36 = vrot.slane %v3077_v27, 4 }
 0x1b8   :  { %v3066_v62 = vrot.slane %v3065_v45, 2  ;;  %v2248_v24 = vsel %vm2204_vm6, %v1554_v43, %v2247_v1  ;;  %v3072_v30 = vmax.f32 %v5255_v50, %v3071_v3  ;;  %v3084_v46 = vsel %vm1169_vm0, %v4859_v61, -inf }
 0x1b9   :  { %v3091_v22 = vsel %vm1169_vm0, %v4839_v44, -inf  ;;  %v2249_v5 = vsel %vm2206_vm7, %v1561_v35, %v2248_v24  ;;  %v3061_v28 = vrot.slane %v3060_v4, 1  ;;  %v3079_v6 = vmax.f32 %v3077_v27, %v3078_v36 }
 0x1ba   :  { %v3067_v40 = vmax.f32 %v3065_v45, %v3066_v62  ;;  %3592 = vadd.xlane.f32.xlu0 %v2249_v5  ;;  %v3073_v49 = vrot.slane %v3072_v30, 2  ;;  %v3085_v42 = vrot.slane %v3084_v46, 4  ;;  %v3092_v54 = vrot.slane %v3091_v22, 4 }
 0x1bb   :  { %v3098_v19 = vsel %vm1169_vm0, %v4863_v16, -inf  ;;  %v3062_v55 = vmax.f32 %v3060_v4, %v3061_v28  ;;  %v3080_v26 = vrot.slane %v3079_v6, 2  ;;  %v2601_v44 = vsel %vm1169_vm0, %v4894_v58, -inf }
 0x1bc   :  { %v3068_v50 = vrot.slane %v3067_v40, 1  ;;  %v3099_v21 = vrot.slane %v3098_v19, 4  ;;  %v3074_v61 = vmax.f32 %v3072_v30, %v3073_v49  ;;  %v3086_v37 = vmax.f32 %v3084_v46, %v3085_v42 }
 0x1bd   :  { %v3093_v48 = vmax.f32 %v3091_v22, %v3092_v54  ;;  %v3081_v13 = vmax.f32 %v3079_v6, %v3080_v26  ;;  %v3485_v33 = vsel %vm2194_vm1, %v3062_v55, %v3055_v38  ;;  %v2602_v10 = vrot.slane %v2601_v44, 4 }
 0x1be   :  { %v3069_v59 = vmax.f32 %v3067_v40, %v3068_v50  ;;  %v3100_v32 = vmax.f32 %v3098_v19, %v3099_v21  ;;  %v3075_v53 = vrot.slane %v3074_v61, 1  ;;  %v3087_v8 = vrot.slane %v3086_v37, 2 }
 0x1bf   :  { %v3094_v2 = vrot.slane %v3093_v48, 2  ;;  %v3082_v16 = vrot.slane %v3081_v13, 1  ;;  %v2608_v47 = vsel %vm1169_vm0, %v4913_v15, -inf  ;;  %v2603_v58 = vmax.f32 %v2601_v44, %v2602_v10 }
 0x1c0   :  { %v3101_v43 = vrot.slane %v3100_v32, 2  ;;  %v3486_v9 = vsel %vm2196_vm2, %v3069_v59, %v3485_v33  ;;  %v3076_v41 = vmax.f32 %v3074_v61, %v3075_v53  ;;  %v3088_v14 = vmax.f32 %v3086_v37, %v3087_v8 }
 0x1c1   :  { %v3095_v45 = vmax.f32 %v3093_v48, %v3094_v2  ;;  %v3083_v35 = vmax.f32 %v3081_v13, %v3082_v16  ;;  %v2609_v3 = vrot.slane %v2608_v47, 4  ;;  %v2615_v38 = vsel %vm1169_vm0, %v4897_v31, -inf }
 0x1c2   :  { %v3102_v60 = vmax.f32 %v3100_v32, %v3101_v43  ;;  %v3089_v27 = vrot.slane %v3088_v14, 1  ;;  %v3487_v4 = vsel %vm2198_vm3, %v3076_v41, %v3486_v9  ;;  %v2604_v62 = vrot.slane %v2603_v58, 2  ;;  %v95_v9 = vld [vmem:[#allocation4 + $0xf0] sm:$0xff] }
 0x1c3   :  { %v3096_v1 = vrot.slane %v3095_v45, 1  ;;  %v3488_v24 = vsel %vm2200_vm4, %v3083_v35, %v3487_v4  ;;  %v2610_v30 = vmax.f32 %v2608_v47, %v2609_v3  ;;  %v2616_v15 = vrot.slane %v2615_v38, 4 }
 0x1c4   :  { %v3103_v36 = vrot.slane %v3102_v60, 1  ;;  %v3090_v46 = vmax.f32 %v3088_v14, %v3089_v27  ;;  %v2605_v5 = vmax.f32 %v2603_v58, %v2604_v62  ;;  %v2622_v28 = vsel %vm1169_vm0, %v4917_v25, -inf }
 0x1c5   :  { %v3097_v22 = vmax.f32 %v3095_v45, %v3096_v1  ;;  %v2611_v6 = vrot.slane %v2610_v30, 2  ;;  %v2617_v49 = vmax.f32 %v2615_v38, %v2616_v15  ;;  %v2623_v31 = vrot.slane %v2622_v28, 4  ;;  %v96_v1 = vld [vmem:[#allocation4 + $0xf8] sm:$0xff] }
 0x1c6   :  { %v3104_v40 = vmax.f32 %v3102_v60, %v3103_v36  ;;  %v3489_v42 = vsel %vm2202_vm5, %v3090_v46, %v3488_v24  ;;  %v2606_v54 = vrot.slane %v2605_v5, 1  ;;  %v2629_v19 = vsel %vm1169_vm0, %v4900_v57, -inf }
 0x1c7   :  { %v2636_v55 = vsel %vm1169_vm0, %v4921_v0, -inf  ;;  %v3490_v50 = vsel %vm2204_vm6, %v3097_v22, %v3489_v42  ;;  %v2612_v26 = vmax.f32 %v2610_v30, %v2611_v6  ;;  %v2618_v21 = vrot.slane %v2617_v49, 2 }
 0x1c8   :  { %v2624_v61 = vmax.f32 %v2622_v28, %v2623_v31  ;;  %v3491_v25 = vsel %vm2206_vm7, %v3104_v40, %v3490_v50  ;;  %v2607_v37 = vmax.f32 %v2605_v5, %v2606_v54  ;;  %v2630_v48 = vrot.slane %v2629_v19, 4  ;;  %v79_v5 = vld [vmem:[#allocation4 + $0x70] sm:$0xff] }
 0x1c9   :  { %v2637_v44 = vrot.slane %v2636_v55, 4  ;;  %3652 = vmax.xlane.f32.xlu1 %v3491_v25  ;;  %v2613_v59 = vrot.slane %v2612_v26, 1  ;;  %v2619_v13 = vmax.f32 %v2617_v49, %v2618_v21  ;;  %v2643_v57 = vsel %vm1169_vm0, %v4904_v11, -inf }
 0x1ca   :  { %v2625_v32 = vrot.slane %v2624_v61, 2  ;;  %v2631_v33 = vmax.f32 %v2629_v19, %v2630_v48  ;;  %v2644_v0 = vrot.slane %v2643_v57, 4  ;;  %v2650_v8 = vsel %vm1169_vm0, %v4925_v23, -inf }
 0x1cb   :  { %v2638_v53 = vmax.f32 %v2636_v55, %v2637_v44  ;;  %v2614_v2 = vmax.f32 %v2612_v26, %v2613_v59  ;;  %v2620_v10 = vrot.slane %v2619_v13, 1  ;;  %v2651_v43 = vrot.slane %v2650_v8, 4 }
 0x1cc   :  { %v2626_v16 = vmax.f32 %v2624_v61, %v2625_v32  ;;  %v2632_v47 = vrot.slane %v2631_v33, 2  ;;  %v2645_v14 = vmax.f32 %v2643_v57, %v2644_v0  ;;  %v1087_v45 = vcombine.high %v95_v9, %v5827_v56 }
 0x1cd   :  { %v2639_v41 = vrot.slane %v2638_v53, 2  ;;  %v2621_v58 = vmax.f32 %v2619_v13, %v2620_v10  ;;  %v2652_v60 = vmax.f32 %v2650_v8, %v2651_v43  ;;  %v3429_v11 = vsel %vm2194_vm1, %v2614_v2, %v2607_v37 }
 0x1ce   :  { %v2627_v35 = vrot.slane %v2626_v16, 1  ;;  %v2633_v3 = vmax.f32 %v2631_v33, %v2632_v47  ;;  %v2646_v27 = vrot.slane %v2645_v14, 2  ;;  %v1094_v23 = vrot.slane %v95_v9, %v5864_v18 }
 0x1cf   :  { %v2640_v38 = vmax.f32 %v2638_v53, %v2639_v41  ;;  %v2653_v62 = vrot.slane %v2652_v60, 2  ;;  %v3430_v36 = vsel %vm2196_vm2, %v2621_v58, %v3429_v11  ;;  %v1101_v24 = vrot.slane %v1087_v45, %v5864_v18 }
 0x1d0   :  { %v2628_v4 = vmax.f32 %v2626_v16, %v2627_v35  ;;  %v2634_v30 = vrot.slane %v2633_v3, 1  ;;  %v2647_v46 = vmax.f32 %v2645_v14, %v2646_v27  ;;  %v1102_v22 = vcombine.high %v96_v1, %v5827_v56 }
 0x1d1   :  { %v2641_v15 = vrot.slane %v2640_v38, 1  ;;  %v2654_v28 = vmax.f32 %v2652_v60, %v2653_v62  ;;  %v1109_v6 = vrot.slane %v96_v1, %v5864_v18  ;;  %v559_v49 = vcombine.high %v79_v5, %v5827_v56 }
 0x1d2   :  { %v3431_v40 = vsel %vm2198_vm3, %v2628_v4, %v3430_v36  ;;  %v2635_v31 = vmax.f32 %v2633_v3, %v2634_v30  ;;  %v2648_v54 = vrot.slane %v2647_v46, 1  ;;  %v1116_v19 = vrot.slane %v1102_v22, %v5864_v18 }
 0x1d3   :  { %v2642_v42 = vmax.f32 %v2640_v38, %v2641_v15  ;;  %v2655_v55 = vrot.slane %v2654_v28, 1  ;;  %v1117_v50 = vcombine.low %v1094_v23, %v1109_v6  ;;  %v1118_v26 = vcombine.high %v1094_v23, %v1109_v6 }
 0x1d4   :  { %v5358_v21 = vrot.slane %v79_v5, %v5864_v18  ;;  %v2649_v61 = vmax.f32 %v2647_v46, %v2648_v54  ;;  %v3432_v25 = vsel %vm2200_vm4, %v2635_v31, %v3431_v40  ;;  %v1133_v37 = vcombine.low %v1101_v24, %v1116_v19 }
 0x1d5   :  { %v1134_v48 = vcombine.high %v1101_v24, %v1116_v19  ;;  %v2656_v44 = vmax.f32 %v2654_v28, %v2655_v55  ;;  %v3433_v59 = vsel %vm2202_vm5, %v2642_v42, %v3432_v25  ;;  %v5363_v13 = vrot.slane %v1117_v50, %v4235_v12 }
 0x1d6   :  { %v5366_v32 = vrot.slane %v1118_v26, %v4235_v12  ;;  %v3434_v57 = vsel %vm2204_vm6, %v2649_v61, %v3433_v59  ;;  %v5370_v33 = vrot.slane %v1133_v37, %v4235_v12  ;;  %v5376_v0 = vrot.slane %v559_v49, %v5864_v18 }
 0x1d7   :  { %v5373_v53 = vrot.slane %v1134_v48, %v4235_v12  ;;  %v3435_v8 = vsel %vm2206_vm7, %v2656_v44, %v3434_v57  ;;  %v5381_v2 = vcombine.high %v5363_v13, %v5827_v56  ;;  %v2010_v16 = vsel %vm1169_vm0, %v5363_v13, 0.0 }
 0x1d8   :  { %v5385_v10 = vcombine.high %v5366_v32, %v5827_v56  ;;  %3636 = vmax.xlane.f32.xlu0 %v3435_v8  ;;  %v5391_v43 = vcombine.high %v5370_v33, %v5827_v56  ;;  %v2011_v47 = vrot.slane %v2010_v16, 4  ;;  %v2024_v41 = vsel %vm1169_vm0, %v5366_v32, 0.0 }
 0x1d9   :  { %v5395_v9 = vcombine.high %v5373_v53, %v5827_v56  ;;  %v2017_v14 = vsel %vm1169_vm0, %v5381_v2, 0.0  ;;  %v2025_v45 = vrot.slane %v2024_v41, 4  ;;  %v2038_v35 = vsel %vm1169_vm0, %v5370_v33, 0.0 }
 0x1da   :  { %v2031_v58 = vsel %vm1169_vm0, %v5385_v10, 0.0  ;;  %v2012_v60 = vadd.f32 %v2011_v47, %v2010_v16  ;;  %v2018_v11 = vrot.slane %v2017_v14, 4  ;;  %v2039_v38 = vrot.slane %v2038_v35, 4  ;;  %v80_v47 = vld [vmem:[#allocation4 + $0x78] sm:$0xff] }
 0x1db   :  { %v2032_v3 = vrot.slane %v2031_v58, 4  ;;  %v2026_v27 = vadd.f32 %v2025_v45, %v2024_v41  ;;  %v2045_v1 = vsel %vm1169_vm0, %v5391_v43, 0.0  ;;  %v2052_v23 = vsel %vm1169_vm0, %v5373_v53, 0.0 }
 0x1dc   :  { %v2059_v4 = vsel %vm1169_vm0, %v5395_v9, 0.0  ;;  %v2013_v62 = vrot.slane %v2012_v60, 2  ;;  %v2019_v36 = vadd.f32 %v2018_v11, %v2017_v14  ;;  %v2040_v30 = vadd.f32 %v2039_v38, %v2038_v35 }
 0x1dd   :  { %v2033_v24 = vadd.f32 %v2032_v3, %v2031_v58  ;;  %v2027_v15 = vrot.slane %v2026_v27, 2  ;;  %v2046_v46 = vrot.slane %v2045_v1, 4  ;;  %v2053_v22 = vrot.slane %v2052_v23, 4 }
 0x1de   :  { %v2060_v5 = vrot.slane %v2059_v4, 4  ;;  %v2014_v28 = vadd.f32 %v2013_v62, %v2012_v60  ;;  %v2020_v40 = vrot.slane %v2019_v36, 2  ;;  %v2041_v49 = vrot.slane %v2040_v30, 2 }
 0x1df   :  { %v2034_v6 = vrot.slane %v2033_v24, 2  ;;  %v2028_v31 = vadd.f32 %v2027_v15, %v2026_v27  ;;  %v2047_v42 = vadd.f32 %v2046_v46, %v2045_v1  ;;  %v2054_v54 = vadd.f32 %v2053_v22, %v2052_v23 }
 0x1e0   :  { %v2061_v19 = vadd.f32 %v2060_v5, %v2059_v4  ;;  %v2015_v55 = vrot.slane %v2014_v28, 1  ;;  %v2021_v50 = vadd.f32 %v2020_v40, %v2019_v36  ;;  %v2042_v61 = vadd.f32 %v2041_v49, %v2040_v30 }
 0x1e1   :  { %v2035_v26 = vadd.f32 %v2034_v6, %v2033_v24  ;;  %v2029_v25 = vrot.slane %v2028_v31, 1  ;;  %v2048_v37 = vrot.slane %v2047_v42, 2  ;;  %v2055_v48 = vrot.slane %v2054_v54, 2  ;;  %v5915_v24 = vld [vmem:[#allocation17_spill] sm:$0xff] }
 0x1e2   :  { %v2062_v44 = vrot.slane %v2061_v19, 2  ;;  %v2016_v59 = vadd.f32 %v2015_v55, %v2014_v28  ;;  %v2022_v57 = vrot.slane %v2021_v50, 1  ;;  %v2043_v16 = vrot.slane %v2042_v61, 1 }
 0x1e3   :  { %v2036_v8 = vrot.slane %v2035_v26, 1  ;;  %v2030_v41 = vadd.f32 %v2029_v25, %v2028_v31  ;;  %v2049_v14 = vadd.f32 %v2048_v37, %v2047_v42  ;;  %v2056_v45 = vadd.f32 %v2055_v48, %v2054_v54 }
 0x1e4   :  { %v2063_v58 = vadd.f32 %v2062_v44, %v2061_v19  ;;  %v2023_v35 = vadd.f32 %v2022_v57, %v2021_v50  ;;  %v2044_v11 = vadd.f32 %v2043_v16, %v2042_v61  ;;  %v574_v3 = vcombine.high %v80_v47, %v5827_v56 }
 0x1e5   :  { %v2037_v60 = vadd.f32 %v2036_v8, %v2035_v26  ;;  %v2050_v38 = vrot.slane %v2049_v14, 1  ;;  %v2057_v27 = vrot.slane %v2056_v45, 1  ;;  %v581_v23 = vrot.slane %v80_v47, %v5864_v18 }
 0x1e6   :  { %v2064_v1 = vrot.slane %v2063_v58, 1  ;;  %v2306_v4 = vsel %vm2194_vm1, %v2023_v35, %v2016_v59  ;;  %v588_v62 = vrot.slane %v574_v3, %v5864_v18  ;;  %v3105_v36 = vsel %vm1169_vm0, %v5006_v7, -inf }
 0x1e7   :  { %v3112_v30 = vsel %vm1169_vm0, %v5915_v24, -inf  ;;  %v2051_v15 = vadd.f32 %v2050_v38, %v2049_v14  ;;  %v2058_v46 = vadd.f32 %v2057_v27, %v2056_v45  ;;  %v2307_v5 = vsel %vm2196_vm2, %v2030_v41, %v2306_v4 }
 0x1e8   :  { %v2065_v22 = vadd.f32 %v2064_v1, %v2063_v58  ;;  %v2308_v28 = vsel %vm2198_vm3, %v2037_v60, %v2307_v5  ;;  %v589_v40 = vcombine.low %v5358_v21, %v581_v23  ;;  %v590_v6 = vcombine.high %v5358_v21, %v581_v23 }
 0x1e9   :  { %v605_v49 = vcombine.low %v5376_v0, %v588_v62  ;;  %v2309_v18 = vsel %vm2200_vm4, %v2044_v11, %v2308_v28  ;;  %v606_v7 = vcombine.high %v5376_v0, %v588_v62  ;;  %v3106_v31 = vrot.slane %v3105_v36, 4 }
 0x1ea   :  { %v3113_v42 = vrot.slane %v3112_v30, 4  ;;  %v2310_v54 = vsel %vm2202_vm5, %v2051_v15, %v2309_v18  ;;  %v5428_v19 = vrot.slane %v589_v40, %v4235_v12  ;;  %v5431_v55 = vrot.slane %v590_v6, %v4235_v12 }
 0x1eb   :  { %v5434_v50 = vrot.slane %v605_v49, %v4235_v12  ;;  %v2311_v21 = vsel %vm2204_vm6, %v2058_v46, %v2310_v54  ;;  %v5438_v26 = vrot.slane %v606_v7, %v4235_v12  ;;  %v5440_v61 = vmax.f32 %v3105_v36, %v3106_v31 }
 0x1ec   :  { %v5442_v0 = vmax.f32 %v3112_v30, %v3113_v42  ;;  %v2312_v25 = vsel %vm2206_vm7, %v2065_v22, %v2311_v21  ;;  %v5447_v37 = vcombine.high %v5428_v19, %v5827_v56  ;;  %v5451_v48 = vcombine.high %v5431_v55, %v5827_v56 }
 0x1ed   :  { %v5455_v44 = vcombine.high %v5434_v50, %v5827_v56  ;;  %3610 = vadd.xlane.f32.xlu1 %v2312_v25  ;;  %v5459_v12 = vcombine.high %v5438_v26, %v5827_v56  ;;  %v1562_v59 = vsel %vm1169_vm0, %v5428_v19, 0.0  ;;  %v1576_v57 = vsel %vm1169_vm0, %v5431_v55, 0.0 }
 0x1ee   :  { %v1590_v8 = vsel %vm1169_vm0, %v5434_v50, 0.0  ;;  %v1563_v16 = vrot.slane %v1562_v59, 4  ;;  %v1569_v47 = vsel %vm1169_vm0, %v5447_v37, 0.0  ;;  %v1577_v41 = vrot.slane %v1576_v57, 4 }
 0x1ef   :  { %v1583_v14 = vsel %vm1169_vm0, %v5451_v48, 0.0  ;;  %v1570_v45 = vrot.slane %v1569_v47, 4  ;;  %v1591_v35 = vrot.slane %v1590_v8, 4  ;;  %v1597_v60 = vsel %vm1169_vm0, %v5455_v44, 0.0 }
 0x1f0   :  { %v1584_v58 = vrot.slane %v1583_v14, 4  ;;  %v1564_v11 = vadd.f32 %v1563_v16, %v1562_v59  ;;  %v1578_v3 = vadd.f32 %v1577_v41, %v1576_v57  ;;  %v1598_v38 = vrot.slane %v1597_v60, 4 }
 0x1f1   :  { %v1604_v27 = vsel %vm1169_vm0, %v5438_v26, 0.0  ;;  %v1571_v1 = vadd.f32 %v1570_v45, %v1569_v47  ;;  %v1592_v4 = vadd.f32 %v1591_v35, %v1590_v8  ;;  %v1611_v15 = vsel %vm1169_vm0, %v5459_v12, 0.0 }
 0x1f2   :  { %v1585_v23 = vadd.f32 %v1584_v58, %v1583_v14  ;;  %v1605_v62 = vrot.slane %v1604_v27, 4  ;;  %v1565_v36 = vrot.slane %v1564_v11, 2  ;;  %v1579_v24 = vrot.slane %v1578_v3, 2 }
 0x1f3   :  { %v1599_v30 = vadd.f32 %v1598_v38, %v1597_v60  ;;  %v1572_v46 = vrot.slane %v1571_v1, 2  ;;  %v1593_v5 = vrot.slane %v1592_v4, 2  ;;  %v1612_v18 = vrot.slane %v1611_v15, 4 }
 0x1f4   :  { %v1586_v22 = vrot.slane %v1585_v23, 2  ;;  %v1606_v28 = vadd.f32 %v1605_v62, %v1604_v27  ;;  %v1566_v40 = vadd.f32 %v1565_v36, %v1564_v11  ;;  %v1580_v6 = vadd.f32 %v1579_v24, %v1578_v3  ;;  %v5916_v24 = vld [vmem:[#allocation12_spill] sm:$0xff] }
 0x1f5   :  { %v1600_v49 = vrot.slane %v1599_v30, 2  ;;  %v1573_v7 = vadd.f32 %v1572_v46, %v1571_v1  ;;  %v1594_v42 = vadd.f32 %v1593_v5, %v1592_v4  ;;  %v1613_v57 = vadd.f32 %v1612_v18, %v1611_v15  ;;  %v5917_v15 = vld [vmem:[#allocation14_spill] sm:$0xff] }
 0x1f6   :  { %v1587_v31 = vadd.f32 %v1586_v22, %v1585_v23  ;;  %v1607_v54 = vrot.slane %v1606_v28, 2  ;;  %v1567_v21 = vrot.slane %v1566_v40, 1  ;;  %v1581_v25 = vrot.slane %v1580_v6, 1 }
 0x1f7   :  { %v1601_v59 = vadd.f32 %v1600_v49, %v1599_v30  ;;  %v1574_v8 = vrot.slane %v1573_v7, 1  ;;  %v1595_v47 = vrot.slane %v1594_v42, 1  ;;  %v1614_v35 = vrot.slane %v1613_v57, 2 }
 0x1f8   :  { %v1588_v16 = vrot.slane %v1587_v31, 1  ;;  %v1608_v41 = vadd.f32 %v1607_v54, %v1606_v28  ;;  %v1568_v14 = vadd.f32 %v1567_v21, %v1566_v40  ;;  %v1582_v45 = vadd.f32 %v1581_v25, %v1580_v6 }
 0x1f9   :  { %v1602_v58 = vrot.slane %v1601_v59, 1  ;;  %v1575_v60 = vadd.f32 %v1574_v8, %v1573_v7  ;;  %v1596_v3 = vadd.f32 %v1595_v47, %v1594_v42  ;;  %v1615_v1 = vadd.f32 %v1614_v35, %v1613_v57  ;;  %v5918_v7 = vld [vmem:[#allocation16_spill] sm:$0xff] }
 0x1fa   :  { %v1589_v11 = vadd.f32 %v1588_v16, %v1587_v31  ;;  %v1609_v38 = vrot.slane %v1608_v41, 1  ;;  %v3108_v23 = vrot.slane %v5440_v61, 2  ;;  %v3115_v4 = vrot.slane %v5442_v0, 2 }
 0x1fb   :  { %v1603_v27 = vadd.f32 %v1602_v58, %v1601_v59  ;;  %v2250_v36 = vsel %vm2194_vm1, %v1575_v60, %v1568_v14  ;;  %v3119_v30 = vsel %vm1169_vm0, %v5916_v24, -inf  ;;  %v3126_v46 = vsel %vm1169_vm0, %v5917_v15, -inf }
 0x1fc   :  { %v1610_v62 = vadd.f32 %v1609_v38, %v1608_v41  ;;  %v1616_v22 = vrot.slane %v1615_v1, 1  ;;  %v2251_v5 = vsel %vm2196_vm2, %v1582_v45, %v2250_v36  ;;  %v3109_v28 = vmax.f32 %v5440_v61, %v3108_v23  ;;  %v5919_v41 = vld [vmem:[#allocation18_spill] sm:$0xff] }
 0x1fd   :  { %v3116_v40 = vmax.f32 %v5442_v0, %v3115_v4  ;;  %v2252_v6 = vsel %vm2198_vm3, %v1589_v11, %v2251_v5  ;;  %v3120_v49 = vrot.slane %v3119_v30, 4  ;;  %v3127_v18 = vrot.slane %v3126_v46, 4  ;;  %v5923_v5 = vld [vmem:[#allocation24_spill] sm:$0xff] }
 0x1fe   :  { %v3133_v31 = vsel %vm1169_vm0, %v5918_v7, -inf  ;;  %v1617_v42 = vadd.f32 %v1616_v22, %v1615_v1  ;;  %v2253_v54 = vsel %vm2200_vm4, %v1596_v3, %v2252_v6  ;;  %v3110_v21 = vrot.slane %v3109_v28, 1  ;;  %v5920_v3 = vld [vmem:[#allocation13_spill] sm:$0xff] }
 0x1ff   :  { %v3117_v25 = vrot.slane %v3116_v40, 1  ;;  %v2254_v59 = vsel %vm2202_vm5, %v1603_v27, %v2253_v54  ;;  %v3121_v57 = vmax.f32 %v3119_v30, %v3120_v49  ;;  %v3128_v8 = vmax.f32 %v3126_v46, %v3127_v18  ;;  %v5921_v27 = vld [vmem:[#allocation15_spill] sm:$0xff] }
 0x200   :  { %v3134_v16 = vrot.slane %v3133_v31, 4  ;;  %v2255_v61 = vsel %vm2204_vm6, %v1610_v62, %v2254_v59  ;;  %v3111_v0 = vmax.f32 %v3109_v28, %v3110_v21  ;;  %v3140_v14 = vsel %vm1169_vm0, %v5919_v41, -inf  ;;  %v5922_v46 = vld [vmem:[#allocation19_spill] sm:$0xff] }
 0x201   :  { %v3118_v47 = vmax.f32 %v3116_v40, %v3117_v25  ;;  %v2256_v45 = vsel %vm2206_vm7, %v1617_v42, %v2255_v61  ;;  %v3122_v58 = vrot.slane %v3121_v57, 2  ;;  %v3129_v35 = vrot.slane %v3128_v8, 2 }
 0x202   :  { %v3135_v60 = vmax.f32 %v3133_v31, %v3134_v16  ;;  %3594 = vadd.xlane.f32.xlu0 %v2256_v45  ;;  %v3141_v11 = vrot.slane %v3140_v14, 4  ;;  %v3147_v38 = vsel %vm1169_vm0, %v5920_v3, -inf  ;;  %v3154_v1 = vsel %vm1169_vm0, %v5921_v27, -inf  ;;  %v5924_v45 = vld [vmem:[#allocation11_spill] sm:$0xff] }
 0x203   :  { %v3492_v23 = vsel %vm2194_vm1, %v3118_v47, %v3111_v0  ;;  %v3123_v4 = vmax.f32 %v3121_v57, %v3122_v58  ;;  %v3130_v62 = vmax.f32 %v3128_v8, %v3129_v35  ;;  %v3148_v24 = vrot.slane %v3147_v38, 4 }
 0x204   :  { %v3136_v36 = vrot.slane %v3135_v60, 2  ;;  %v3142_v30 = vmax.f32 %v3140_v14, %v3141_v11  ;;  %v3155_v15 = vrot.slane %v3154_v1, 4  ;;  %v2657_v22 = vsel %vm1169_vm0, %v5922_v46, -inf }
 0x205   :  { %v2664_v28 = vsel %vm1169_vm0, %v5923_v5, -inf  ;;  %v3124_v40 = vrot.slane %v3123_v4, 1  ;;  %v3131_v6 = vrot.slane %v3130_v62, 1  ;;  %v3149_v18 = vmax.f32 %v3147_v38, %v3148_v24 }
 0x206   :  { %v3137_v49 = vmax.f32 %v3135_v60, %v3136_v36  ;;  %v3143_v7 = vrot.slane %v3142_v30, 2  ;;  %v3156_v31 = vmax.f32 %v3154_v1, %v3155_v15  ;;  %v2658_v42 = vrot.slane %v2657_v22, 4 }
 0x207   :  { %v2665_v54 = vrot.slane %v2664_v28, 4  ;;  %v3125_v21 = vmax.f32 %v3123_v4, %v3124_v40  ;;  %v3132_v25 = vmax.f32 %v3130_v62, %v3131_v6  ;;  %v3150_v57 = vrot.slane %v3149_v18, 2 }
 0x208   :  { %v3138_v59 = vrot.slane %v3137_v49, 1  ;;  %v3144_v8 = vmax.f32 %v3142_v30, %v3143_v7  ;;  %v3157_v16 = vrot.slane %v3156_v31, 2  ;;  %v2659_v61 = vmax.f32 %v2657_v22, %v2658_v42  ;;  %v5925_v30 = vld [vmem:[#allocation21_spill] sm:$0xff] }
 0x209   :  { %v2666_v0 = vmax.f32 %v2664_v28, %v2665_v54  ;;  %v3151_v41 = vmax.f32 %v3149_v18, %v3150_v57  ;;  %v3493_v14 = vsel %vm2196_vm2, %v3125_v21, %v3492_v23  ;;  %v2671_v58 = vsel %vm1169_vm0, %v5924_v45, -inf  ;;  %v5927_v57 = vld [vmem:[#allocation22_spill] sm:$0xff] }
 0x20a   :  { %v3139_v47 = vmax.f32 %v3137_v49, %v3138_v59  ;;  %v3145_v35 = vrot.slane %v3144_v8, 1  ;;  %v3158_v60 = vmax.f32 %v3156_v31, %v3157_v16  ;;  %v3494_v11 = vsel %vm2198_vm3, %v3132_v25, %v3493_v14  ;;  %v5926_v49 = vld [vmem:[#allocation20_spill] sm:$0xff]  ;;  %v5928_v14 = vld [vmem:[#allocation25_spill] sm:$0xff] }
 0x20b   :  { %v2660_v3 = vrot.slane %v2659_v61, 2  ;;  %v3152_v38 = vrot.slane %v3151_v41, 1  ;;  %v2667_v1 = vrot.slane %v2666_v0, 2  ;;  %v2672_v4 = vrot.slane %v2671_v58, 4 }
 0x20c   :  { %v3495_v27 = vsel %vm2200_vm4, %v3139_v47, %v3494_v11  ;;  %v3146_v62 = vmax.f32 %v3144_v8, %v3145_v35  ;;  %v3159_v36 = vrot.slane %v3158_v60, 1  ;;  %v2678_v15 = vsel %vm1169_vm0, %v5925_v30, -inf }
 0x20d   :  { %v2661_v24 = vmax.f32 %v2659_v61, %v2660_v3  ;;  %v3153_v23 = vmax.f32 %v3151_v41, %v3152_v38  ;;  %v2668_v46 = vmax.f32 %v2666_v0, %v2667_v1  ;;  %v2673_v22 = vmax.f32 %v2671_v58, %v2672_v4  ;;  %v5929_v58 = vld [vmem:[#allocation28_spill] sm:$0xff] }
 0x20e   :  { %v2679_v5 = vrot.slane %v2678_v15, 4  ;;  %v3160_v28 = vmax.f32 %v3158_v60, %v3159_v36  ;;  %v3496_v40 = vsel %vm2202_vm5, %v3146_v62, %v3495_v27  ;;  %v2685_v18 = vsel %vm1169_vm0, %v5926_v49, -inf }
 0x20f   :  { %v2662_v6 = vrot.slane %v2661_v24, 1  ;;  %v3497_v7 = vsel %vm2204_vm6, %v3153_v23, %v3496_v40  ;;  %v2669_v31 = vrot.slane %v2668_v46, 1  ;;  %v2674_v42 = vrot.slane %v2673_v22, 2 }
 0x210   :  { %v2680_v54 = vmax.f32 %v2678_v15, %v2679_v5  ;;  %v3498_v21 = vsel %vm2206_vm7, %v3160_v28, %v3497_v7  ;;  %v2686_v59 = vrot.slane %v2685_v18, 4  ;;  %v2692_v8 = vsel %vm1169_vm0, %v5927_v57, -inf }
 0x211   :  { %v2663_v25 = vmax.f32 %v2661_v24, %v2662_v6  ;;  %3654 = vmax.xlane.f32.xlu1 %v3498_v21  ;;  %v2670_v16 = vmax.f32 %v2668_v46, %v2669_v31  ;;  %v2675_v61 = vmax.f32 %v2673_v22, %v2674_v42  ;;  %v2693_v47 = vrot.slane %v2692_v8, 4 }
 0x212   :  { %v2681_v0 = vrot.slane %v2680_v54, 2  ;;  %v2687_v41 = vmax.f32 %v2685_v18, %v2686_v59  ;;  %v2699_v45 = vsel %vm1169_vm0, %v5928_v14, -inf  ;;  %v2706_v35 = vsel %vm1169_vm0, %v5929_v58, -inf }
 0x213   :  { %v3161_v60 = vsel %vm1169_vm0, %v5185_v17, -inf  ;;  %v2676_v11 = vrot.slane %v2675_v61, 1  ;;  %v2694_v38 = vmax.f32 %v2692_v8, %v2693_v47  ;;  %v2700_v27 = vrot.slane %v2699_v45, 4 }
 0x214   :  { %v2682_v3 = vmax.f32 %v2680_v54, %v2681_v0  ;;  %v2688_v1 = vrot.slane %v2687_v41, 2  ;;  %v2707_v4 = vrot.slane %v2706_v35, 4  ;;  %v3436_v62 = vsel %vm2194_vm1, %v2670_v16, %v2663_v25 }
 0x215   :  { %v3162_v36 = vrot.slane %v3161_v60, 4  ;;  %v2677_v24 = vmax.f32 %v2675_v61, %v2676_v11  ;;  %v2695_v15 = vrot.slane %v2694_v38, 2  ;;  %v2701_v23 = vmax.f32 %v2699_v45, %v2700_v27 }
 0x216   :  { %v2683_v30 = vrot.slane %v2682_v3, 1  ;;  %v2689_v46 = vmax.f32 %v2687_v41, %v2688_v1  ;;  %v2708_v22 = vmax.f32 %v2706_v35, %v2707_v4  ;;  %v3168_v28 = vsel %vm1169_vm0, %v5193_v34, -inf }
 0x217   :  { %v3163_v5 = vmax.f32 %v3161_v60, %v3162_v36  ;;  %v2696_v40 = vmax.f32 %v2694_v38, %v2695_v15  ;;  %v2702_v6 = vrot.slane %v2701_v23, 2  ;;  %v3437_v49 = vsel %vm2196_vm2, %v2677_v24, %v3436_v62 }
 0x218   :  { %v2684_v17 = vmax.f32 %v2682_v3, %v2683_v30  ;;  %v2690_v18 = vrot.slane %v2689_v46, 1  ;;  %v2709_v7 = vrot.slane %v2708_v22, 2  ;;  %v3169_v42 = vrot.slane %v3168_v28, 4 }
 0x219   :  { %v3164_v31 = vrot.slane %v3163_v5, 2  ;;  %v2697_v54 = vrot.slane %v2696_v40, 1  ;;  %v2703_v21 = vmax.f32 %v2701_v23, %v2702_v6  ;;  %v3175_v59 = vsel %vm1169_vm0, %v5188_v29, -inf }
 0x21a   :  { %v3438_v25 = vsel %vm2198_vm3, %v2684_v17, %v3437_v49  ;;  %v2691_v57 = vmax.f32 %v2689_v46, %v2690_v18  ;;  %v2710_v8 = vmax.f32 %v2708_v22, %v2709_v7  ;;  %v3170_v34 = vmax.f32 %v3168_v28, %v3169_v42  ;;  %v5930_v49 = vld [vmem:[#allocation23_spill] sm:$0xff] }
 0x21b   :  { %v3165_v16 = vmax.f32 %v3163_v5, %v3164_v31  ;;  %v2698_v61 = vmax.f32 %v2696_v40, %v2697_v54  ;;  %v2704_v0 = vrot.slane %v2703_v21, 1  ;;  %v3176_v47 = vrot.slane %v3175_v59, 4 }
 0x21c   :  { %v3182_v41 = vsel %vm1169_vm0, %v5206_v51, -inf  ;;  %v2711_v14 = vrot.slane %v2710_v8, 1  ;;  %v3439_v45 = vsel %vm2200_vm4, %v2691_v57, %v3438_v25  ;;  %v3171_v35 = vrot.slane %v3170_v34, 2 }
 0x21d   :  { %v3166_v58 = vrot.slane %v3165_v16, 1  ;;  %v2705_v60 = vmax.f32 %v2703_v21, %v2704_v0  ;;  %v3440_v11 = vsel %vm2202_vm5, %v2698_v61, %v3439_v45  ;;  %v3177_v3 = vmax.f32 %v3175_v59, %v3176_v47 }
 0x21e   :  { %v3183_v29 = vrot.slane %v3182_v41, 4  ;;  %v2712_v38 = vmax.f32 %v2710_v8, %v2711_v14  ;;  %v3172_v1 = vmax.f32 %v3170_v34, %v3171_v35  ;;  %v3189_v4 = vsel %vm1169_vm0, %v5199_v52, -inf }
 0x21f   :  { %v3167_v27 = vmax.f32 %v3165_v16, %v3166_v58  ;;  %v3441_v62 = vsel %vm2204_vm6, %v2705_v60, %v3440_v11  ;;  %v3178_v36 = vrot.slane %v3177_v3, 2  ;;  %v3190_v24 = vrot.slane %v3189_v4, 4 }
 0x220   :  { %v3184_v51 = vmax.f32 %v3182_v41, %v3183_v29  ;;  %v3442_v30 = vsel %vm2206_vm7, %v2712_v38, %v3441_v62  ;;  %v3173_v15 = vrot.slane %v3172_v1, 1  ;;  %v3196_v23 = vsel %vm1169_vm0, %v5214_v39, -inf }
 0x221   :  { %v3203_v46 = vsel %vm1169_vm0, %v5202_v20, -inf  ;;  %3638 = vmax.xlane.f32.xlu0 %v3442_v30  ;;  %v3179_v22 = vmax.f32 %v3177_v3, %v3178_v36  ;;  %v3191_v28 = vmax.f32 %v3189_v4, %v3190_v24  ;;  %v3197_v17 = vrot.slane %v3196_v23, 4 }
 0x222   :  { %v3185_v5 = vrot.slane %v3184_v51, 2  ;;  %v3174_v52 = vmax.f32 %v3172_v1, %v3173_v15  ;;  %v3204_v40 = vrot.slane %v3203_v46, 4  ;;  %v3210_v6 = vsel %vm1169_vm0, %v5218_v63, -inf  ;;  %v5931_v63 = vld [vmem:[#allocation31_spill] sm:$0xff]  ;;  %v5932_v1 = vld [vmem:[#allocation29_spill] sm:$0xff] }
 0x223   :  { %v2713_v18 = vsel %vm1169_vm0, %v5930_v49, -inf  ;;  %v3180_v7 = vrot.slane %v3179_v22, 1  ;;  %v3192_v42 = vrot.slane %v3191_v28, 2  ;;  %v3198_v39 = vmax.f32 %v3196_v23, %v3197_v17 }
 0x224   :  { %v3186_v31 = vmax.f32 %v3184_v51, %v3185_v5  ;;  %v3205_v54 = vmax.f32 %v3203_v46, %v3204_v40  ;;  %v3211_v21 = vrot.slane %v3210_v6, 4  ;;  %v3499_v20 = vsel %vm2194_vm1, %v3174_v52, %v3167_v27  ;;  %v5933_v46 = vld [vmem:[#allocation27_spill] sm:$0xff] }
 0x225   :  { %v2714_v25 = vrot.slane %v2713_v18, 4  ;;  %v3181_v59 = vmax.f32 %v3179_v22, %v3180_v7  ;;  %v3193_v8 = vmax.f32 %v3191_v28, %v3192_v42  ;;  %v3199_v16 = vrot.slane %v3198_v39, 2 }
 0x226   :  { %v3187_v57 = vrot.slane %v3186_v31, 1  ;;  %v3206_v34 = vrot.slane %v3205_v54, 2  ;;  %v3212_v61 = vmax.f32 %v3210_v6, %v3211_v21  ;;  %v2720_v47 = vsel %vm1169_vm0, %v5931_v63, -inf }
 0x227   :  { %v2715_v0 = vmax.f32 %v2713_v18, %v2714_v25  ;;  %v3194_v14 = vrot.slane %v3193_v8, 1  ;;  %v3200_v45 = vmax.f32 %v3198_v39, %v3199_v16  ;;  %v3500_v58 = vsel %vm2196_vm2, %v3181_v59, %v3499_v20  ;;  %v5934_v18 = vld [vmem:[#allocation26_spill] sm:$0xff] }
 0x228   :  { %v3188_v41 = vmax.f32 %v3186_v31, %v3187_v57  ;;  %v3207_v35 = vmax.f32 %v3205_v54, %v3206_v34  ;;  %v3213_v60 = vrot.slane %v3212_v61, 2  ;;  %v2721_v3 = vrot.slane %v2720_v47, 4  ;;  %v5935_v59 = vld [vmem:[#allocation30_spill] sm:$0xff] }
 0x229   :  { %v2716_v11 = vrot.slane %v2715_v0, 2  ;;  %v3195_v29 = vmax.f32 %v3193_v8, %v3194_v14  ;;  %v3201_v38 = vrot.slane %v3200_v45, 1  ;;  %v2727_v4 = vsel %vm1169_vm0, %v5932_v1, -inf }
 0x22a   :  { %v3501_v27 = vsel %vm2198_vm3, %v3188_v41, %v3500_v58  ;;  %v3208_v62 = vrot.slane %v3207_v35, 1  ;;  %v3214_v36 = vmax.f32 %v3212_v61, %v3213_v60  ;;  %v2722_v24 = vmax.f32 %v2720_v47, %v2721_v3  ;;  %v5936_v61 = vld [vmem:[#allocation33_spill] sm:$0xff] }
 0x22b   :  { %v2717_v51 = vmax.f32 %v2715_v0, %v2716_v11  ;;  %v3202_v30 = vmax.f32 %v3200_v45, %v3201_v38  ;;  %v3502_v15 = vsel %vm2200_vm4, %v3195_v29, %v3501_v27  ;;  %v2728_v23 = vrot.slane %v2727_v4, 4 }
 0x22c   :  { %v2734_v22 = vsel %vm1169_vm0, %v5933_v46, -inf  ;;  %v3209_v5 = vmax.f32 %v3207_v35, %v3208_v62  ;;  %v3215_v28 = vrot.slane %v3214_v36, 1  ;;  %v2723_v52 = vrot.slane %v2722_v24, 2  ;;  %v5937_v35 = vld [vmem:[#allocation34_spill] sm:$0xff] }
 0x22d   :  { %v2718_v17 = vrot.slane %v2717_v51, 1  ;;  %v3503_v40 = vsel %vm2202_vm5, %v3202_v30, %v3502_v15  ;;  %v2729_v6 = vmax.f32 %v2727_v4, %v2728_v23  ;;  %v2735_v49 = vrot.slane %v2734_v22, 4 }
 0x22e   :  { %v2741_v7 = vsel %vm1169_vm0, %v5934_v18, -inf  ;;  %v3216_v31 = vmax.f32 %v3214_v36, %v3215_v28  ;;  %v3504_v42 = vsel %vm2204_vm6, %v3209_v5, %v3503_v40  ;;  %v2724_v54 = vmax.f32 %v2722_v24, %v2723_v52 }
 0x22f   :  { %v2719_v39 = vmax.f32 %v2717_v51, %v2718_v17  ;;  %v2730_v21 = vrot.slane %v2729_v6, 2  ;;  %v2736_v20 = vmax.f32 %v2734_v22, %v2735_v49  ;;  %v2742_v25 = vrot.slane %v2741_v7, 4 }
 0x230   :  { %v2748_v57 = vsel %vm1169_vm0, %v5935_v59, -inf  ;;  %v3505_v8 = vsel %vm2206_vm7, %v3216_v31, %v3504_v42  ;;  %v2725_v16 = vrot.slane %v2724_v54, 1  ;;  %v2755_v0 = vsel %vm1169_vm0, %v5936_v61, -inf }
 0x231   :  { %v2749_v34 = vrot.slane %v2748_v57, 4  ;;  %3656 = vmax.xlane.f32.xlu1 %v3505_v8  ;;  %v2731_v63 = vmax.f32 %v2729_v6, %v2730_v21  ;;  %v2737_v47 = vrot.slane %v2736_v20, 2  ;;  %v2743_v41 = vmax.f32 %v2741_v7, %v2742_v25 }
 0x232   :  { %v2756_v14 = vrot.slane %v2755_v0, 4  ;;  %v2726_v45 = vmax.f32 %v2724_v54, %v2725_v16  ;;  %v2762_v60 = vsel %vm1169_vm0, %v5937_v35, -inf  ;;  %v3217_v11 = vsel %vm1169_vm0, %v5363_v13, -inf }
 0x233   :  { %v2750_v58 = vmax.f32 %v2748_v57, %v2749_v34  ;;  %v2732_v3 = vrot.slane %v2731_v63, 1  ;;  %v2738_v29 = vmax.f32 %v2736_v20, %v2737_v47  ;;  %v2744_v38 = vrot.slane %v2743_v41, 2 }
 0x234   :  { %v2757_v27 = vmax.f32 %v2755_v0, %v2756_v14  ;;  %v2763_v4 = vrot.slane %v2762_v60, 4  ;;  %v3443_v62 = vsel %vm2194_vm1, %v2726_v45, %v2719_v39  ;;  %v3218_v36 = vrot.slane %v3217_v11, 4 }
 0x235   :  { %v2751_v1 = vrot.slane %v2750_v58, 2  ;;  %v2733_v51 = vmax.f32 %v2731_v63, %v2732_v3  ;;  %v2739_v24 = vrot.slane %v2738_v29, 1  ;;  %v2745_v30 = vmax.f32 %v2743_v41, %v2744_v38 }
 0x236   :  { %v2758_v15 = vrot.slane %v2757_v27, 2  ;;  %v2764_v46 = vmax.f32 %v2762_v60, %v2763_v4  ;;  %v3219_v22 = vmax.f32 %v3217_v11, %v3218_v36  ;;  %v3224_v5 = vsel %vm1169_vm0, %v5381_v2, -inf }
 0x237   :  { %v2752_v23 = vmax.f32 %v2750_v58, %v2751_v1  ;;  %v2740_v13 = vmax.f32 %v2738_v29, %v2739_v24  ;;  %v2746_v28 = vrot.slane %v2745_v30, 1  ;;  %v3444_v52 = vsel %vm2196_vm2, %v2733_v51, %v3443_v62 }
 0x238   :  { %v2759_v17 = vmax.f32 %v2757_v27, %v2758_v15  ;;  %v2765_v6 = vrot.slane %v2764_v46, 2  ;;  %v3220_v49 = vrot.slane %v3219_v22, 2  ;;  %v3225_v18 = vrot.slane %v3224_v5, 4 }
 0x239   :  { %v2753_v40 = vrot.slane %v2752_v23, 1  ;;  %v2747_v7 = vmax.f32 %v2745_v30, %v2746_v28  ;;  %v3445_v42 = vsel %vm2198_vm3, %v2740_v13, %v3444_v52  ;;  %v3231_v39 = vsel %vm1169_vm0, %v5366_v32, -inf }
 0x23a   :  { %v2760_v31 = vrot.slane %v2759_v17, 1  ;;  %v2766_v21 = vmax.f32 %v2764_v46, %v2765_v6  ;;  %v3221_v20 = vmax.f32 %v3219_v22, %v3220_v49  ;;  %v3226_v2 = vmax.f32 %v3224_v5, %v3225_v18 }
 0x23b   :  { %v2754_v54 = vmax.f32 %v2752_v23, %v2753_v40  ;;  %v3446_v59 = vsel %vm2200_vm4, %v2747_v7, %v3445_v42  ;;  %v3232_v57 = vrot.slane %v3231_v39, 4  ;;  %v3238_v8 = vsel %vm1169_vm0, %v5385_v10, -inf }
 0x23c   :  { %v2761_v25 = vmax.f32 %v2759_v17, %v2760_v31  ;;  %v2767_v16 = vrot.slane %v2766_v21, 1  ;;  %v3222_v61 = vrot.slane %v3221_v20, 1  ;;  %v3227_v0 = vrot.slane %v3226_v2, 2 }
 0x23d   :  { %v3447_v34 = vsel %vm2202_vm5, %v2754_v54, %v3446_v59  ;;  %v3233_v47 = vmax.f32 %v3231_v39, %v3232_v57  ;;  %v3239_v32 = vrot.slane %v3238_v8, 4  ;;  %v3245_v41 = vsel %vm1169_vm0, %v5370_v33, -inf }
 0x23e   :  { %v3448_v63 = vsel %vm2204_vm6, %v2761_v25, %v3447_v34  ;;  %v2768_v14 = vmax.f32 %v2766_v21, %v2767_v16  ;;  %v3223_v45 = vmax.f32 %v3221_v20, %v3222_v61  ;;  %v3228_v58 = vmax.f32 %v3226_v2, %v3227_v0 }
 0x23f   :  { %v3246_v35 = vrot.slane %v3245_v41, 4  ;;  %v3234_v60 = vrot.slane %v3233_v47, 2  ;;  %v3240_v11 = vmax.f32 %v3238_v8, %v3239_v32  ;;  %v3252_v10 = vsel %vm1169_vm0, %v5391_v43, -inf }
 0x240   :  { %v3259_v3 = vsel %vm1169_vm0, %v5373_v53, -inf  ;;  %v3449_v29 = vsel %vm2206_vm7, %v2768_v14, %v3448_v63  ;;  %v3229_v38 = vrot.slane %v3228_v58, 1  ;;  %v3253_v1 = vrot.slane %v3252_v10, 4 }
 0x241   :  { %v3247_v27 = vmax.f32 %v3245_v41, %v3246_v35  ;;  %3640 = vmax.xlane.f32.xlu0 %v3449_v29  ;;  %v3235_v4 = vmax.f32 %v3233_v47, %v3234_v60  ;;  %v3241_v33 = vrot.slane %v3240_v11, 2  ;;  %v3260_v62 = vrot.slane %v3259_v3, 4 }
 0x242   :  { %v3266_v36 = vsel %vm1169_vm0, %v5395_v9, -inf  ;;  %v3230_v51 = vmax.f32 %v3228_v58, %v3229_v38  ;;  %v3254_v30 = vmax.f32 %v3252_v10, %v3253_v1  ;;  %v2769_v53 = vsel %vm1169_vm0, %v5428_v19, -inf }
 0x243   :  { %v3248_v24 = vrot.slane %v3247_v27, 2  ;;  %v3267_v15 = vrot.slane %v3266_v36, 4  ;;  %v3236_v43 = vrot.slane %v3235_v4, 1  ;;  %v3242_v23 = vmax.f32 %v3240_v11, %v3241_v33 }
 0x244   :  { %v3261_v46 = vmax.f32 %v3259_v3, %v3260_v62  ;;  %v3255_v5 = vrot.slane %v3254_v30, 2  ;;  %v3506_v28 = vsel %vm2194_vm1, %v3230_v51, %v3223_v45  ;;  %v2770_v6 = vrot.slane %v2769_v53, 4 }
 0x245   :  { %v3249_v22 = vmax.f32 %v3247_v27, %v3248_v24  ;;  %v3268_v13 = vmax.f32 %v3266_v36, %v3267_v15  ;;  %v3237_v17 = vmax.f32 %v3235_v4, %v3236_v43  ;;  %v3243_v52 = vrot.slane %v3242_v23, 1 }
 0x246   :  { %v3262_v40 = vrot.slane %v3261_v46, 2  ;;  %v3256_v49 = vmax.f32 %v3254_v30, %v3255_v5  ;;  %v2776_v7 = vsel %vm1169_vm0, %v5447_v37, -inf  ;;  %v2771_v19 = vmax.f32 %v2769_v53, %v2770_v6 }
 0x247   :  { %v3250_v9 = vrot.slane %v3249_v22, 1  ;;  %v3269_v18 = vrot.slane %v3268_v13, 2  ;;  %v3244_v31 = vmax.f32 %v3242_v23, %v3243_v52  ;;  %v3507_v39 = vsel %vm2196_vm2, %v3237_v17, %v3506_v28 }
 0x248   :  { %v3263_v42 = vmax.f32 %v3261_v46, %v3262_v40  ;;  %v3257_v21 = vrot.slane %v3256_v49, 1  ;;  %v2777_v2 = vrot.slane %v2776_v7, 4  ;;  %v2772_v57 = vrot.slane %v2771_v19, 2 }
 0x249   :  { %v3251_v54 = vmax.f32 %v3249_v22, %v3250_v9  ;;  %v3270_v20 = vmax.f32 %v3268_v13, %v3269_v18  ;;  %v3508_v59 = vsel %vm2198_vm3, %v3244_v31, %v3507_v39  ;;  %v2783_v8 = vsel %vm1169_vm0, %v5431_v55, -inf }
 0x24a   :  { %v3264_v25 = vrot.slane %v3263_v42, 1  ;;  %v3258_v16 = vmax.f32 %v3256_v49, %v3257_v21  ;;  %v2778_v61 = vmax.f32 %v2776_v7, %v2777_v2  ;;  %v2773_v63 = vmax.f32 %v2771_v19, %v2772_v57 }
 0x24b   :  { %v3271_v34 = vrot.slane %v3270_v20, 1  ;;  %v3509_v37 = vsel %vm2200_vm4, %v3251_v54, %v3508_v59  ;;  %v2784_v47 = vrot.slane %v2783_v8, 4  ;;  %v2790_v32 = vsel %vm1169_vm0, %v5451_v48, -inf }
 0x24c   :  { %v3265_v0 = vmax.f32 %v3263_v42, %v3264_v25  ;;  %v3510_v14 = vsel %vm2202_vm5, %v3258_v16, %v3509_v37  ;;  %v2779_v45 = vrot.slane %v2778_v61, 2  ;;  %v2791_v58 = vrot.slane %v2790_v32, 4  ;;  %v3886_v37 = vld [vmem:[%s5749_s1 + $0x8] sm:$0xff] }
 0x24d   :  { %v3272_v41 = vmax.f32 %v3270_v20, %v3271_v34  ;;  %v2774_v60 = vrot.slane %v2773_v63, 1  ;;  %v2785_v55 = vmax.f32 %v2783_v8, %v2784_v47  ;;  %v2797_v11 = vsel %vm1169_vm0, %v5434_v50, -inf  ;;  %v3885_v34 = vld [vmem:[%s5749_s1] sm:$0xff] }
 0x24e   :  { %v3511_v35 = vsel %vm2204_vm6, %v3265_v0, %v3510_v14  ;;  %v2780_v3 = vmax.f32 %v2778_v61, %v2779_v45  ;;  %v2792_v29 = vmax.f32 %v2790_v32, %v2791_v58  ;;  %v2798_v38 = vrot.slane %v2797_v11, 4  ;;  %v3887_v61 = vld [vmem:[%s5749_s1 + $0x10] sm:$0xff]  ;;  %v3888_v0 = vld [vmem:[%s5749_s1 + $0x18] sm:$0xff]  ;;  %v3890_v14 = vld [vmem:[%s5749_s1 + $0x28] sm:$0xff] }
 0x24f   :  { %v3512_v10 = vsel %vm2206_vm7, %v3272_v41, %v3511_v35  ;;  %v2775_v27 = vmax.f32 %v2773_v63, %v2774_v60  ;;  %v2786_v48 = vrot.slane %v2785_v55, 2  ;;  %v2804_v1 = vsel %vm1169_vm0, %v5455_v44, -inf  ;;  %v3889_v41 = vld [vmem:[%s5749_s1 + $0x20] sm:$0xff]  ;;  %v3891_v58 = vld [vmem:[%s5749_s1 + $0x30] sm:$0xff]  ;;  %v3892_v35 = vld [vmem:[%s5749_s1 + $0x38] sm:$0xff] }
 0x250   :  { %3658 = vmax.xlane.f32.xlu1 %v3512_v10  ;;  %v2811_v4 = vsel %vm1169_vm0, %v5438_v26, -inf  ;;  %v2781_v33 = vrot.slane %v2780_v3, 1  ;;  %v2793_v62 = vrot.slane %v2792_v29, 2  ;;  %v2799_v36 = vmax.f32 %v2797_v11, %v2798_v38  ;;  %v3581_v11 = vpop.xlane.xlu0 %3580 }
 0x251   :  { %v2805_v51 = vrot.slane %v2804_v1, 4  ;;  %v2787_v24 = vmax.f32 %v2785_v55, %v2786_v48  ;;  %v2812_v50 = vrot.slane %v2811_v4, 4  ;;  %v2818_v30 = vsel %vm1169_vm0, %v5459_v12, -inf  ;;  %v3597_v55 = vpop.xlane.xlu1 %3596 }
 0x252   :  { %v2782_v15 = vmax.f32 %v2780_v3, %v2781_v33  ;;  %v2794_v43 = vmax.f32 %v2792_v29, %v2793_v62  ;;  %v2800_v23 = vrot.slane %v2799_v36, 2  ;;  %v2819_v5 = vrot.slane %v2818_v30, 4 }
 0x253   :  { %v2806_v46 = vmax.f32 %v2804_v1, %v2805_v51  ;;  %v2788_v53 = vrot.slane %v2787_v24, 1  ;;  %v2813_v22 = vmax.f32 %v2811_v4, %v2812_v50  ;;  %v4114_v63 = vpack.c.bf16 %v3886_v37, %v3885_v34 }
 0x254   :  { %v2795_v44 = vrot.slane %v2794_v43, 1  ;;  %v2801_v13 = vmax.f32 %v2799_v36, %v2800_v23  ;;  %v3450_v26 = vsel %vm2194_vm1, %v2782_v15, %v2775_v27  ;;  %v2820_v40 = vmax.f32 %v2818_v30, %v2819_v5  ;;  %v3583_v3 = vpop.xlane.xlu0 %3582 }
 0x255   :  { %v2807_v28 = vrot.slane %v2806_v46, 2  ;;  %v2789_v17 = vmax.f32 %v2787_v24, %v2788_v53  ;;  %v2814_v52 = vrot.slane %v2813_v22, 2  ;;  %v4192_v47 = vmov 0.0|0.0   ;;  %v3599_v10 = vpop.xlane.xlu1 %3598 }
 0x256   :  { %v2796_v6 = vmax.f32 %v2794_v43, %v2795_v44  ;;  %v2802_v9 = vrot.slane %v2801_v13, 1  ;;  %v2821_v12 = vrot.slane %v2820_v40, 2  ;;  %4113 = vmatprep.subr.bf16.mxu0 %v4192_v47  ;;  %v4117_v32 = vpack.c.bf16 %v3888_v0, %v3887_v61 }
 0x257   :  { %v2808_v49 = vmax.f32 %v2806_v46, %v2807_v28  ;;  %v2815_v18 = vmax.f32 %v2813_v22, %v2814_v52  ;;  %v3451_v7 = vsel %vm2196_vm2, %v2789_v17, %v3450_v26  ;;  %4115 = vmatpush3.bf16.msra.mxu0 %v4114_v63  ;;  %v4120_v45 = vpack.c.bf16 %v3890_v14, %v3889_v41  ;;  %v5939_v17 = vld [vmem:[#allocation10_spill] sm:$0xff] }
 0x258   :  { %v2803_v31 = vmax.f32 %v2801_v13, %v2802_v9  ;;  %v3452_v39 = vsel %vm2198_vm3, %v2796_v6, %v3451_v7  ;;  %v2822_v54 = vmax.f32 %v2820_v40, %v2821_v12  ;;  %4116 = vmatprep.subr.bf16.mxu0 %v4192_v47  ;;  %v4123_v60 = vpack.c.bf16 %v3892_v35, %v3891_v58  ;;  %v3585_v29 = vpop.xlane.xlu0 %3584 }
 0x259   :  { %v2809_v42 = vrot.slane %v2808_v49, 1  ;;  %v2816_v19 = vrot.slane %v2815_v18, 1  ;;  %v3601_v56 = vpop.xlane.xlu1 %3600  ;;  %v5938_v22 = vlaneseq  ;;  %v3668_v40 = vmul.f32 0.00390625, %v3597_v55 }
 0x25a   :  { %v3453_v20 = vsel %vm2200_vm4, %v2803_v31, %v3452_v39  ;;  %v2823_v25 = vrot.slane %v2822_v54, 1  ;;  %v3670_v7 = vmul.f32 0.00390625, %v3601_v56  ;;  %v3662_v31 = vmul.f32 0.00390625, %v3585_v29 }
 0x25b   :  { %v2810_v21 = vmax.f32 %v2808_v49, %v2809_v42  ;;  %v2817_v2 = vmax.f32 %v2815_v18, %v2816_v19  ;;  %4118 = vmatpush3.bf16.msra.mxu0 %v4117_v32  ;;  %v3693_v5 = vand.u32 127, %v5938_v22  ;;  %v3669_v49 = vmul.f32 0.00390625, %v3599_v10 }
 0x25c   :  { %v2824_v57 = vmax.f32 %v2822_v54, %v2823_v25  ;;  %4119 = vmatprep.subr.bf16.mxu0 %v4192_v47  ;;  %v3587_v27 = vpop.xlane.xlu0 %3586  ;;  %v3661_v18 = vmul.f32 0.00390625, %v3583_v3  ;;  %v3660_v42 = vmul.f32 0.00390625, %v3581_v11  ;;  %vm3894_vm2 = vcmask 523264  }
 0x25d   :  { %v3454_v59 = vsel %vm2202_vm5, %v2810_v21, %v3453_v20  ;;  %v3603_v38 = vpop.xlane.xlu1 %3602  ;;  %v3698_v44 = vadd.s32 4294967288, %v3693_v5  ;;  %v3705_v13 = vadd.s32 4294967280, %v3693_v5  ;;  %v3696_v52 = vsub.s32 %v3693_v5, %v5939_v17 }
 0x25e   :  { %v3455_v8 = vsel %vm2204_vm6, %v2817_v2, %v3454_v59  ;;  %v3712_v6 = vadd.s32 4294967272, %v3693_v5  ;;  %v3671_v54 = vmul.f32 0.00390625, %v3603_v38  ;;  %v3719_v21 = vadd.s32 4294967264, %v3693_v5 }
 0x25f   :  { %v3456_v16 = vsel %vm2206_vm7, %v2824_v57, %v3455_v8  ;;  %4121 = vmatpush3.bf16.msra.mxu0 %v4120_v45  ;;  %v3701_v9 = vsub.s32 %v3698_v44, %v5939_v17  ;;  %v3708_v12 = vsub.s32 %v3705_v13, %v5939_v17  ;;  %v3750_v39 = vrot.slane %v3668_v40, %v3696_v52 }
 0x260   :  { %3642 = vmax.xlane.f32.xlu0 %v3456_v16  ;;  %4122 = vmatprep.subr.bf16.mxu0 %v4192_v47  ;;  %v3629_v1 = vpop.xlane.xlu0 %3628  ;;  %v5673_v19 = vsub.s32 %v3712_v6, %v5939_v17  ;;  %v3663_v25 = vmul.f32 0.00390625, %v3587_v27  ;;  %v3697_v61 = vrot.slane %v3660_v42, %v3696_v52  ;;  %v5679_v32 = vsub.s32 %v3719_v21, %v5939_v17 }
 0x261   :  { %v3631_v48 = vpop.xlane.xlu1 %3630  ;;  %v3754_v20 = vrot.slane %v3669_v49, %v3701_v9  ;;  %v3702_v2 = vrot.slane %v3661_v18, %v3701_v9  ;;  %v3759_v8 = vrot.slane %v3670_v7, %v3708_v12  ;;  %v3709_v16 = vrot.slane %v3662_v31, %v3708_v12 }
 0x262   :  { %v3811_v34 = vrot.slane %v3631_v48, %v3701_v9  ;;  %v3807_v37 = vrot.slane %v3629_v1, %v3696_v52  ;;  %v3764_v47 = vrot.slane %v3671_v54, %v5673_v19  ;;  %v3716_v58 = vrot.slane %v3663_v25, %v5673_v19 }
 0x263   :  { %4124 = vmatpush3.bf16.msra.mxu0 %v4123_v60  ;;  %v3755_v14 = vsel %vm3703_vm9, %v3754_v20, %v3750_v39  ;;  %v3704_v45 = vsel %vm3703_vm9, %v3702_v2, %v3697_v61  ;;  %v3726_v35 = vadd.s32 4294967256, %v3693_v5  ;;  %v3733_v10 = vadd.s32 4294967248, %v3693_v5 }
 0x264   :  { %v3645_v33 = vpop.xlane.xlu0 %3644  ;;  %v3760_v60 = vsel %vm3710_vm10, %v3759_v8, %v3755_v14  ;;  %v3711_v55 = vsel %vm3710_vm10, %v3709_v16, %v3704_v45  ;;  %v3812_v11 = vsel %vm3703_vm9, %v3811_v34, %v3807_v37  ;;  %v3740_v29 = vadd.s32 4294967240, %v3693_v5 }
 0x265   :  { %v3647_v4 = vpop.xlane.xlu1 %3646  ;;  %v3846_v63 = vrot.slane %v3645_v33, %v3696_v52  ;;  %v3765_v48 = vsel %vm3717_vm11, %v3764_v47, %v3760_v60  ;;  %v3729_v22 = vsub.s32 %v3726_v35, %v5939_v17  ;;  %v3736_v5 = vsub.s32 %v3733_v10, %v5939_v17 }
 0x266   :  { %v3850_v0 = vrot.slane %v3647_v4, %v3701_v9  ;;  %v3743_v40 = vsub.s32 %v3740_v29, %v5939_v17  ;;  %vm3973_vm4 = vcmask 1043456   ;;  %vm3969_vm5 = vcmask 31744  }
 0x268   :  { %v3589_v36 = vpop.xlane.xlu0 %3588  ;;  %v3851_v3 = vsel %vm3703_vm9, %v3850_v0, %v3846_v63 }
 0x269   :  { %v3605_v62 = vpop.xlane.xlu1 %3604  ;;  %v3664_v56 = vmul.f32 0.00390625, %v3589_v36 }
 0x26a   :  { %v3672_v41 = vmul.f32 0.00390625, %v3605_v62  ;;  %v3718_v62 = vsel %vm3717_vm11, %v3716_v58, %v3711_v55 }
 0x26c   :  { %v5650_v24 = vpop.xlane.xlu0 %3632  ;;  %v3769_v1 = vrot.slane %v3672_v41, %v5679_v32 }
 0x26d   :  { %v5648_v51 = vpop.xlane.xlu1 %3648  ;;  %v3816_v33 = vrot.slane %v5650_v24, %v3708_v12 }
 0x26e   :  { %v3855_v4 = vrot.slane %v5648_v51, %v3708_v12  ;;  %v3723_v51 = vrot.slane %v3664_v56, %v5679_v32  ;;  %v3770_v9 = vsel %vm3724_vm12, %v3769_v1, %v3765_v48 }
 0x270   :  { %v5654_v30 = vpop.xlane.xlu0 %3590 }
 0x271   :  { %v5652_v50 = vpop.xlane.xlu1 %3606  ;;  %v3665_v13 = vmul.f32 0.00390625, %v5654_v30  ;;  %v3817_v30 = vsel %vm3710_vm10, %v3816_v33, %v3812_v11  ;;  %v3893_v11 = vld [vmem:[%s5750_s2] sm:$0xf]  ;;  %s4160_s2 = scalar_lea.vmem %s4066_s16, 32 }
 0x272   :  { %v3673_v44 = vmul.f32 0.00390625, %v5652_v50  ;;  %v3856_v50 = vsel %vm3710_vm10, %v3855_v4, %v3851_v3  ;;  %4109 = vmatpush3.msk.msra.mxu1 %vm3973_vm4, %v3893_v11  ;;  %p4161_p8 = scmp.ne.s32.totalorder %s4066_s16, %s4160_s2  ;;  %p4166_p10 = scmp.lt.s32.totalorder %s4160_s2, %s4160_s2 }
 0x274   :  { %v5658_v43 = vpop.xlane.xlu0 %3634  ;;  %v3774_v18 = vrot.slane %v3673_v44, %v3729_v22  ;;  %p4167_p11 = por %p4166_p10, %p4165_p9 }
 0x275   :  { %v5656_v15 = vpop.xlane.xlu1 %3650  ;;  %v3821_v12 = vrot.slane %v5658_v43, %v5673_v19 }
 0x276   :  { %v3860_v36 = vrot.slane %v5656_v15, %v5673_v19  ;;  %v3730_v15 = vrot.slane %v3665_v13, %v3729_v22  ;;  %v3775_v2 = vsel %vm3731_vm13, %v3774_v18, %v3770_v9  ;;  %p4168_p12 = pnand %p4167_p11, %p4161_p8 }
 0x278   :  { %v5662_v46 = vpop.xlane.xlu0 %3592  ;;  %v3861_v17 = vsel %vm3717_vm11, %v3860_v36, %v3856_v50 }
 0x279   :  { %v5660_v23 = vpop.xlane.xlu1 %3608  ;;  %v3666_v24 = vmul.f32 0.00390625, %v5662_v46 }
 0x27a   :  { %v3674_v52 = vmul.f32 0.00390625, %v5660_v23 }
 0x27b   :  { %v3737_v42 = vrot.slane %v3666_v24, %v3736_v5 }
 0x27c   :  { %v5667_v28 = vpop.xlane.xlu0 %3636 }
 0x27d   :  { %v5664_v53 = vpop.xlane.xlu1 %3652  ;;  %v3826_v39 = vrot.slane %v5667_v28, %v5679_v32 }
 0x27e   :  { %v3865_v23 = vrot.slane %v5664_v53, %v5679_v32  ;;  %v3725_v53 = vsel %vm3724_vm12, %v3723_v51, %v3718_v62 }
 0x27f   :  { %v3732_v8 = vsel %vm3731_vm13, %v3730_v15, %v3725_v53 }
 0x280   :  { %v3866_v25 = vsel %vm3724_vm12, %v3865_v23, %v3861_v17  ;;  %v3739_v34 = vsel %vm3738_vm14, %v3737_v42, %v3732_v8 }
 0x281   :  { %v3611_v26 = vpop.xlane.xlu1 %3610 }
 0x282   :  { %v3675_v6 = vmul.f32 0.00390625, %v3611_v26  ;;  %v3779_v26 = vrot.slane %v3674_v52, %v3736_v5 }
 0x284   :  { %v3784_v54 = vrot.slane %v3675_v6, %v3743_v40  ;;  %v3780_v16 = vsel %vm3738_vm14, %v3779_v26, %v3775_v2 }
 0x286   :  { %v3785_v61 = vsel %vm3745_vm15, %v3784_v54, %v3780_v16 }
 0x28f   :  { %v3595_v59 = vpop.xlane.xlu0 %3594 }
 0x290   :  { %v3667_v49 = vmul.f32 0.00390625, %v3595_v59 }
 0x292   :  { %v3744_v20 = vrot.slane %v3667_v49, %v3743_v40 }
 0x294   :  { %v3746_v47 = vsel %vm3745_vm15, %v3744_v20, %v3739_v34 }
 0x295   :  { %v3786_v35 = vsel %vm2194_vm1, %v3785_v61, %v3746_v47 }
 0x29e   :  { %v5675_v57 = vpop.xlane.xlu1 %3654 }
 0x29f   :  { %v3870_v31 = vrot.slane %v5675_v57, %v3729_v22  ;;  %v3822_v57 = vsel %vm3717_vm11, %v3821_v12, %v3817_v30 }
 0x2a0   :  { %v3827_v37 = vsel %vm3724_vm12, %v3826_v39, %v3822_v57 }
 0x2a1   :  { %v3871_v28 = vsel %vm3731_vm13, %v3870_v31, %v3866_v25 }
 0x2ae   :  { %v3639_v38 = vpop.xlane.xlu0 %3638 }
 0x2af   :  { %v3831_v43 = vrot.slane %v3639_v38, %v3729_v22 }
 0x2b1   :  { %v3832_v32 = vsel %vm3731_vm13, %v3831_v43, %v3827_v37 }
 0x2be   :  { %v3657_v27 = vpop.xlane.xlu1 %3656 }
 0x2bf   :  { %v3875_v21 = vrot.slane %v3657_v27, %v3736_v5 }
 0x2c1   :  { %v3876_v0 = vsel %vm3738_vm14, %v3875_v21, %v3871_v28 }
 0x2ce   :  { %v3641_v7 = vpop.xlane.xlu0 %3640 }
 0x2cf   :  { %v3836_v59 = vrot.slane %v3641_v7, %v3736_v5 }
 0x2d1   :  { %v3837_v45 = vsel %vm3738_vm14, %v3836_v59, %v3832_v32 }
 0x2dd   :  { %v3659_v46 = vpop.xlane.xlu1 %3658 }
 0x2de   :  { %v3880_v19 = vrot.slane %v3659_v46, %v3743_v40 }
 0x2e0   :  { %v3881_v41 = vsel %vm3745_vm15, %v3880_v19, %v3876_v0 }
 0x2ed   :  { %v3643_v63 = vpop.xlane.xlu0 %3642 }
 0x2ee   :  { %v3841_v14 = vrot.slane %v3643_v63, %v3743_v40 }
 0x2f0   :  { %v3842_v58 = vsel %vm3745_vm15, %v3841_v14, %v3837_v45 }
 0x2f1   :  { %v3882_v60 = vsel %vm2198_vm3, %v3881_v41, %v3842_v58 }
 0x2f2   :  { %v3884_v55 = vsel %vm1169_vm0, %v3786_v35, %v3882_v60  ;;  %vm4057_vm0 = vcmask 517120  }
 0x2f3   :  { %4106 = vmatmul.mubr.msk.f32.vlgmr.msra.gmra.mrb[0].mxu0 %vm3894_vm2, %v3884_v55 }
 0x3c6   :  { %v3964_v10 = vpop.f32.mrb[0].mxu0 }
 0x3c7   :  { %v3968_v3 = vmax.f32 %v3964_v10, 0.0  ;;  %v4107_v56 = vpop.f32.mrb[1].mxu0 }
 0x3c9   :  { %4111 = vmatmul.mubr.msk.f32.vlgmr.msra.gmra.mrb[0].mxu1 %vm3969_vm5, %v3968_v3 }
 0x49c   :  { %v4043_v29 = vpop.f32.mrb[0].mxu1 }
 0x49d   :  { %v4048_v38 = vrot.slane %v4043_v29, 2  ;;  %v4112_v27 = vpop.f32.mrb[1].mxu1 }
 0x49f   :  { %v4050_v48 = vadd.f32 %v4048_v38, %v4043_v29 }
 0x4a1   :  { %v4077_v1 = vmul.f32 -1.442695, %v4050_v48 }
 0x4a3   :  { %4134 = vpow2.f32 %v4077_v1 }
 0x4ad   :  { %v4135_v4 = vpop.eup %4134 }
 0x4ae   :  { %v4054_v33 = vadd.f32 1.0, %v4135_v4 }
 0x4b0   :  { %4136 = vrcp.f32 %v4054_v33 }
 0x4ba   :  { %v4137_v62 = vpop.eup %4136 }
 0x4bb   :  { %4058 = vst.msk [vmem:[#allocation7] sm:$0x3] %vm4057_vm0, %v4137_v62 }
 0x4bc   :  { %4171 = shalt.err (!%p4168_p12)
}
 0x4bd   :  { %s4172_s19 = scalar_lea.hbm %s5751_s3, 32 }
 0x4be   :  { %p4173_p13 = scmp.ne.s32.totalorder %s5751_s3, %s4172_s19  ;;  %p4176_p0 = scmp.lt.u32.totalorder %s4172_s19, %s5751_s3 }
 0x4c0   :  { %p4178_p1 = pnand %p4176_p0, %p4173_p13 }
 0x4c2   :  { %4181 = shalt.err (!%p4178_p1)
}
 0x4c3   :  { %4068 = dma.vmem_to_hbm [thread:$0]  %s4066_s16, 32, %s5751_s3, [#allocation6]  }
 0x4c4   :  { %4184 = dma.done.wait [#allocation6], 32  }
 0x4c5   :  { %4185 = vsyncadd [#allocation6], 4294967264 }
 0x4c6   :  { %4072 = vsyncpa [#allocation5], 1 }
 0x4c7   :  { %4073 = vsyncpa [#allocation6], 1 }

</bundles_post_ra>
